<compile_context>
chip_gen: v7x
topology: tpu7x:2x2x1
jax: 0.10.0
libtpu: 0.0.40
codegen_flags: <defaults>
</compile_context>

<pallas_src>
import functools

import jax
import jax.numpy as jnp
from jax.experimental import pallas as pl
from jax.experimental.pallas import tpu as pltpu


# ----------------------------- fused kernel body ----------------------------

def _make_dbpn_kernel(CP, nph, ntap, kp, WP, Wo, LACC, LSLAB, GOFF, ips):
    """Fused DownProjectionBlock body; `ips` images processed per grid step.

    All spatial data is a (rows, WP)-pitched flattening on the lane axis:
      * input phases / padded l0 / padded d live in a (CP, LSLAB) "slab" whose
        10x10 valid region starts at lane 0 (inputs) resp. whose 8x8 core
        starts at lane GOFF = q*WP + q inside a zero background,
      * accumulators are (·, LACC = Ho*WP = 128) with Wo valid columns per
        pitched row; columns >= Wo are wrap garbage that is never consumed.
    A tap (u, v) of a stride-1 kp x kp conv is a lane slice of the slab at
    offset u*WP + v, so each conv is ONE stacked-K MXU matmul.
    """
    f32 = jnp.float32

    def _prelu(z, a):
        return jnp.where(z >= 0.0, z, a * z)

    def kernel(xph_ref, w1_ref, w2_ref, w3_ref, b1_ref, b2_ref, b3_ref,
               alpha_ref, out_ref, rhs_ref, slab_ref):
        # ---- hoisted constants (computed once per grid step) ----------------
        lane = jax.lax.broadcasted_iota(jnp.int32, (CP, LACC), 1)
        colmask = (lane % WP) < Wo                     # valid (non-wrap) cols
        b1b = jnp.broadcast_to(b1_ref[...], (CP, LACC))
        b2b = jnp.broadcast_to(b2_ref[...], (nph * CP, LACC))
        b3b = jnp.broadcast_to(b3_ref[...], (CP, LACC))
        a1, a2, a3 = alpha_ref[0], alpha_ref[1], alpha_ref[2]

        # Zero the slab background once: margins / masked columns stay zero,
        # the data window [GOFF, GOFF + LACC) is fully overwritten every use.
        slab_ref[...] = jnp.zeros((CP, LSLAB), f32)

        def fill_rhs(block0, src):
            # ntap lane-shifted tap slices -> contiguous K rows of the RHS
            # scratch (sublane-aligned, full 128-lane stores).
            for t in range(ntap):
                u, v = divmod(t, kp)
                off = u * WP + v
                rhs_ref[pl.ds((block0 + t) * CP, CP), :] = (
                    src[:, off:off + LACC])

        for img in range(ips):
            # ---- conv1 (strided conv via input-phase decomposition):
            #      ONE (CP, nph*ntap*CP) @ (nph*ntap*CP, LACC) dot ------------
            for ph in range(nph):
                fill_rhs(ph * ntap, xph_ref[img * nph + ph])
            acc1 = jnp.dot(w1_ref[...], rhs_ref[...],
                           preferred_element_type=f32)
            l0 = _prelu(acc1 + b1b, a1)                           # (CP, LACC)

            # ---- padded l0 slab: mask wrap cols, one full-width store -------
            slab_ref[:, pl.ds(GOFF, LACC)] = jnp.where(colmask, l0, 0.0)

            # ---- deconv (sub-pixel phases): ONE dot gives all nph h0 phases -
            fill_rhs(0, slab_ref[...])
            h0 = jnp.dot(w2_ref[...], rhs_ref[pl.ds(0, ntap * CP), :],
                         preferred_element_type=f32)
            h0 = _prelu(h0 + b2b, a2)                        # (nph*CP, LACC)

            # ---- d = h0 - x per phase -> stacked conv3 RHS -> ONE dot -------
            for ph in range(nph):
                x_int = xph_ref[img * nph + ph][:, GOFF:GOFF + LACC]
                d_ph = h0[ph * CP:(ph + 1) * CP, :] - x_int
                slab_ref[:, pl.ds(GOFF, LACC)] = jnp.where(colmask, d_ph, 0.0)
                fill_rhs(ph * ntap, slab_ref[...])
            acc3 = jnp.dot(w3_ref[...], rhs_ref[...],
                           preferred_element_type=f32)
            out_ref[pl.ds(img * CP, CP), :] = _prelu(acc3 + b3b, a3) + l0

    return kernel


def _images_per_step(batch):
    # v7x has 2 TensorCores per chip: keep one image per ("parallel") grid
    # step so megacore splits the batch.  v5e / v6e are single-core: fold the
    # whole batch into one grid step to avoid per-step pipeline overhead.
    # Both paths are numerically identical; detection is best-effort.
    try:
        kind = jax.devices()[0].device_kind.lower()
    except Exception:
        kind = ""
    return 1 if "v7" in kind else batch


# ------------------------------- block wrapper -------------------------------

def down_projection_block(params, x, *, k, stride, pad):
    """DBPN DownProjectionBlock forward.  x: (N, C, H, W) NCHW (PyTorch)."""
    N, C, H, W = x.shape
    s, p = stride, pad
    # Sub-pixel decomposition assumes the standard DBPN 2x geometry.
    # TODO(synk): generalize to configs with k % s != 0 or p % s != 0.
    assert k == s + 2 * p and k % s == 0 and p % s == 0, (k, s, p)
    assert H % s == 0 and W % s == 0, (H, W, s)

    kp, q = k // s, p // s
    Ho, Wo = H // s, W // s
    nph, ntap = s * s, kp * kp
    T = nph * ntap
    CP = ((C + 7) // 8) * 8
    f32 = jnp.float32

    # Lane-dense pitch: at least the padded-phase width, rounded up so the
    # flattened (Ho, WP) accumulator is a full 128 lanes (8 * 16 = 128 for the
    # 2x DBPN config -> unmasked, full-vreg output stores).
    WVAL = Wo + 2 * q                       # valid padded-phase width (10)
    HVAL = Ho + 2 * q                       # valid padded-phase height (10)
    WP = max(WVAL, -(-128 // Ho))           # row pitch (16)
    LACC = Ho * WP                          # accumulator lanes (128)
    GOFF = q * WP + q                       # core offset inside a slab (17)
    LSLAB = -(-((kp - 1) * (WP + 1) + LACC) // 128) * 128   # slab lanes (256)

    # --- glue: pad + phase-split the input (input-sized, no k*k im2col) -----
    xpad = jnp.pad(x.astype(f32), ((0, 0), (0, CP - C), (p, p), (p, p)))
    phases = [xpad[:, :, a::s, b::s] for a in range(s) for b in range(s)]
    xph = jnp.stack(phases, axis=1)                   # (N, nph, CP, HVAL, WVAL)
    xph = jnp.pad(xph, ((0, 0),) * 4 + ((0, WP - WVAL),))
    xph = xph.reshape(N, nph, CP, HVAL * WP)
    xph = jnp.pad(xph, ((0, 0), (0, 0), (0, 0), (0, LSLAB - HVAL * WP)))
    xph = xph.reshape(N * nph, CP, LSLAB)

    # --- glue: stacked-K weight packing (tiny) --------------------------------
    def pack_conv(w):            # nn.Conv2d weight (C, C, k, k) -> (CP, T*CP)
        cols = [jnp.pad(w[:, :, s * u + a, s * v + b],
                        ((0, CP - C), (0, CP - C)))
                for a in range(s) for b in range(s)
                for u in range(kp) for v in range(kp)]
        return jnp.concatenate(cols, axis=1).astype(f32)

    def pack_deconv(w):  # nn.ConvTranspose2d weight (C, C, k, k) -> (nph*CP, ntap*CP)
        rows = []
        for a in range(s):
            for b in range(s):
                cols = [jnp.pad(w[:, :, s * (kp - 1 - u) + a,
                                   s * (kp - 1 - v) + b].T,
                                ((0, CP - C), (0, CP - C)))
                        for u in range(kp) for v in range(kp)]
                rows.append(jnp.concatenate(cols, axis=1))
        return jnp.concatenate(rows, axis=0).astype(f32)

    w1p = pack_conv(params["w1"])
    w2p = pack_deconv(params["w2"])
    w3p = pack_conv(params["w3"])

    def col_bias(b):
        return jnp.pad(b.astype(f32).reshape(C, 1), ((0, CP - C), (0, 0)))

    b1c = col_bias(params["b1"])
    b2c = jnp.tile(col_bias(params["b2"]), (nph, 1))       # per-phase rows
    b3c = col_bias(params["b3"])
    alphas = jnp.stack([jnp.asarray(params["a1"], f32).reshape(()),
                        jnp.asarray(params["a2"], f32).reshape(()),
                        jnp.asarray(params["a3"], f32).reshape(())])

    ips = _images_per_step(N)
    steps = N // ips
    kernel = _make_dbpn_kernel(CP, nph, ntap, kp, WP, Wo, LACC, LSLAB, GOFF,
                               ips)

    out = pl.pallas_call(
        kernel,
        out_shape=jax.ShapeDtypeStruct((N * CP, LACC), f32),
        grid=(steps,),
        in_specs=[
            pl.BlockSpec((ips * nph, CP, LSLAB), lambda n: (n, 0, 0)),  # x phases
            pl.BlockSpec((CP, T * CP), lambda n: (0, 0)),               # w1 packed
            pl.BlockSpec((nph * CP, ntap * CP), lambda n: (0, 0)),      # w2 packed
            pl.BlockSpec((CP, T * CP), lambda n: (0, 0)),               # w3 packed
            pl.BlockSpec((CP, 1), lambda n: (0, 0)),                    # b1
            pl.BlockSpec((nph * CP, 1), lambda n: (0, 0)),              # b2
            pl.BlockSpec((CP, 1), lambda n: (0, 0)),                    # b3
            pl.BlockSpec(memory_space=pltpu.MemorySpace.SMEM),          # alphas
        ],
        out_specs=pl.BlockSpec((ips * CP, LACC), lambda n: (n, 0)),
        scratch_shapes=[pltpu.VMEM((T * CP, LACC), f32),   # stacked-K RHS
                        pltpu.VMEM((CP, LSLAB), f32)],     # reusable pad slab
        compiler_params=pltpu.CompilerParams(
            dimension_semantics=("parallel",)),
    )(xph, w1p, w2p, w3p, b1c, b2c, b3c, alphas)

    # Drop channel padding and pitch-wrap columns; result is already NCHW.
    return out.reshape(N, CP, Ho, WP)[:, :C, :, :Wo]


# --------------------------- pure-JAX reference ------------------------------

def _ref_forward(params, x, *, k, stride, pad):
    dn = jax.lax.conv_dimension_numbers(
        x.shape, params["w1"].shape, ("NCHW", "OIHW", "NCHW"))

    def conv(y, w, b):
        z = jax.lax.conv_general_dilated(
            y, w, (stride, stride), [(pad, pad), (pad, pad)],
            dimension_numbers=dn, precision=jax.lax.Precision.HIGHEST)
        return z + b[None, :, None, None]

    def deconv(y, w, b):
        w_eq = jnp.transpose(jnp.flip(w, axis=(2, 3)), (1, 0, 2, 3))
        z = jax.lax.conv_general_dilated(
            y, w_eq, (1, 1), [(k - 1 - pad, k - 1 - pad)] * 2,
            lhs_dilation=(stride, stride),
            dimension_numbers=dn, precision=jax.lax.Precision.HIGHEST)
        return z + b[None, :, None, None]

    def prelu(y, a):
        return jnp.where(y >= 0, y, a * y)

    l0 = prelu(conv(x, params["w1"], params["b1"]), params["a1"])
    h0 = prelu(deconv(l0, params["w2"], params["b2"]), params["a2"])
    l1 = prelu(conv(h0 - x, params["w3"], params["b3"]), params["a3"])
    return l1 + l0


# ---------------------------------- main -------------------------------------

if __name__ == "__main__":
    channels, kernel_size, stride, padding = 4, 6, 2, 2
    N, H, W = 2, 16, 16

    key = jax.random.PRNGKey(0)
    kw1, kw2, kw3, kb1, kb2, kb3, kx = jax.random.split(key, 7)
    fan_in = channels * kernel_size * kernel_size
    bound = 1.0 / (fan_in ** 0.5)

    def uinit(kk, shape):
        return jax.random.uniform(kk, shape, jnp.float32, -bound, bound)

    params = {
        # conv1: nn.Conv2d(C, C, k, s, p) -> weight (Cout, Cin, k, k)
        "w1": uinit(kw1, (channels, channels, kernel_size, kernel_size)),
        "b1": uinit(kb1, (channels,)),
        "a1": jnp.float32(0.25),   # nn.PReLU() default single-parameter init
        # conv2: nn.ConvTranspose2d(C, C, k, s, p) -> weight (Cin, Cout, k, k)
        "w2": uinit(kw2, (channels, channels, kernel_size, kernel_size)),
        "b2": uinit(kb2, (channels,)),
        "a2": jnp.float32(0.25),
        # conv3: nn.Conv2d(C, C, k, s, p)
        "w3": uinit(kw3, (channels, channels, kernel_size, kernel_size)),
        "b3": uinit(kb3, (channels,)),
        "a3": jnp.float32(0.25),
    }

    x = jax.random.normal(kx, (N, channels, H, W), jnp.float32)

    fwd = jax.jit(functools.partial(
        down_projection_block, k=kernel_size, stride=stride, pad=padding))
    out = jax.block_until_ready(fwd(params, x))

    Ho = (H + 2 * padding - kernel_size) // stride + 1
    assert out.shape == (N, channels, Ho, Ho), out.shape

    ref = _ref_forward(params, x, k=kernel_size, stride=stride, pad=padding)
    max_err = float(jnp.max(jnp.abs(out - ref)))
    assert max_err < 1e-3, f"max abs error {max_err}"

    print("KERNEL_OK")
</pallas_src>

<mosaic_0001>
module attributes {stable_mosaic.version = 11 : i64} {
  func.func @kernel(%arg0: i32, %arg1: memref<8x8x256xf32, #tpu.memory_space<vmem>>, %arg2: memref<8x288xf32, #tpu.memory_space<vmem>>, %arg3: memref<32x72xf32, #tpu.memory_space<vmem>>, %arg4: memref<8x288xf32, #tpu.memory_space<vmem>>, %arg5: memref<8x1xf32, #tpu.memory_space<vmem>>, %arg6: memref<32x1xf32, #tpu.memory_space<vmem>>, %arg7: memref<8x1xf32, #tpu.memory_space<vmem>>, %arg8: memref<3xf32, #tpu.memory_space<smem>>, %arg9: memref<16x128xf32, #tpu.memory_space<vmem>>, %arg10: memref<288x128xf32, #tpu.memory_space<vmem>>, %arg11: memref<8x256xf32, #tpu.memory_space<vmem>>) attributes {dimension_semantics = [#tpu.dimension_semantics<parallel>], iteration_bounds = array<i64: 1>, scalar_prefetch = 0 : i64, scratch_operands = 2 : i64, tpu.core_type = #tpu.core_type<tc>, window_params = [{transform_indices = @transform_0, window_bounds = array<i64: 8, 8, 256>}, {pipeline_mode = #tpu.pipeline_mode<synchronous>, transform_indices = @transform_1, window_bounds = array<i64: 8, 288>}, {pipeline_mode = #tpu.pipeline_mode<synchronous>, transform_indices = @transform_2, window_bounds = array<i64: 32, 72>}, {pipeline_mode = #tpu.pipeline_mode<synchronous>, transform_indices = @transform_3, window_bounds = array<i64: 8, 288>}, {pipeline_mode = #tpu.pipeline_mode<synchronous>, transform_indices = @transform_4, window_bounds = array<i64: 8, 1>}, {pipeline_mode = #tpu.pipeline_mode<synchronous>, transform_indices = @transform_5, window_bounds = array<i64: 32, 1>}, {pipeline_mode = #tpu.pipeline_mode<synchronous>, transform_indices = @transform_6, window_bounds = array<i64: 8, 1>}, {transform_indices = @transform_7, window_bounds = array<i64: 3>}, {transform_indices = @transform_8, window_bounds = array<i64: 16, 128>}]} {
    %0 = tpu.iota {dimensions = array<i32: 1>} : vector<8x128xi32>
    %c16_i32 = arith.constant 16 : i32
    %c0_i32 = arith.constant 0 : i32
    %1 = arith.cmpi eq, %c16_i32, %c0_i32 : i32
    %c1_i32 = arith.constant 1 : i32
    %2 = arith.select %1, %c1_i32, %c16_i32 : i32
    %3 = vector.broadcast %2 : i32 to vector<8x128xi32>
    %4 = arith.remsi %0, %3 : vector<8x128xi32>
    %c0_i32_0 = arith.constant 0 : i32
    %5 = vector.broadcast %c0_i32_0 : i32 to vector<8x128xi32>
    %6 = arith.cmpi ne, %4, %5 : vector<8x128xi32>
    %c0_i32_1 = arith.constant 0 : i32
    %7 = vector.broadcast %c0_i32_1 : i32 to vector<8x128xi32>
    %8 = arith.cmpi slt, %4, %7 : vector<8x128xi32>
    %c0_i32_2 = arith.constant 0 : i32
    %9 = arith.cmpi slt, %2, %c0_i32_2 : i32
    %10 = vector.broadcast %9 : i1 to vector<8x128xi1>
    %11 = vector.broadcast %10 : vector<8x128xi1> to vector<8x128xi1>
    %12 = arith.xori %8, %11 : vector<8x128xi1>
    %13 = arith.andi %12, %6 : vector<8x128xi1>
    %14 = vector.broadcast %2 : i32 to vector<8x128xi32>
    %15 = arith.addi %4, %14 : vector<8x128xi32>
    %16 = arith.select %13, %15, %4 : vector<8x128xi1>, vector<8x128xi32>
    %c8_i32 = arith.constant 8 : i32
    %17 = vector.broadcast %c8_i32 : i32 to vector<8x128xi32>
    %18 = arith.cmpi slt, %16, %17 : vector<8x128xi32>
    %c0 = arith.constant 0 : index
    %c0_3 = arith.constant 0 : index
    %19 = vector.load %arg5[%c0, %c0_3] : memref<8x1xf32, #tpu.memory_space<vmem>>, vector<8x1xf32>
    %20 = vector.shape_cast %19 : vector<8x1xf32> to vector<8x1xf32>
    %21 = vector.broadcast %20 : vector<8x1xf32> to vector<8x128xf32>
    %c0_4 = arith.constant 0 : index
    %c0_5 = arith.constant 0 : index
    %22 = vector.load %arg6[%c0_4, %c0_5] : memref<32x1xf32, #tpu.memory_space<vmem>>, vector<32x1xf32>
    %23 = vector.shape_cast %22 : vector<32x1xf32> to vector<32x1xf32>
    %24 = vector.broadcast %23 : vector<32x1xf32> to vector<32x128xf32>
    %c0_6 = arith.constant 0 : index
    %c0_7 = arith.constant 0 : index
    %25 = vector.load %arg7[%c0_6, %c0_7] : memref<8x1xf32, #tpu.memory_space<vmem>>, vector<8x1xf32>
    %26 = vector.shape_cast %25 : vector<8x1xf32> to vector<8x1xf32>
    %27 = vector.broadcast %26 : vector<8x1xf32> to vector<8x128xf32>
    %c0_8 = arith.constant 0 : index
    %28 = memref.load %arg8[%c0_8] : memref<3xf32, #tpu.memory_space<smem>>
    %c1 = arith.constant 1 : index
    %29 = memref.load %arg8[%c1] : memref<3xf32, #tpu.memory_space<smem>>
    %c2 = arith.constant 2 : index
    %30 = memref.load %arg8[%c2] : memref<3xf32, #tpu.memory_space<smem>>
    %cst = arith.constant 0.000000e+00 : f32
    %31 = vector.broadcast %cst : f32 to vector<8x256xf32>
    %c0_9 = arith.constant 0 : index
    %c0_10 = arith.constant 0 : index
    %32 = vector.load %arg11[%c0_9, %c0_10] : memref<8x256xf32, #tpu.memory_space<vmem>>, vector<8x256xf32>
    tpu.vector_store %arg11[%c0_9, %c0_10], %31 {strides = array<i32>} : memref<8x256xf32, #tpu.memory_space<vmem>>, vector<8x256xf32>,
    %c0_11 = arith.constant 0 : index
    %c0_12 = arith.constant 0 : index
    %c0_13 = arith.constant 0 : index
    %33 = vector.load %arg1[%c0_11, %c0_12, %c0_13] : memref<8x8x256xf32, #tpu.memory_space<vmem>>, vector<1x8x256xf32>
    %34 = vector.shape_cast %33 : vector<1x8x256xf32> to vector<8x256xf32>
    %35 = vector.extract_strided_slice %34 {offsets = [0, 0], sizes = [8, 128], strides = [1, 1]} : vector<8x256xf32> to vector<8x128xf32>
    %c0_14 = arith.constant 0 : index
    %c0_15 = arith.constant 0 : index
    %36 = vector.load %arg10[%c0_14, %c0_15] : memref<288x128xf32, #tpu.memory_space<vmem>>, vector<8x128xf32>
    tpu.vector_store %arg10[%c0_14, %c0_15], %35 {strides = array<i32>} : memref<288x128xf32, #tpu.memory_space<vmem>>, vector<8x128xf32>,
    %37 = vector.extract_strided_slice %34 {offsets = [0, 1], sizes = [8, 128], strides = [1, 1]} : vector<8x256xf32> to vector<8x128xf32>
    %c8 = arith.constant 8 : index
    %c0_16 = arith.constant 0 : index
    %38 = vector.load %arg10[%c8, %c0_16] : memref<288x128xf32, #tpu.memory_space<vmem>>, vector<8x128xf32>
    tpu.vector_store %arg10[%c8, %c0_16], %37 {strides = array<i32>} : memref<288x128xf32, #tpu.memory_space<vmem>>, vector<8x128xf32>,
    %39 = vector.extract_strided_slice %34 {offsets = [0, 2], sizes = [8, 128], strides = [1, 1]} : vector<8x256xf32> to vector<8x128xf32>
    %c16 = arith.constant 16 : index
    %c0_17 = arith.constant 0 : index
    %40 = vector.load %arg10[%c16, %c0_17] : memref<288x128xf32, #tpu.memory_space<vmem>>, vector<8x128xf32>
    tpu.vector_store %arg10[%c16, %c0_17], %39 {strides = array<i32>} : memref<288x128xf32, #tpu.memory_space<vmem>>, vector<8x128xf32>,
    %41 = vector.extract_strided_slice %34 {offsets = [0, 16], sizes = [8, 128], strides = [1, 1]} : vector<8x256xf32> to vector<8x128xf32>
    %c24 = arith.constant 24 : index
    %c0_18 = arith.constant 0 : index
    %42 = vector.load %arg10[%c24, %c0_18] : memref<288x128xf32, #tpu.memory_space<vmem>>, vector<8x128xf32>
    tpu.vector_store %arg10[%c24, %c0_18], %41 {strides = array<i32>} : memref<288x128xf32, #tpu.memory_space<vmem>>, vector<8x128xf32>,
    %43 = vector.extract_strided_slice %34 {offsets = [0, 17], sizes = [8, 128], strides = [1, 1]} : vector<8x256xf32> to vector<8x128xf32>
    %c32 = arith.constant 32 : index
    %c0_19 = arith.constant 0 : index
    %44 = vector.load %arg10[%c32, %c0_19] : memref<288x128xf32, #tpu.memory_space<vmem>>, vector<8x128xf32>
    tpu.vector_store %arg10[%c32, %c0_19], %43 {strides = array<i32>} : memref<288x128xf32, #tpu.memory_space<vmem>>, vector<8x128xf32>,
    %45 = vector.extract_strided_slice %34 {offsets = [0, 18], sizes = [8, 128], strides = [1, 1]} : vector<8x256xf32> to vector<8x128xf32>
    %c40 = arith.constant 40 : index
    %c0_20 = arith.constant 0 : index
    %46 = vector.load %arg10[%c40, %c0_20] : memref<288x128xf32, #tpu.memory_space<vmem>>, vector<8x128xf32>
    tpu.vector_store %arg10[%c40, %c0_20], %45 {strides = array<i32>} : memref<288x128xf32, #tpu.memory_space<vmem>>, vector<8x128xf32>,
    %47 = vector.extract_strided_slice %34 {offsets = [0, 32], sizes = [8, 128], strides = [1, 1]} : vector<8x256xf32> to vector<8x128xf32>
    %c48 = arith.constant 48 : index
    %c0_21 = arith.constant 0 : index
    %48 = vector.load %arg10[%c48, %c0_21] : memref<288x128xf32, #tpu.memory_space<vmem>>, vector<8x128xf32>
    tpu.vector_store %arg10[%c48, %c0_21], %47 {strides = array<i32>} : memref<288x128xf32, #tpu.memory_space<vmem>>, vector<8x128xf32>,
    %49 = vector.extract_strided_slice %34 {offsets = [0, 33], sizes = [8, 128], strides = [1, 1]} : vector<8x256xf32> to vector<8x128xf32>
    %c56 = arith.constant 56 : index
    %c0_22 = arith.constant 0 : index
    %50 = vector.load %arg10[%c56, %c0_22] : memref<288x128xf32, #tpu.memory_space<vmem>>, vector<8x128xf32>
    tpu.vector_store %arg10[%c56, %c0_22], %49 {strides = array<i32>} : memref<288x128xf32, #tpu.memory_space<vmem>>, vector<8x128xf32>,
    %51 = vector.extract_strided_slice %34 {offsets = [0, 34], sizes = [8, 128], strides = [1, 1]} : vector<8x256xf32> to vector<8x128xf32>
    %c64 = arith.constant 64 : index
    %c0_23 = arith.constant 0 : index
    %52 = vector.load %arg10[%c64, %c0_23] : memref<288x128xf32, #tpu.memory_space<vmem>>, vector<8x128xf32>
    tpu.vector_store %arg10[%c64, %c0_23], %51 {strides = array<i32>} : memref<288x128xf32, #tpu.memory_space<vmem>>, vector<8x128xf32>,
    %c1_24 = arith.constant 1 : index
    %c0_25 = arith.constant 0 : index
    %c0_26 = arith.constant 0 : index
    %53 = vector.load %arg1[%c1_24, %c0_25, %c0_26] : memref<8x8x256xf32, #tpu.memory_space<vmem>>, vector<1x8x256xf32>
    %54 = vector.shape_cast %53 : vector<1x8x256xf32> to vector<8x256xf32>
    %55 = vector.extract_strided_slice %54 {offsets = [0, 0], sizes = [8, 128], strides = [1, 1]} : vector<8x256xf32> to vector<8x128xf32>
    %c72 = arith.constant 72 : index
    %c0_27 = arith.constant 0 : index
    %56 = vector.load %arg10[%c72, %c0_27] : memref<288x128xf32, #tpu.memory_space<vmem>>, vector<8x128xf32>
    tpu.vector_store %arg10[%c72, %c0_27], %55 {strides = array<i32>} : memref<288x128xf32, #tpu.memory_space<vmem>>, vector<8x128xf32>,
    %57 = vector.extract_strided_slice %54 {offsets = [0, 1], sizes = [8, 128], strides = [1, 1]} : vector<8x256xf32> to vector<8x128xf32>
    %c80 = arith.constant 80 : index
    %c0_28 = arith.constant 0 : index
    %58 = vector.load %arg10[%c80, %c0_28] : memref<288x128xf32, #tpu.memory_space<vmem>>, vector<8x128xf32>
    tpu.vector_store %arg10[%c80, %c0_28], %57 {strides = array<i32>} : memref<288x128xf32, #tpu.memory_space<vmem>>, vector<8x128xf32>,
    %59 = vector.extract_strided_slice %54 {offsets = [0, 2], sizes = [8, 128], strides = [1, 1]} : vector<8x256xf32> to vector<8x128xf32>
    %c88 = arith.constant 88 : index
    %c0_29 = arith.constant 0 : index
    %60 = vector.load %arg10[%c88, %c0_29] : memref<288x128xf32, #tpu.memory_space<vmem>>, vector<8x128xf32>
    tpu.vector_store %arg10[%c88, %c0_29], %59 {strides = array<i32>} : memref<288x128xf32, #tpu.memory_space<vmem>>, vector<8x128xf32>,
    %61 = vector.extract_strided_slice %54 {offsets = [0, 16], sizes = [8, 128], strides = [1, 1]} : vector<8x256xf32> to vector<8x128xf32>
    %c96 = arith.constant 96 : index
    %c0_30 = arith.constant 0 : index
    %62 = vector.load %arg10[%c96, %c0_30] : memref<288x128xf32, #tpu.memory_space<vmem>>, vector<8x128xf32>
    tpu.vector_store %arg10[%c96, %c0_30], %61 {strides = array<i32>} : memref<288x128xf32, #tpu.memory_space<vmem>>, vector<8x128xf32>,
    %63 = vector.extract_strided_slice %54 {offsets = [0, 17], sizes = [8, 128], strides = [1, 1]} : vector<8x256xf32> to vector<8x128xf32>
    %c104 = arith.constant 104 : index
    %c0_31 = arith.constant 0 : index
    %64 = vector.load %arg10[%c104, %c0_31] : memref<288x128xf32, #tpu.memory_space<vmem>>, vector<8x128xf32>
    tpu.vector_store %arg10[%c104, %c0_31], %63 {strides = array<i32>} : memref<288x128xf32, #tpu.memory_space<vmem>>, vector<8x128xf32>,
    %65 = vector.extract_strided_slice %54 {offsets = [0, 18], sizes = [8, 128], strides = [1, 1]} : vector<8x256xf32> to vector<8x128xf32>
    %c112 = arith.constant 112 : index
    %c0_32 = arith.constant 0 : index
    %66 = vector.load %arg10[%c112, %c0_32] : memref<288x128xf32, #tpu.memory_space<vmem>>, vector<8x128xf32>
    tpu.vector_store %arg10[%c112, %c0_32], %65 {strides = array<i32>} : memref<288x128xf32, #tpu.memory_space<vmem>>, vector<8x128xf32>,
    %67 = vector.extract_strided_slice %54 {offsets = [0, 32], sizes = [8, 128], strides = [1, 1]} : vector<8x256xf32> to vector<8x128xf32>
    %c120 = arith.constant 120 : index
    %c0_33 = arith.constant 0 : index
    %68 = vector.load %arg10[%c120, %c0_33] : memref<288x128xf32, #tpu.memory_space<vmem>>, vector<8x128xf32>
    tpu.vector_store %arg10[%c120, %c0_33], %67 {strides = array<i32>} : memref<288x128xf32, #tpu.memory_space<vmem>>, vector<8x128xf32>,
    %69 = vector.extract_strided_slice %54 {offsets = [0, 33], sizes = [8, 128], strides = [1, 1]} : vector<8x256xf32> to vector<8x128xf32>
    %c128 = arith.constant 128 : index
    %c0_34 = arith.constant 0 : index
    %70 = vector.load %arg10[%c128, %c0_34] : memref<288x128xf32, #tpu.memory_space<vmem>>, vector<8x128xf32>
    tpu.vector_store %arg10[%c128, %c0_34], %69 {strides = array<i32>} : memref<288x128xf32, #tpu.memory_space<vmem>>, vector<8x128xf32>,
    %71 = vector.extract_strided_slice %54 {offsets = [0, 34], sizes = [8, 128], strides = [1, 1]} : vector<8x256xf32> to vector<8x128xf32>
    %c136 = arith.constant 136 : index
    %c0_35 = arith.constant 0 : index
    %72 = vector.load %arg10[%c136, %c0_35] : memref<288x128xf32, #tpu.memory_space<vmem>>, vector<8x128xf32>
    tpu.vector_store %arg10[%c136, %c0_35], %71 {strides = array<i32>} : memref<288x128xf32, #tpu.memory_space<vmem>>, vector<8x128xf32>,
    %c2_36 = arith.constant 2 : index
    %c0_37 = arith.constant 0 : index
    %c0_38 = arith.constant 0 : index
    %73 = vector.load %arg1[%c2_36, %c0_37, %c0_38] : memref<8x8x256xf32, #tpu.memory_space<vmem>>, vector<1x8x256xf32>
    %74 = vector.shape_cast %73 : vector<1x8x256xf32> to vector<8x256xf32>
    %75 = vector.extract_strided_slice %74 {offsets = [0, 0], sizes = [8, 128], strides = [1, 1]} : vector<8x256xf32> to vector<8x128xf32>
    %c144 = arith.constant 144 : index
    %c0_39 = arith.constant 0 : index
    %76 = vector.load %arg10[%c144, %c0_39] : memref<288x128xf32, #tpu.memory_space<vmem>>, vector<8x128xf32>
    tpu.vector_store %arg10[%c144, %c0_39], %75 {strides = array<i32>} : memref<288x128xf32, #tpu.memory_space<vmem>>, vector<8x128xf32>,
    %77 = vector.extract_strided_slice %74 {offsets = [0, 1], sizes = [8, 128], strides = [1, 1]} : vector<8x256xf32> to vector<8x128xf32>
    %c152 = arith.constant 152 : index
    %c0_40 = arith.constant 0 : index
    %78 = vector.load %arg10[%c152, %c0_40] : memref<288x128xf32, #tpu.memory_space<vmem>>, vector<8x128xf32>
    tpu.vector_store %arg10[%c152, %c0_40], %77 {strides = array<i32>} : memref<288x128xf32, #tpu.memory_space<vmem>>, vector<8x128xf32>,
    %79 = vector.extract_strided_slice %74 {offsets = [0, 2], sizes = [8, 128], strides = [1, 1]} : vector<8x256xf32> to vector<8x128xf32>
    %c160 = arith.constant 160 : index
    %c0_41 = arith.constant 0 : index
    %80 = vector.load %arg10[%c160, %c0_41] : memref<288x128xf32, #tpu.memory_space<vmem>>, vector<8x128xf32>
    tpu.vector_store %arg10[%c160, %c0_41], %79 {strides = array<i32>} : memref<288x128xf32, #tpu.memory_space<vmem>>, vector<8x128xf32>,
    %81 = vector.extract_strided_slice %74 {offsets = [0, 16], sizes = [8, 128], strides = [1, 1]} : vector<8x256xf32> to vector<8x128xf32>
    %c168 = arith.constant 168 : index
    %c0_42 = arith.constant 0 : index
    %82 = vector.load %arg10[%c168, %c0_42] : memref<288x128xf32, #tpu.memory_space<vmem>>, vector<8x128xf32>
    tpu.vector_store %arg10[%c168, %c0_42], %81 {strides = array<i32>} : memref<288x128xf32, #tpu.memory_space<vmem>>, vector<8x128xf32>,
    %83 = vector.extract_strided_slice %74 {offsets = [0, 17], sizes = [8, 128], strides = [1, 1]} : vector<8x256xf32> to vector<8x128xf32>
    %c176 = arith.constant 176 : index
    %c0_43 = arith.constant 0 : index
    %84 = vector.load %arg10[%c176, %c0_43] : memref<288x128xf32, #tpu.memory_space<vmem>>, vector<8x128xf32>
    tpu.vector_store %arg10[%c176, %c0_43], %83 {strides = array<i32>} : memref<288x128xf32, #tpu.memory_space<vmem>>, vector<8x128xf32>,
    %85 = vector.extract_strided_slice %74 {offsets = [0, 18], sizes = [8, 128], strides = [1, 1]} : vector<8x256xf32> to vector<8x128xf32>
    %c184 = arith.constant 184 : index
    %c0_44 = arith.constant 0 : index
    %86 = vector.load %arg10[%c184, %c0_44] : memref<288x128xf32, #tpu.memory_space<vmem>>, vector<8x128xf32>
    tpu.vector_store %arg10[%c184, %c0_44], %85 {strides = array<i32>} : memref<288x128xf32, #tpu.memory_space<vmem>>, vector<8x128xf32>,
    %87 = vector.extract_strided_slice %74 {offsets = [0, 32], sizes = [8, 128], strides = [1, 1]} : vector<8x256xf32> to vector<8x128xf32>
    %c192 = arith.constant 192 : index
    %c0_45 = arith.constant 0 : index
    %88 = vector.load %arg10[%c192, %c0_45] : memref<288x128xf32, #tpu.memory_space<vmem>>, vector<8x128xf32>
    tpu.vector_store %arg10[%c192, %c0_45], %87 {strides = array<i32>} : memref<288x128xf32, #tpu.memory_space<vmem>>, vector<8x128xf32>,
    %89 = vector.extract_strided_slice %74 {offsets = [0, 33], sizes = [8, 128], strides = [1, 1]} : vector<8x256xf32> to vector<8x128xf32>
    %c200 = arith.constant 200 : index
    %c0_46 = arith.constant 0 : index
    %90 = vector.load %arg10[%c200, %c0_46] : memref<288x128xf32, #tpu.memory_space<vmem>>, vector<8x128xf32>
    tpu.vector_store %arg10[%c200, %c0_46], %89 {strides = array<i32>} : memref<288x128xf32, #tpu.memory_space<vmem>>, vector<8x128xf32>,
    %91 = vector.extract_strided_slice %74 {offsets = [0, 34], sizes = [8, 128], strides = [1, 1]} : vector<8x256xf32> to vector<8x128xf32>
    %c208 = arith.constant 208 : index
    %c0_47 = arith.constant 0 : index
    %92 = vector.load %arg10[%c208, %c0_47] : memref<288x128xf32, #tpu.memory_space<vmem>>, vector<8x128xf32>
    tpu.vector_store %arg10[%c208, %c0_47], %91 {strides = array<i32>} : memref<288x128xf32, #tpu.memory_space<vmem>>, vector<8x128xf32>,
    %c3 = arith.constant 3 : index
    %c0_48 = arith.constant 0 : index
    %c0_49 = arith.constant 0 : index
    %93 = vector.load %arg1[%c3, %c0_48, %c0_49] : memref<8x8x256xf32, #tpu.memory_space<vmem>>, vector<1x8x256xf32>
    %94 = vector.shape_cast %93 : vector<1x8x256xf32> to vector<8x256xf32>
    %95 = vector.extract_strided_slice %94 {offsets = [0, 0], sizes = [8, 128], strides = [1, 1]} : vector<8x256xf32> to vector<8x128xf32>
    %c216 = arith.constant 216 : index
    %c0_50 = arith.constant 0 : index
    %96 = vector.load %arg10[%c216, %c0_50] : memref<288x128xf32, #tpu.memory_space<vmem>>, vector<8x128xf32>
    tpu.vector_store %arg10[%c216, %c0_50], %95 {strides = array<i32>} : memref<288x128xf32, #tpu.memory_space<vmem>>, vector<8x128xf32>,
    %97 = vector.extract_strided_slice %94 {offsets = [0, 1], sizes = [8, 128], strides = [1, 1]} : vector<8x256xf32> to vector<8x128xf32>
    %c224 = arith.constant 224 : index
    %c0_51 = arith.constant 0 : index
    %98 = vector.load %arg10[%c224, %c0_51] : memref<288x128xf32, #tpu.memory_space<vmem>>, vector<8x128xf32>
    tpu.vector_store %arg10[%c224, %c0_51], %97 {strides = array<i32>} : memref<288x128xf32, #tpu.memory_space<vmem>>, vector<8x128xf32>,
    %99 = vector.extract_strided_slice %94 {offsets = [0, 2], sizes = [8, 128], strides = [1, 1]} : vector<8x256xf32> to vector<8x128xf32>
    %c232 = arith.constant 232 : index
    %c0_52 = arith.constant 0 : index
    %100 = vector.load %arg10[%c232, %c0_52] : memref<288x128xf32, #tpu.memory_space<vmem>>, vector<8x128xf32>
    tpu.vector_store %arg10[%c232, %c0_52], %99 {strides = array<i32>} : memref<288x128xf32, #tpu.memory_space<vmem>>, vector<8x128xf32>,
    %101 = vector.extract_strided_slice %94 {offsets = [0, 16], sizes = [8, 128], strides = [1, 1]} : vector<8x256xf32> to vector<8x128xf32>
    %c240 = arith.constant 240 : index
    %c0_53 = arith.constant 0 : index
    %102 = vector.load %arg10[%c240, %c0_53] : memref<288x128xf32, #tpu.memory_space<vmem>>, vector<8x128xf32>
    tpu.vector_store %arg10[%c240, %c0_53], %101 {strides = array<i32>} : memref<288x128xf32, #tpu.memory_space<vmem>>, vector<8x128xf32>,
    %103 = vector.extract_strided_slice %94 {offsets = [0, 17], sizes = [8, 128], strides = [1, 1]} : vector<8x256xf32> to vector<8x128xf32>
    %c248 = arith.constant 248 : index
    %c0_54 = arith.constant 0 : index
    %104 = vector.load %arg10[%c248, %c0_54] : memref<288x128xf32, #tpu.memory_space<vmem>>, vector<8x128xf32>
    tpu.vector_store %arg10[%c248, %c0_54], %103 {strides = array<i32>} : memref<288x128xf32, #tpu.memory_space<vmem>>, vector<8x128xf32>,
    %105 = vector.extract_strided_slice %94 {offsets = [0, 18], sizes = [8, 128], strides = [1, 1]} : vector<8x256xf32> to vector<8x128xf32>
    %c256 = arith.constant 256 : index
    %c0_55 = arith.constant 0 : index
    %106 = vector.load %arg10[%c256, %c0_55] : memref<288x128xf32, #tpu.memory_space<vmem>>, vector<8x128xf32>
    tpu.vector_store %arg10[%c256, %c0_55], %105 {strides = array<i32>} : memref<288x128xf32, #tpu.memory_space<vmem>>, vector<8x128xf32>,
    %107 = vector.extract_strided_slice %94 {offsets = [0, 32], sizes = [8, 128], strides = [1, 1]} : vector<8x256xf32> to vector<8x128xf32>
    %c264 = arith.constant 264 : index
    %c0_56 = arith.constant 0 : index
    %108 = vector.load %arg10[%c264, %c0_56] : memref<288x128xf32, #tpu.memory_space<vmem>>, vector<8x128xf32>
    tpu.vector_store %arg10[%c264, %c0_56], %107 {strides = array<i32>} : memref<288x128xf32, #tpu.memory_space<vmem>>, vector<8x128xf32>,
    %109 = vector.extract_strided_slice %94 {offsets = [0, 33], sizes = [8, 128], strides = [1, 1]} : vector<8x256xf32> to vector<8x128xf32>
    %c272 = arith.constant 272 : index
    %c0_57 = arith.constant 0 : index
    %110 = vector.load %arg10[%c272, %c0_57] : memref<288x128xf32, #tpu.memory_space<vmem>>, vector<8x128xf32>
    tpu.vector_store %arg10[%c272, %c0_57], %109 {strides = array<i32>} : memref<288x128xf32, #tpu.memory_space<vmem>>, vector<8x128xf32>,
    %111 = vector.extract_strided_slice %94 {offsets = [0, 34], sizes = [8, 128], strides = [1, 1]} : vector<8x256xf32> to vector<8x128xf32>
    %c280 = arith.constant 280 : index
    %c0_58 = arith.constant 0 : index
    %112 = vector.load %arg10[%c280, %c0_58] : memref<288x128xf32, #tpu.memory_space<vmem>>, vector<8x128xf32>
    tpu.vector_store %arg10[%c280, %c0_58], %111 {strides = array<i32>} : memref<288x128xf32, #tpu.memory_space<vmem>>, vector<8x128xf32>,
    %c0_59 = arith.constant 0 : index
    %c0_60 = arith.constant 0 : index
    %113 = vector.load %arg2[%c0_59, %c0_60] : memref<8x288xf32, #tpu.memory_space<vmem>>, vector<8x288xf32>
    %c0_61 = arith.constant 0 : index
    %c0_62 = arith.constant 0 : index
    %114 = vector.load %arg10[%c0_61, %c0_62] : memref<288x128xf32, #tpu.memory_space<vmem>>, vector<288x128xf32>
    %cst_63 = arith.constant dense<0.000000e+00> : vector<8x128xf32>
    %115 = tpu.matmul %113, %114, %cst_63 {dimension_numbers = #tpu.dot_dimension_numbers<[1], [0], [0], [1], [0, 0, 1, 1], [], []>} : vector<8x288xf32>, vector<288x128xf32>, vector<8x128xf32> -> vector<8x128xf32>
    %116 = arith.addf %115, %21 : vector<8x128xf32>
    %cst_64 = arith.constant 0.000000e+00 : f32
    %117 = vector.broadcast %cst_64 : f32 to vector<8x128xf32>
    %118 = arith.cmpf oge, %116, %117 : vector<8x128xf32>
    %119 = vector.broadcast %28 : f32 to vector<8x128xf32>
    %120 = arith.mulf %119, %116 : vector<8x128xf32>
    %121 = arith.select %118, %116, %120 : vector<8x128xi1>, vector<8x128xf32>
    %cst_65 = arith.constant 0.000000e+00 : f32
    %122 = vector.broadcast %cst_65 : f32 to vector<8x128xf32>
    %123 = arith.select %18, %121, %122 : vector<8x128xi1>, vector<8x128xf32>
    %c0_66 = arith.constant 0 : index
    %c17 = arith.constant 17 : index
    %124 = vector.load %arg11[%c0_66, %c17] : memref<8x256xf32, #tpu.memory_space<vmem>>, vector<8x128xf32>
    tpu.vector_store %arg11[%c0_66, %c17], %123 {strides = array<i32>} : memref<8x256xf32, #tpu.memory_space<vmem>>, vector<8x128xf32>,
    %c0_67 = arith.constant 0 : index
    %c0_68 = arith.constant 0 : index
    %125 = vector.load %arg11[%c0_67, %c0_68] : memref<8x256xf32, #tpu.memory_space<vmem>>, vector<8x256xf32>
    %126 = vector.extract_strided_slice %125 {offsets = [0, 0], sizes = [8, 128], strides = [1, 1]} : vector<8x256xf32> to vector<8x128xf32>
    %c0_69 = arith.constant 0 : index
    %c0_70 = arith.constant 0 : index
    %127 = vector.load %arg10[%c0_69, %c0_70] : memref<288x128xf32, #tpu.memory_space<vmem>>, vector<8x128xf32>
    tpu.vector_store %arg10[%c0_69, %c0_70], %126 {strides = array<i32>} : memref<288x128xf32, #tpu.memory_space<vmem>>, vector<8x128xf32>,
    %128 = vector.extract_strided_slice %125 {offsets = [0, 1], sizes = [8, 128], strides = [1, 1]} : vector<8x256xf32> to vector<8x128xf32>
    %c8_71 = arith.constant 8 : index
    %c0_72 = arith.constant 0 : index
    %129 = vector.load %arg10[%c8_71, %c0_72] : memref<288x128xf32, #tpu.memory_space<vmem>>, vector<8x128xf32>
    tpu.vector_store %arg10[%c8_71, %c0_72], %128 {strides = array<i32>} : memref<288x128xf32, #tpu.memory_space<vmem>>, vector<8x128xf32>,
    %130 = vector.extract_strided_slice %125 {offsets = [0, 2], sizes = [8, 128], strides = [1, 1]} : vector<8x256xf32> to vector<8x128xf32>
    %c16_73 = arith.constant 16 : index
    %c0_74 = arith.constant 0 : index
    %131 = vector.load %arg10[%c16_73, %c0_74] : memref<288x128xf32, #tpu.memory_space<vmem>>, vector<8x128xf32>
    tpu.vector_store %arg10[%c16_73, %c0_74], %130 {strides = array<i32>} : memref<288x128xf32, #tpu.memory_space<vmem>>, vector<8x128xf32>,
    %132 = vector.extract_strided_slice %125 {offsets = [0, 16], sizes = [8, 128], strides = [1, 1]} : vector<8x256xf32> to vector<8x128xf32>
    %c24_75 = arith.constant 24 : index
    %c0_76 = arith.constant 0 : index
    %133 = vector.load %arg10[%c24_75, %c0_76] : memref<288x128xf32, #tpu.memory_space<vmem>>, vector<8x128xf32>
    tpu.vector_store %arg10[%c24_75, %c0_76], %132 {strides = array<i32>} : memref<288x128xf32, #tpu.memory_space<vmem>>, vector<8x128xf32>,
    %134 = vector.extract_strided_slice %125 {offsets = [0, 17], sizes = [8, 128], strides = [1, 1]} : vector<8x256xf32> to vector<8x128xf32>
    %c32_77 = arith.constant 32 : index
    %c0_78 = arith.constant 0 : index
    %135 = vector.load %arg10[%c32_77, %c0_78] : memref<288x128xf32, #tpu.memory_space<vmem>>, vector<8x128xf32>
    tpu.vector_store %arg10[%c32_77, %c0_78], %134 {strides = array<i32>} : memref<288x128xf32, #tpu.memory_space<vmem>>, vector<8x128xf32>,
    %136 = vector.extract_strided_slice %125 {offsets = [0, 18], sizes = [8, 128], strides = [1, 1]} : vector<8x256xf32> to vector<8x128xf32>
    %c40_79 = arith.constant 40 : index
    %c0_80 = arith.constant 0 : index
    %137 = vector.load %arg10[%c40_79, %c0_80] : memref<288x128xf32, #tpu.memory_space<vmem>>, vector<8x128xf32>
    tpu.vector_store %arg10[%c40_79, %c0_80], %136 {strides = array<i32>} : memref<288x128xf32, #tpu.memory_space<vmem>>, vector<8x128xf32>,
    %138 = vector.extract_strided_slice %125 {offsets = [0, 32], sizes = [8, 128], strides = [1, 1]} : vector<8x256xf32> to vector<8x128xf32>
    %c48_81 = arith.constant 48 : index
    %c0_82 = arith.constant 0 : index
    %139 = vector.load %arg10[%c48_81, %c0_82] : memref<288x128xf32, #tpu.memory_space<vmem>>, vector<8x128xf32>
    tpu.vector_store %arg10[%c48_81, %c0_82], %138 {strides = array<i32>} : memref<288x128xf32, #tpu.memory_space<vmem>>, vector<8x128xf32>,
    %140 = vector.extract_strided_slice %125 {offsets = [0, 33], sizes = [8, 128], strides = [1, 1]} : vector<8x256xf32> to vector<8x128xf32>
    %c56_83 = arith.constant 56 : index
    %c0_84 = arith.constant 0 : index
    %141 = vector.load %arg10[%c56_83, %c0_84] : memref<288x128xf32, #tpu.memory_space<vmem>>, vector<8x128xf32>
    tpu.vector_store %arg10[%c56_83, %c0_84], %140 {strides = array<i32>} : memref<288x128xf32, #tpu.memory_space<vmem>>, vector<8x128xf32>,
    %142 = vector.extract_strided_slice %125 {offsets = [0, 34], sizes = [8, 128], strides = [1, 1]} : vector<8x256xf32> to vector<8x128xf32>
    %c64_85 = arith.constant 64 : index
    %c0_86 = arith.constant 0 : index
    %143 = vector.load %arg10[%c64_85, %c0_86] : memref<288x128xf32, #tpu.memory_space<vmem>>, vector<8x128xf32>
    tpu.vector_store %arg10[%c64_85, %c0_86], %142 {strides = array<i32>} : memref<288x128xf32, #tpu.memory_space<vmem>>, vector<8x128xf32>,
    %c0_87 = arith.constant 0 : index
    %c0_88 = arith.constant 0 : index
    %144 = vector.load %arg3[%c0_87, %c0_88] : memref<32x72xf32, #tpu.memory_space<vmem>>, vector<32x72xf32>
    %c0_89 = arith.constant 0 : index
    %c0_90 = arith.constant 0 : index
    %145 = vector.load %arg10[%c0_89, %c0_90] : memref<288x128xf32, #tpu.memory_space<vmem>>, vector<72x128xf32>
    %cst_91 = arith.constant dense<0.000000e+00> : vector<32x128xf32>
    %146 = tpu.matmul %144, %145, %cst_91 {dimension_numbers = #tpu.dot_dimension_numbers<[1], [0], [0], [1], [0, 0, 1, 1], [], []>} : vector<32x72xf32>, vector<72x128xf32>, vector<32x128xf32> -> vector<32x128xf32>
    %147 = arith.addf %146, %24 : vector<32x128xf32>
    %cst_92 = arith.constant 0.000000e+00 : f32
    %148 = vector.broadcast %cst_92 : f32 to vector<32x128xf32>
    %149 = arith.cmpf oge, %147, %148 : vector<32x128xf32>
    %150 = vector.broadcast %29 : f32 to vector<32x128xf32>
    %151 = arith.mulf %150, %147 : vector<32x128xf32>
    %152 = arith.select %149, %147, %151 : vector<32x128xi1>, vector<32x128xf32>
    %c0_93 = arith.constant 0 : index
    %c0_94 = arith.constant 0 : index
    %c0_95 = arith.constant 0 : index
    %153 = vector.load %arg1[%c0_93, %c0_94, %c0_95] : memref<8x8x256xf32, #tpu.memory_space<vmem>>, vector<1x8x256xf32>
    %154 = vector.shape_cast %153 : vector<1x8x256xf32> to vector<8x256xf32>
    %155 = vector.extract_strided_slice %154 {offsets = [0, 17], sizes = [8, 128], strides = [1, 1]} : vector<8x256xf32> to vector<8x128xf32>
    %156 = vector.extract_strided_slice %152 {offsets = [0, 0], sizes = [8, 128], strides = [1, 1]} : vector<32x128xf32> to vector<8x128xf32>
    %157 = arith.subf %156, %155 : vector<8x128xf32>
    %cst_96 = arith.constant 0.000000e+00 : f32
    %158 = vector.broadcast %cst_96 : f32 to vector<8x128xf32>
    %159 = arith.select %18, %157, %158 : vector<8x128xi1>, vector<8x128xf32>
    %c0_97 = arith.constant 0 : index
    %c17_98 = arith.constant 17 : index
    %160 = vector.load %arg11[%c0_97, %c17_98] : memref<8x256xf32, #tpu.memory_space<vmem>>, vector<8x128xf32>
    tpu.vector_store %arg11[%c0_97, %c17_98], %159 {strides = array<i32>} : memref<8x256xf32, #tpu.memory_space<vmem>>, vector<8x128xf32>,
    %c0_99 = arith.constant 0 : index
    %c0_100 = arith.constant 0 : index
    %161 = vector.load %arg11[%c0_99, %c0_100] : memref<8x256xf32, #tpu.memory_space<vmem>>, vector<8x256xf32>
    %162 = vector.extract_strided_slice %161 {offsets = [0, 0], sizes = [8, 128], strides = [1, 1]} : vector<8x256xf32> to vector<8x128xf32>
    %c0_101 = arith.constant 0 : index
    %c0_102 = arith.constant 0 : index
    %163 = vector.load %arg10[%c0_101, %c0_102] : memref<288x128xf32, #tpu.memory_space<vmem>>, vector<8x128xf32>
    tpu.vector_store %arg10[%c0_101, %c0_102], %162 {strides = array<i32>} : memref<288x128xf32, #tpu.memory_space<vmem>>, vector<8x128xf32>,
    %164 = vector.extract_strided_slice %161 {offsets = [0, 1], sizes = [8, 128], strides = [1, 1]} : vector<8x256xf32> to vector<8x128xf32>
    %c8_103 = arith.constant 8 : index
    %c0_104 = arith.constant 0 : index
    %165 = vector.load %arg10[%c8_103, %c0_104] : memref<288x128xf32, #tpu.memory_space<vmem>>, vector<8x128xf32>
    tpu.vector_store %arg10[%c8_103, %c0_104], %164 {strides = array<i32>} : memref<288x128xf32, #tpu.memory_space<vmem>>, vector<8x128xf32>,
    %166 = vector.extract_strided_slice %161 {offsets = [0, 2], sizes = [8, 128], strides = [1, 1]} : vector<8x256xf32> to vector<8x128xf32>
    %c16_105 = arith.constant 16 : index
    %c0_106 = arith.constant 0 : index
    %167 = vector.load %arg10[%c16_105, %c0_106] : memref<288x128xf32, #tpu.memory_space<vmem>>, vector<8x128xf32>
    tpu.vector_store %arg10[%c16_105, %c0_106], %166 {strides = array<i32>} : memref<288x128xf32, #tpu.memory_space<vmem>>, vector<8x128xf32>,
    %168 = vector.extract_strided_slice %161 {offsets = [0, 16], sizes = [8, 128], strides = [1, 1]} : vector<8x256xf32> to vector<8x128xf32>
    %c24_107 = arith.constant 24 : index
    %c0_108 = arith.constant 0 : index
    %169 = vector.load %arg10[%c24_107, %c0_108] : memref<288x128xf32, #tpu.memory_space<vmem>>, vector<8x128xf32>
    tpu.vector_store %arg10[%c24_107, %c0_108], %168 {strides = array<i32>} : memref<288x128xf32, #tpu.memory_space<vmem>>, vector<8x128xf32>,
    %170 = vector.extract_strided_slice %161 {offsets = [0, 17], sizes = [8, 128], strides = [1, 1]} : vector<8x256xf32> to vector<8x128xf32>
    %c32_109 = arith.constant 32 : index
    %c0_110 = arith.constant 0 : index
    %171 = vector.load %arg10[%c32_109, %c0_110] : memref<288x128xf32, #tpu.memory_space<vmem>>, vector<8x128xf32>
    tpu.vector_store %arg10[%c32_109, %c0_110], %170 {strides = array<i32>} : memref<288x128xf32, #tpu.memory_space<vmem>>, vector<8x128xf32>,
    %172 = vector.extract_strided_slice %161 {offsets = [0, 18], sizes = [8, 128], strides = [1, 1]} : vector<8x256xf32> to vector<8x128xf32>
    %c40_111 = arith.constant 40 : index
    %c0_112 = arith.constant 0 : index
    %173 = vector.load %arg10[%c40_111, %c0_112] : memref<288x128xf32, #tpu.memory_space<vmem>>, vector<8x128xf32>
    tpu.vector_store %arg10[%c40_111, %c0_112], %172 {strides = array<i32>} : memref<288x128xf32, #tpu.memory_space<vmem>>, vector<8x128xf32>,
    %174 = vector.extract_strided_slice %161 {offsets = [0, 32], sizes = [8, 128], strides = [1, 1]} : vector<8x256xf32> to vector<8x128xf32>
    %c48_113 = arith.constant 48 : index
    %c0_114 = arith.constant 0 : index
    %175 = vector.load %arg10[%c48_113, %c0_114] : memref<288x128xf32, #tpu.memory_space<vmem>>, vector<8x128xf32>
    tpu.vector_store %arg10[%c48_113, %c0_114], %174 {strides = array<i32>} : memref<288x128xf32, #tpu.memory_space<vmem>>, vector<8x128xf32>,
    %176 = vector.extract_strided_slice %161 {offsets = [0, 33], sizes = [8, 128], strides = [1, 1]} : vector<8x256xf32> to vector<8x128xf32>
    %c56_115 = arith.constant 56 : index
    %c0_116 = arith.constant 0 : index
    %177 = vector.load %arg10[%c56_115, %c0_116] : memref<288x128xf32, #tpu.memory_space<vmem>>, vector<8x128xf32>
    tpu.vector_store %arg10[%c56_115, %c0_116], %176 {strides = array<i32>} : memref<288x128xf32, #tpu.memory_space<vmem>>, vector<8x128xf32>,
    %178 = vector.extract_strided_slice %161 {offsets = [0, 34], sizes = [8, 128], strides = [1, 1]} : vector<8x256xf32> to vector<8x128xf32>
    %c64_117 = arith.constant 64 : index
    %c0_118 = arith.constant 0 : index
    %179 = vector.load %arg10[%c64_117, %c0_118] : memref<288x128xf32, #tpu.memory_space<vmem>>, vector<8x128xf32>
    tpu.vector_store %arg10[%c64_117, %c0_118], %178 {strides = array<i32>} : memref<288x128xf32, #tpu.memory_space<vmem>>, vector<8x128xf32>,
    %c1_119 = arith.constant 1 : index
    %c0_120 = arith.constant 0 : index
    %c0_121 = arith.constant 0 : index
    %180 = vector.load %arg1[%c1_119, %c0_120, %c0_121] : memref<8x8x256xf32, #tpu.memory_space<vmem>>, vector<1x8x256xf32>
    %181 = vector.shape_cast %180 : vector<1x8x256xf32> to vector<8x256xf32>
    %182 = vector.extract_strided_slice %181 {offsets = [0, 17], sizes = [8, 128], strides = [1, 1]} : vector<8x256xf32> to vector<8x128xf32>
    %183 = vector.extract_strided_slice %152 {offsets = [8, 0], sizes = [8, 128], strides = [1, 1]} : vector<32x128xf32> to vector<8x128xf32>
    %184 = arith.subf %183, %182 : vector<8x128xf32>
    %cst_122 = arith.constant 0.000000e+00 : f32
    %185 = vector.broadcast %cst_122 : f32 to vector<8x128xf32>
    %186 = arith.select %18, %184, %185 : vector<8x128xi1>, vector<8x128xf32>
    %c0_123 = arith.constant 0 : index
    %c17_124 = arith.constant 17 : index
    %187 = vector.load %arg11[%c0_123, %c17_124] : memref<8x256xf32, #tpu.memory_space<vmem>>, vector<8x128xf32>
    tpu.vector_store %arg11[%c0_123, %c17_124], %186 {strides = array<i32>} : memref<8x256xf32, #tpu.memory_space<vmem>>, vector<8x128xf32>,
    %c0_125 = arith.constant 0 : index
    %c0_126 = arith.constant 0 : index
    %188 = vector.load %arg11[%c0_125, %c0_126] : memref<8x256xf32, #tpu.memory_space<vmem>>, vector<8x256xf32>
    %189 = vector.extract_strided_slice %188 {offsets = [0, 0], sizes = [8, 128], strides = [1, 1]} : vector<8x256xf32> to vector<8x128xf32>
    %c72_127 = arith.constant 72 : index
    %c0_128 = arith.constant 0 : index
    %190 = vector.load %arg10[%c72_127, %c0_128] : memref<288x128xf32, #tpu.memory_space<vmem>>, vector<8x128xf32>
    tpu.vector_store %arg10[%c72_127, %c0_128], %189 {strides = array<i32>} : memref<288x128xf32, #tpu.memory_space<vmem>>, vector<8x128xf32>,
    %191 = vector.extract_strided_slice %188 {offsets = [0, 1], sizes = [8, 128], strides = [1, 1]} : vector<8x256xf32> to vector<8x128xf32>
    %c80_129 = arith.constant 80 : index
    %c0_130 = arith.constant 0 : index
    %192 = vector.load %arg10[%c80_129, %c0_130] : memref<288x128xf32, #tpu.memory_space<vmem>>, vector<8x128xf32>
    tpu.vector_store %arg10[%c80_129, %c0_130], %191 {strides = array<i32>} : memref<288x128xf32, #tpu.memory_space<vmem>>, vector<8x128xf32>,
    %193 = vector.extract_strided_slice %188 {offsets = [0, 2], sizes = [8, 128], strides = [1, 1]} : vector<8x256xf32> to vector<8x128xf32>
    %c88_131 = arith.constant 88 : index
    %c0_132 = arith.constant 0 : index
    %194 = vector.load %arg10[%c88_131, %c0_132] : memref<288x128xf32, #tpu.memory_space<vmem>>, vector<8x128xf32>
    tpu.vector_store %arg10[%c88_131, %c0_132], %193 {strides = array<i32>} : memref<288x128xf32, #tpu.memory_space<vmem>>, vector<8x128xf32>,
    %195 = vector.extract_strided_slice %188 {offsets = [0, 16], sizes = [8, 128], strides = [1, 1]} : vector<8x256xf32> to vector<8x128xf32>
    %c96_133 = arith.constant 96 : index
    %c0_134 = arith.constant 0 : index
    %196 = vector.load %arg10[%c96_133, %c0_134] : memref<288x128xf32, #tpu.memory_space<vmem>>, vector<8x128xf32>
    tpu.vector_store %arg10[%c96_133, %c0_134], %195 {strides = array<i32>} : memref<288x128xf32, #tpu.memory_space<vmem>>, vector<8x128xf32>,
    %197 = vector.extract_strided_slice %188 {offsets = [0, 17], sizes = [8, 128], strides = [1, 1]} : vector<8x256xf32> to vector<8x128xf32>
    %c104_135 = arith.constant 104 : index
    %c0_136 = arith.constant 0 : index
    %198 = vector.load %arg10[%c104_135, %c0_136] : memref<288x128xf32, #tpu.memory_space<vmem>>, vector<8x128xf32>
    tpu.vector_store %arg10[%c104_135, %c0_136], %197 {strides = array<i32>} : memref<288x128xf32, #tpu.memory_space<vmem>>, vector<8x128xf32>,
    %199 = vector.extract_strided_slice %188 {offsets = [0, 18], sizes = [8, 128], strides = [1, 1]} : vector<8x256xf32> to vector<8x128xf32>
    %c112_137 = arith.constant 112 : index
    %c0_138 = arith.constant 0 : index
    %200 = vector.load %arg10[%c112_137, %c0_138] : memref<288x128xf32, #tpu.memory_space<vmem>>, vector<8x128xf32>
    tpu.vector_store %arg10[%c112_137, %c0_138], %199 {strides = array<i32>} : memref<288x128xf32, #tpu.memory_space<vmem>>, vector<8x128xf32>,
    %201 = vector.extract_strided_slice %188 {offsets = [0, 32], sizes = [8, 128], strides = [1, 1]} : vector<8x256xf32> to vector<8x128xf32>
    %c120_139 = arith.constant 120 : index
    %c0_140 = arith.constant 0 : index
    %202 = vector.load %arg10[%c120_139, %c0_140] : memref<288x128xf32, #tpu.memory_space<vmem>>, vector<8x128xf32>
    tpu.vector_store %arg10[%c120_139, %c0_140], %201 {strides = array<i32>} : memref<288x128xf32, #tpu.memory_space<vmem>>, vector<8x128xf32>,
    %203 = vector.extract_strided_slice %188 {offsets = [0, 33], sizes = [8, 128], strides = [1, 1]} : vector<8x256xf32> to vector<8x128xf32>
    %c128_141 = arith.constant 128 : index
    %c0_142 = arith.constant 0 : index
    %204 = vector.load %arg10[%c128_141, %c0_142] : memref<288x128xf32, #tpu.memory_space<vmem>>, vector<8x128xf32>
    tpu.vector_store %arg10[%c128_141, %c0_142], %203 {strides = array<i32>} : memref<288x128xf32, #tpu.memory_space<vmem>>, vector<8x128xf32>,
    %205 = vector.extract_strided_slice %188 {offsets = [0, 34], sizes = [8, 128], strides = [1, 1]} : vector<8x256xf32> to vector<8x128xf32>
    %c136_143 = arith.constant 136 : index
    %c0_144 = arith.constant 0 : index
    %206 = vector.load %arg10[%c136_143, %c0_144] : memref<288x128xf32, #tpu.memory_space<vmem>>, vector<8x128xf32>
    tpu.vector_store %arg10[%c136_143, %c0_144], %205 {strides = array<i32>} : memref<288x128xf32, #tpu.memory_space<vmem>>, vector<8x128xf32>,
    %c2_145 = arith.constant 2 : index
    %c0_146 = arith.constant 0 : index
    %c0_147 = arith.constant 0 : index
    %207 = vector.load %arg1[%c2_145, %c0_146, %c0_147] : memref<8x8x256xf32, #tpu.memory_space<vmem>>, vector<1x8x256xf32>
    %208 = vector.shape_cast %207 : vector<1x8x256xf32> to vector<8x256xf32>
    %209 = vector.extract_strided_slice %208 {offsets = [0, 17], sizes = [8, 128], strides = [1, 1]} : vector<8x256xf32> to vector<8x128xf32>
    %210 = vector.extract_strided_slice %152 {offsets = [16, 0], sizes = [8, 128], strides = [1, 1]} : vector<32x128xf32> to vector<8x128xf32>
    %211 = arith.subf %210, %209 : vector<8x128xf32>
    %cst_148 = arith.constant 0.000000e+00 : f32
    %212 = vector.broadcast %cst_148 : f32 to vector<8x128xf32>
    %213 = arith.select %18, %211, %212 : vector<8x128xi1>, vector<8x128xf32>
    %c0_149 = arith.constant 0 : index
    %c17_150 = arith.constant 17 : index
    %214 = vector.load %arg11[%c0_149, %c17_150] : memref<8x256xf32, #tpu.memory_space<vmem>>, vector<8x128xf32>
    tpu.vector_store %arg11[%c0_149, %c17_150], %213 {strides = array<i32>} : memref<8x256xf32, #tpu.memory_space<vmem>>, vector<8x128xf32>,
    %c0_151 = arith.constant 0 : index
    %c0_152 = arith.constant 0 : index
    %215 = vector.load %arg11[%c0_151, %c0_152] : memref<8x256xf32, #tpu.memory_space<vmem>>, vector<8x256xf32>
    %216 = vector.extract_strided_slice %215 {offsets = [0, 0], sizes = [8, 128], strides = [1, 1]} : vector<8x256xf32> to vector<8x128xf32>
    %c144_153 = arith.constant 144 : index
    %c0_154 = arith.constant 0 : index
    %217 = vector.load %arg10[%c144_153, %c0_154] : memref<288x128xf32, #tpu.memory_space<vmem>>, vector<8x128xf32>
    tpu.vector_store %arg10[%c144_153, %c0_154], %216 {strides = array<i32>} : memref<288x128xf32, #tpu.memory_space<vmem>>, vector<8x128xf32>,
    %218 = vector.extract_strided_slice %215 {offsets = [0, 1], sizes = [8, 128], strides = [1, 1]} : vector<8x256xf32> to vector<8x128xf32>
    %c152_155 = arith.constant 152 : index
    %c0_156 = arith.constant 0 : index
    %219 = vector.load %arg10[%c152_155, %c0_156] : memref<288x128xf32, #tpu.memory_space<vmem>>, vector<8x128xf32>
    tpu.vector_store %arg10[%c152_155, %c0_156], %218 {strides = array<i32>} : memref<288x128xf32, #tpu.memory_space<vmem>>, vector<8x128xf32>,
    %220 = vector.extract_strided_slice %215 {offsets = [0, 2], sizes = [8, 128], strides = [1, 1]} : vector<8x256xf32> to vector<8x128xf32>
    %c160_157 = arith.constant 160 : index
    %c0_158 = arith.constant 0 : index
    %221 = vector.load %arg10[%c160_157, %c0_158] : memref<288x128xf32, #tpu.memory_space<vmem>>, vector<8x128xf32>
    tpu.vector_store %arg10[%c160_157, %c0_158], %220 {strides = array<i32>} : memref<288x128xf32, #tpu.memory_space<vmem>>, vector<8x128xf32>,
    %222 = vector.extract_strided_slice %215 {offsets = [0, 16], sizes = [8, 128], strides = [1, 1]} : vector<8x256xf32> to vector<8x128xf32>
    %c168_159 = arith.constant 168 : index
    %c0_160 = arith.constant 0 : index
    %223 = vector.load %arg10[%c168_159, %c0_160] : memref<288x128xf32, #tpu.memory_space<vmem>>, vector<8x128xf32>
    tpu.vector_store %arg10[%c168_159, %c0_160], %222 {strides = array<i32>} : memref<288x128xf32, #tpu.memory_space<vmem>>, vector<8x128xf32>,
    %224 = vector.extract_strided_slice %215 {offsets = [0, 17], sizes = [8, 128], strides = [1, 1]} : vector<8x256xf32> to vector<8x128xf32>
    %c176_161 = arith.constant 176 : index
    %c0_162 = arith.constant 0 : index
    %225 = vector.load %arg10[%c176_161, %c0_162] : memref<288x128xf32, #tpu.memory_space<vmem>>, vector<8x128xf32>
    tpu.vector_store %arg10[%c176_161, %c0_162], %224 {strides = array<i32>} : memref<288x128xf32, #tpu.memory_space<vmem>>, vector<8x128xf32>,
    %226 = vector.extract_strided_slice %215 {offsets = [0, 18], sizes = [8, 128], strides = [1, 1]} : vector<8x256xf32> to vector<8x128xf32>
    %c184_163 = arith.constant 184 : index
    %c0_164 = arith.constant 0 : index
    %227 = vector.load %arg10[%c184_163, %c0_164] : memref<288x128xf32, #tpu.memory_space<vmem>>, vector<8x128xf32>
    tpu.vector_store %arg10[%c184_163, %c0_164], %226 {strides = array<i32>} : memref<288x128xf32, #tpu.memory_space<vmem>>, vector<8x128xf32>,
    %228 = vector.extract_strided_slice %215 {offsets = [0, 32], sizes = [8, 128], strides = [1, 1]} : vector<8x256xf32> to vector<8x128xf32>
    %c192_165 = arith.constant 192 : index
    %c0_166 = arith.constant 0 : index
    %229 = vector.load %arg10[%c192_165, %c0_166] : memref<288x128xf32, #tpu.memory_space<vmem>>, vector<8x128xf32>
    tpu.vector_store %arg10[%c192_165, %c0_166], %228 {strides = array<i32>} : memref<288x128xf32, #tpu.memory_space<vmem>>, vector<8x128xf32>,
    %230 = vector.extract_strided_slice %215 {offsets = [0, 33], sizes = [8, 128], strides = [1, 1]} : vector<8x256xf32> to vector<8x128xf32>
    %c200_167 = arith.constant 200 : index
    %c0_168 = arith.constant 0 : index
    %231 = vector.load %arg10[%c200_167, %c0_168] : memref<288x128xf32, #tpu.memory_space<vmem>>, vector<8x128xf32>
    tpu.vector_store %arg10[%c200_167, %c0_168], %230 {strides = array<i32>} : memref<288x128xf32, #tpu.memory_space<vmem>>, vector<8x128xf32>,
    %232 = vector.extract_strided_slice %215 {offsets = [0, 34], sizes = [8, 128], strides = [1, 1]} : vector<8x256xf32> to vector<8x128xf32>
    %c208_169 = arith.constant 208 : index
    %c0_170 = arith.constant 0 : index
    %233 = vector.load %arg10[%c208_169, %c0_170] : memref<288x128xf32, #tpu.memory_space<vmem>>, vector<8x128xf32>
    tpu.vector_store %arg10[%c208_169, %c0_170], %232 {strides = array<i32>} : memref<288x128xf32, #tpu.memory_space<vmem>>, vector<8x128xf32>,
    %c3_171 = arith.constant 3 : index
    %c0_172 = arith.constant 0 : index
    %c0_173 = arith.constant 0 : index
    %234 = vector.load %arg1[%c3_171, %c0_172, %c0_173] : memref<8x8x256xf32, #tpu.memory_space<vmem>>, vector<1x8x256xf32>
    %235 = vector.shape_cast %234 : vector<1x8x256xf32> to vector<8x256xf32>
    %236 = vector.extract_strided_slice %235 {offsets = [0, 17], sizes = [8, 128], strides = [1, 1]} : vector<8x256xf32> to vector<8x128xf32>
    %237 = vector.extract_strided_slice %152 {offsets = [24, 0], sizes = [8, 128], strides = [1, 1]} : vector<32x128xf32> to vector<8x128xf32>
    %238 = arith.subf %237, %236 : vector<8x128xf32>
    %cst_174 = arith.constant 0.000000e+00 : f32
    %239 = vector.broadcast %cst_174 : f32 to vector<8x128xf32>
    %240 = arith.select %18, %238, %239 : vector<8x128xi1>, vector<8x128xf32>
    %c0_175 = arith.constant 0 : index
    %c17_176 = arith.constant 17 : index
    %241 = vector.load %arg11[%c0_175, %c17_176] : memref<8x256xf32, #tpu.memory_space<vmem>>, vector<8x128xf32>
    tpu.vector_store %arg11[%c0_175, %c17_176], %240 {strides = array<i32>} : memref<8x256xf32, #tpu.memory_space<vmem>>, vector<8x128xf32>,
    %c0_177 = arith.constant 0 : index
    %c0_178 = arith.constant 0 : index
    %242 = vector.load %arg11[%c0_177, %c0_178] : memref<8x256xf32, #tpu.memory_space<vmem>>, vector<8x256xf32>
    %243 = vector.extract_strided_slice %242 {offsets = [0, 0], sizes = [8, 128], strides = [1, 1]} : vector<8x256xf32> to vector<8x128xf32>
    %c216_179 = arith.constant 216 : index
    %c0_180 = arith.constant 0 : index
    %244 = vector.load %arg10[%c216_179, %c0_180] : memref<288x128xf32, #tpu.memory_space<vmem>>, vector<8x128xf32>
    tpu.vector_store %arg10[%c216_179, %c0_180], %243 {strides = array<i32>} : memref<288x128xf32, #tpu.memory_space<vmem>>, vector<8x128xf32>,
    %245 = vector.extract_strided_slice %242 {offsets = [0, 1], sizes = [8, 128], strides = [1, 1]} : vector<8x256xf32> to vector<8x128xf32>
    %c224_181 = arith.constant 224 : index
    %c0_182 = arith.constant 0 : index
    %246 = vector.load %arg10[%c224_181, %c0_182] : memref<288x128xf32, #tpu.memory_space<vmem>>, vector<8x128xf32>
    tpu.vector_store %arg10[%c224_181, %c0_182], %245 {strides = array<i32>} : memref<288x128xf32, #tpu.memory_space<vmem>>, vector<8x128xf32>,
    %247 = vector.extract_strided_slice %242 {offsets = [0, 2], sizes = [8, 128], strides = [1, 1]} : vector<8x256xf32> to vector<8x128xf32>
    %c232_183 = arith.constant 232 : index
    %c0_184 = arith.constant 0 : index
    %248 = vector.load %arg10[%c232_183, %c0_184] : memref<288x128xf32, #tpu.memory_space<vmem>>, vector<8x128xf32>
    tpu.vector_store %arg10[%c232_183, %c0_184], %247 {strides = array<i32>} : memref<288x128xf32, #tpu.memory_space<vmem>>, vector<8x128xf32>,
    %249 = vector.extract_strided_slice %242 {offsets = [0, 16], sizes = [8, 128], strides = [1, 1]} : vector<8x256xf32> to vector<8x128xf32>
    %c240_185 = arith.constant 240 : index
    %c0_186 = arith.constant 0 : index
    %250 = vector.load %arg10[%c240_185, %c0_186] : memref<288x128xf32, #tpu.memory_space<vmem>>, vector<8x128xf32>
    tpu.vector_store %arg10[%c240_185, %c0_186], %249 {strides = array<i32>} : memref<288x128xf32, #tpu.memory_space<vmem>>, vector<8x128xf32>,
    %251 = vector.extract_strided_slice %242 {offsets = [0, 17], sizes = [8, 128], strides = [1, 1]} : vector<8x256xf32> to vector<8x128xf32>
    %c248_187 = arith.constant 248 : index
    %c0_188 = arith.constant 0 : index
    %252 = vector.load %arg10[%c248_187, %c0_188] : memref<288x128xf32, #tpu.memory_space<vmem>>, vector<8x128xf32>
    tpu.vector_store %arg10[%c248_187, %c0_188], %251 {strides = array<i32>} : memref<288x128xf32, #tpu.memory_space<vmem>>, vector<8x128xf32>,
    %253 = vector.extract_strided_slice %242 {offsets = [0, 18], sizes = [8, 128], strides = [1, 1]} : vector<8x256xf32> to vector<8x128xf32>
    %c256_189 = arith.constant 256 : index
    %c0_190 = arith.constant 0 : index
    %254 = vector.load %arg10[%c256_189, %c0_190] : memref<288x128xf32, #tpu.memory_space<vmem>>, vector<8x128xf32>
    tpu.vector_store %arg10[%c256_189, %c0_190], %253 {strides = array<i32>} : memref<288x128xf32, #tpu.memory_space<vmem>>, vector<8x128xf32>,
    %255 = vector.extract_strided_slice %242 {offsets = [0, 32], sizes = [8, 128], strides = [1, 1]} : vector<8x256xf32> to vector<8x128xf32>
    %c264_191 = arith.constant 264 : index
    %c0_192 = arith.constant 0 : index
    %256 = vector.load %arg10[%c264_191, %c0_192] : memref<288x128xf32, #tpu.memory_space<vmem>>, vector<8x128xf32>
    tpu.vector_store %arg10[%c264_191, %c0_192], %255 {strides = array<i32>} : memref<288x128xf32, #tpu.memory_space<vmem>>, vector<8x128xf32>,
    %257 = vector.extract_strided_slice %242 {offsets = [0, 33], sizes = [8, 128], strides = [1, 1]} : vector<8x256xf32> to vector<8x128xf32>
    %c272_193 = arith.constant 272 : index
    %c0_194 = arith.constant 0 : index
    %258 = vector.load %arg10[%c272_193, %c0_194] : memref<288x128xf32, #tpu.memory_space<vmem>>, vector<8x128xf32>
    tpu.vector_store %arg10[%c272_193, %c0_194], %257 {strides = array<i32>} : memref<288x128xf32, #tpu.memory_space<vmem>>, vector<8x128xf32>,
    %259 = vector.extract_strided_slice %242 {offsets = [0, 34], sizes = [8, 128], strides = [1, 1]} : vector<8x256xf32> to vector<8x128xf32>
    %c280_195 = arith.constant 280 : index
    %c0_196 = arith.constant 0 : index
    %260 = vector.load %arg10[%c280_195, %c0_196] : memref<288x128xf32, #tpu.memory_space<vmem>>, vector<8x128xf32>
    tpu.vector_store %arg10[%c280_195, %c0_196], %259 {strides = array<i32>} : memref<288x128xf32, #tpu.memory_space<vmem>>, vector<8x128xf32>,
    %c0_197 = arith.constant 0 : index
    %c0_198 = arith.constant 0 : index
    %261 = vector.load %arg4[%c0_197, %c0_198] : memref<8x288xf32, #tpu.memory_space<vmem>>, vector<8x288xf32>
    %c0_199 = arith.constant 0 : index
    %c0_200 = arith.constant 0 : index
    %262 = vector.load %arg10[%c0_199, %c0_200] : memref<288x128xf32, #tpu.memory_space<vmem>>, vector<288x128xf32>
    %cst_201 = arith.constant dense<0.000000e+00> : vector<8x128xf32>
    %263 = tpu.matmul %261, %262, %cst_201 {dimension_numbers = #tpu.dot_dimension_numbers<[1], [0], [0], [1], [0, 0, 1, 1], [], []>} : vector<8x288xf32>, vector<288x128xf32>, vector<8x128xf32> -> vector<8x128xf32>
    %264 = arith.addf %263, %27 : vector<8x128xf32>
    %cst_202 = arith.constant 0.000000e+00 : f32
    %265 = vector.broadcast %cst_202 : f32 to vector<8x128xf32>
    %266 = arith.cmpf oge, %264, %265 : vector<8x128xf32>
    %267 = vector.broadcast %30 : f32 to vector<8x128xf32>
    %268 = arith.mulf %267, %264 : vector<8x128xf32>
    %269 = arith.select %266, %264, %268 : vector<8x128xi1>, vector<8x128xf32>
    %270 = arith.addf %269, %121 : vector<8x128xf32>
    %c0_203 = arith.constant 0 : index
    %c0_204 = arith.constant 0 : index
    %271 = vector.load %arg9[%c0_203, %c0_204] : memref<16x128xf32, #tpu.memory_space<vmem>>, vector<8x128xf32>
    tpu.vector_store %arg9[%c0_203, %c0_204], %270 {strides = array<i32>} : memref<16x128xf32, #tpu.memory_space<vmem>>, vector<8x128xf32>,
    %c4 = arith.constant 4 : index
    %c0_205 = arith.constant 0 : index
    %c0_206 = arith.constant 0 : index
    %272 = vector.load %arg1[%c4, %c0_205, %c0_206] : memref<8x8x256xf32, #tpu.memory_space<vmem>>, vector<1x8x256xf32>
    %273 = vector.shape_cast %272 : vector<1x8x256xf32> to vector<8x256xf32>
    %274 = vector.extract_strided_slice %273 {offsets = [0, 0], sizes = [8, 128], strides = [1, 1]} : vector<8x256xf32> to vector<8x128xf32>
    %c0_207 = arith.constant 0 : index
    %c0_208 = arith.constant 0 : index
    %275 = vector.load %arg10[%c0_207, %c0_208] : memref<288x128xf32, #tpu.memory_space<vmem>>, vector<8x128xf32>
    tpu.vector_store %arg10[%c0_207, %c0_208], %274 {strides = array<i32>} : memref<288x128xf32, #tpu.memory_space<vmem>>, vector<8x128xf32>,
    %276 = vector.extract_strided_slice %273 {offsets = [0, 1], sizes = [8, 128], strides = [1, 1]} : vector<8x256xf32> to vector<8x128xf32>
    %c8_209 = arith.constant 8 : index
    %c0_210 = arith.constant 0 : index
    %277 = vector.load %arg10[%c8_209, %c0_210] : memref<288x128xf32, #tpu.memory_space<vmem>>, vector<8x128xf32>
    tpu.vector_store %arg10[%c8_209, %c0_210], %276 {strides = array<i32>} : memref<288x128xf32, #tpu.memory_space<vmem>>, vector<8x128xf32>,
    %278 = vector.extract_strided_slice %273 {offsets = [0, 2], sizes = [8, 128], strides = [1, 1]} : vector<8x256xf32> to vector<8x128xf32>
    %c16_211 = arith.constant 16 : index
    %c0_212 = arith.constant 0 : index
    %279 = vector.load %arg10[%c16_211, %c0_212] : memref<288x128xf32, #tpu.memory_space<vmem>>, vector<8x128xf32>
    tpu.vector_store %arg10[%c16_211, %c0_212], %278 {strides = array<i32>} : memref<288x128xf32, #tpu.memory_space<vmem>>, vector<8x128xf32>,
    %280 = vector.extract_strided_slice %273 {offsets = [0, 16], sizes = [8, 128], strides = [1, 1]} : vector<8x256xf32> to vector<8x128xf32>
    %c24_213 = arith.constant 24 : index
    %c0_214 = arith.constant 0 : index
    %281 = vector.load %arg10[%c24_213, %c0_214] : memref<288x128xf32, #tpu.memory_space<vmem>>, vector<8x128xf32>
    tpu.vector_store %arg10[%c24_213, %c0_214], %280 {strides = array<i32>} : memref<288x128xf32, #tpu.memory_space<vmem>>, vector<8x128xf32>,
    %282 = vector.extract_strided_slice %273 {offsets = [0, 17], sizes = [8, 128], strides = [1, 1]} : vector<8x256xf32> to vector<8x128xf32>
    %c32_215 = arith.constant 32 : index
    %c0_216 = arith.constant 0 : index
    %283 = vector.load %arg10[%c32_215, %c0_216] : memref<288x128xf32, #tpu.memory_space<vmem>>, vector<8x128xf32>
    tpu.vector_store %arg10[%c32_215, %c0_216], %282 {strides = array<i32>} : memref<288x128xf32, #tpu.memory_space<vmem>>, vector<8x128xf32>,
    %284 = vector.extract_strided_slice %273 {offsets = [0, 18], sizes = [8, 128], strides = [1, 1]} : vector<8x256xf32> to vector<8x128xf32>
    %c40_217 = arith.constant 40 : index
    %c0_218 = arith.constant 0 : index
    %285 = vector.load %arg10[%c40_217, %c0_218] : memref<288x128xf32, #tpu.memory_space<vmem>>, vector<8x128xf32>
    tpu.vector_store %arg10[%c40_217, %c0_218], %284 {strides = array<i32>} : memref<288x128xf32, #tpu.memory_space<vmem>>, vector<8x128xf32>,
    %286 = vector.extract_strided_slice %273 {offsets = [0, 32], sizes = [8, 128], strides = [1, 1]} : vector<8x256xf32> to vector<8x128xf32>
    %c48_219 = arith.constant 48 : index
    %c0_220 = arith.constant 0 : index
    %287 = vector.load %arg10[%c48_219, %c0_220] : memref<288x128xf32, #tpu.memory_space<vmem>>, vector<8x128xf32>
    tpu.vector_store %arg10[%c48_219, %c0_220], %286 {strides = array<i32>} : memref<288x128xf32, #tpu.memory_space<vmem>>, vector<8x128xf32>,
    %288 = vector.extract_strided_slice %273 {offsets = [0, 33], sizes = [8, 128], strides = [1, 1]} : vector<8x256xf32> to vector<8x128xf32>
    %c56_221 = arith.constant 56 : index
    %c0_222 = arith.constant 0 : index
    %289 = vector.load %arg10[%c56_221, %c0_222] : memref<288x128xf32, #tpu.memory_space<vmem>>, vector<8x128xf32>
    tpu.vector_store %arg10[%c56_221, %c0_222], %288 {strides = array<i32>} : memref<288x128xf32, #tpu.memory_space<vmem>>, vector<8x128xf32>,
    %290 = vector.extract_strided_slice %273 {offsets = [0, 34], sizes = [8, 128], strides = [1, 1]} : vector<8x256xf32> to vector<8x128xf32>
    %c64_223 = arith.constant 64 : index
    %c0_224 = arith.constant 0 : index
    %291 = vector.load %arg10[%c64_223, %c0_224] : memref<288x128xf32, #tpu.memory_space<vmem>>, vector<8x128xf32>
    tpu.vector_store %arg10[%c64_223, %c0_224], %290 {strides = array<i32>} : memref<288x128xf32, #tpu.memory_space<vmem>>, vector<8x128xf32>,
    %c5 = arith.constant 5 : index
    %c0_225 = arith.constant 0 : index
    %c0_226 = arith.constant 0 : index
    %292 = vector.load %arg1[%c5, %c0_225, %c0_226] : memref<8x8x256xf32, #tpu.memory_space<vmem>>, vector<1x8x256xf32>
    %293 = vector.shape_cast %292 : vector<1x8x256xf32> to vector<8x256xf32>
    %294 = vector.extract_strided_slice %293 {offsets = [0, 0], sizes = [8, 128], strides = [1, 1]} : vector<8x256xf32> to vector<8x128xf32>
    %c72_227 = arith.constant 72 : index
    %c0_228 = arith.constant 0 : index
    %295 = vector.load %arg10[%c72_227, %c0_228] : memref<288x128xf32, #tpu.memory_space<vmem>>, vector<8x128xf32>
    tpu.vector_store %arg10[%c72_227, %c0_228], %294 {strides = array<i32>} : memref<288x128xf32, #tpu.memory_space<vmem>>, vector<8x128xf32>,
    %296 = vector.extract_strided_slice %293 {offsets = [0, 1], sizes = [8, 128], strides = [1, 1]} : vector<8x256xf32> to vector<8x128xf32>
    %c80_229 = arith.constant 80 : index
    %c0_230 = arith.constant 0 : index
    %297 = vector.load %arg10[%c80_229, %c0_230] : memref<288x128xf32, #tpu.memory_space<vmem>>, vector<8x128xf32>
    tpu.vector_store %arg10[%c80_229, %c0_230], %296 {strides = array<i32>} : memref<288x128xf32, #tpu.memory_space<vmem>>, vector<8x128xf32>,
    %298 = vector.extract_strided_slice %293 {offsets = [0, 2], sizes = [8, 128], strides = [1, 1]} : vector<8x256xf32> to vector<8x128xf32>
    %c88_231 = arith.constant 88 : index
    %c0_232 = arith.constant 0 : index
    %299 = vector.load %arg10[%c88_231, %c0_232] : memref<288x128xf32, #tpu.memory_space<vmem>>, vector<8x128xf32>
    tpu.vector_store %arg10[%c88_231, %c0_232], %298 {strides = array<i32>} : memref<288x128xf32, #tpu.memory_space<vmem>>, vector<8x128xf32>,
    %300 = vector.extract_strided_slice %293 {offsets = [0, 16], sizes = [8, 128], strides = [1, 1]} : vector<8x256xf32> to vector<8x128xf32>
    %c96_233 = arith.constant 96 : index
    %c0_234 = arith.constant 0 : index
    %301 = vector.load %arg10[%c96_233, %c0_234] : memref<288x128xf32, #tpu.memory_space<vmem>>, vector<8x128xf32>
    tpu.vector_store %arg10[%c96_233, %c0_234], %300 {strides = array<i32>} : memref<288x128xf32, #tpu.memory_space<vmem>>, vector<8x128xf32>,
    %302 = vector.extract_strided_slice %293 {offsets = [0, 17], sizes = [8, 128], strides = [1, 1]} : vector<8x256xf32> to vector<8x128xf32>
    %c104_235 = arith.constant 104 : index
    %c0_236 = arith.constant 0 : index
    %303 = vector.load %arg10[%c104_235, %c0_236] : memref<288x128xf32, #tpu.memory_space<vmem>>, vector<8x128xf32>
    tpu.vector_store %arg10[%c104_235, %c0_236], %302 {strides = array<i32>} : memref<288x128xf32, #tpu.memory_space<vmem>>, vector<8x128xf32>,
    %304 = vector.extract_strided_slice %293 {offsets = [0, 18], sizes = [8, 128], strides = [1, 1]} : vector<8x256xf32> to vector<8x128xf32>
    %c112_237 = arith.constant 112 : index
    %c0_238 = arith.constant 0 : index
    %305 = vector.load %arg10[%c112_237, %c0_238] : memref<288x128xf32, #tpu.memory_space<vmem>>, vector<8x128xf32>
    tpu.vector_store %arg10[%c112_237, %c0_238], %304 {strides = array<i32>} : memref<288x128xf32, #tpu.memory_space<vmem>>, vector<8x128xf32>,
    %306 = vector.extract_strided_slice %293 {offsets = [0, 32], sizes = [8, 128], strides = [1, 1]} : vector<8x256xf32> to vector<8x128xf32>
    %c120_239 = arith.constant 120 : index
    %c0_240 = arith.constant 0 : index
    %307 = vector.load %arg10[%c120_239, %c0_240] : memref<288x128xf32, #tpu.memory_space<vmem>>, vector<8x128xf32>
    tpu.vector_store %arg10[%c120_239, %c0_240], %306 {strides = array<i32>} : memref<288x128xf32, #tpu.memory_space<vmem>>, vector<8x128xf32>,
    %308 = vector.extract_strided_slice %293 {offsets = [0, 33], sizes = [8, 128], strides = [1, 1]} : vector<8x256xf32> to vector<8x128xf32>
    %c128_241 = arith.constant 128 : index
    %c0_242 = arith.constant 0 : index
    %309 = vector.load %arg10[%c128_241, %c0_242] : memref<288x128xf32, #tpu.memory_space<vmem>>, vector<8x128xf32>
    tpu.vector_store %arg10[%c128_241, %c0_242], %308 {strides = array<i32>} : memref<288x128xf32, #tpu.memory_space<vmem>>, vector<8x128xf32>,
    %310 = vector.extract_strided_slice %293 {offsets = [0, 34], sizes = [8, 128], strides = [1, 1]} : vector<8x256xf32> to vector<8x128xf32>
    %c136_243 = arith.constant 136 : index
    %c0_244 = arith.constant 0 : index
    %311 = vector.load %arg10[%c136_243, %c0_244] : memref<288x128xf32, #tpu.memory_space<vmem>>, vector<8x128xf32>
    tpu.vector_store %arg10[%c136_243, %c0_244], %310 {strides = array<i32>} : memref<288x128xf32, #tpu.memory_space<vmem>>, vector<8x128xf32>,
    %c6 = arith.constant 6 : index
    %c0_245 = arith.constant 0 : index
    %c0_246 = arith.constant 0 : index
    %312 = vector.load %arg1[%c6, %c0_245, %c0_246] : memref<8x8x256xf32, #tpu.memory_space<vmem>>, vector<1x8x256xf32>
    %313 = vector.shape_cast %312 : vector<1x8x256xf32> to vector<8x256xf32>
    %314 = vector.extract_strided_slice %313 {offsets = [0, 0], sizes = [8, 128], strides = [1, 1]} : vector<8x256xf32> to vector<8x128xf32>
    %c144_247 = arith.constant 144 : index
    %c0_248 = arith.constant 0 : index
    %315 = vector.load %arg10[%c144_247, %c0_248] : memref<288x128xf32, #tpu.memory_space<vmem>>, vector<8x128xf32>
    tpu.vector_store %arg10[%c144_247, %c0_248], %314 {strides = array<i32>} : memref<288x128xf32, #tpu.memory_space<vmem>>, vector<8x128xf32>,
    %316 = vector.extract_strided_slice %313 {offsets = [0, 1], sizes = [8, 128], strides = [1, 1]} : vector<8x256xf32> to vector<8x128xf32>
    %c152_249 = arith.constant 152 : index
    %c0_250 = arith.constant 0 : index
    %317 = vector.load %arg10[%c152_249, %c0_250] : memref<288x128xf32, #tpu.memory_space<vmem>>, vector<8x128xf32>
    tpu.vector_store %arg10[%c152_249, %c0_250], %316 {strides = array<i32>} : memref<288x128xf32, #tpu.memory_space<vmem>>, vector<8x128xf32>,
    %318 = vector.extract_strided_slice %313 {offsets = [0, 2], sizes = [8, 128], strides = [1, 1]} : vector<8x256xf32> to vector<8x128xf32>
    %c160_251 = arith.constant 160 : index
    %c0_252 = arith.constant 0 : index
    %319 = vector.load %arg10[%c160_251, %c0_252] : memref<288x128xf32, #tpu.memory_space<vmem>>, vector<8x128xf32>
    tpu.vector_store %arg10[%c160_251, %c0_252], %318 {strides = array<i32>} : memref<288x128xf32, #tpu.memory_space<vmem>>, vector<8x128xf32>,
    %320 = vector.extract_strided_slice %313 {offsets = [0, 16], sizes = [8, 128], strides = [1, 1]} : vector<8x256xf32> to vector<8x128xf32>
    %c168_253 = arith.constant 168 : index
    %c0_254 = arith.constant 0 : index
    %321 = vector.load %arg10[%c168_253, %c0_254] : memref<288x128xf32, #tpu.memory_space<vmem>>, vector<8x128xf32>
    tpu.vector_store %arg10[%c168_253, %c0_254], %320 {strides = array<i32>} : memref<288x128xf32, #tpu.memory_space<vmem>>, vector<8x128xf32>,
    %322 = vector.extract_strided_slice %313 {offsets = [0, 17], sizes = [8, 128], strides = [1, 1]} : vector<8x256xf32> to vector<8x128xf32>
    %c176_255 = arith.constant 176 : index
    %c0_256 = arith.constant 0 : index
    %323 = vector.load %arg10[%c176_255, %c0_256] : memref<288x128xf32, #tpu.memory_space<vmem>>, vector<8x128xf32>
    tpu.vector_store %arg10[%c176_255, %c0_256], %322 {strides = array<i32>} : memref<288x128xf32, #tpu.memory_space<vmem>>, vector<8x128xf32>,
    %324 = vector.extract_strided_slice %313 {offsets = [0, 18], sizes = [8, 128], strides = [1, 1]} : vector<8x256xf32> to vector<8x128xf32>
    %c184_257 = arith.constant 184 : index
    %c0_258 = arith.constant 0 : index
    %325 = vector.load %arg10[%c184_257, %c0_258] : memref<288x128xf32, #tpu.memory_space<vmem>>, vector<8x128xf32>
    tpu.vector_store %arg10[%c184_257, %c0_258], %324 {strides = array<i32>} : memref<288x128xf32, #tpu.memory_space<vmem>>, vector<8x128xf32>,
    %326 = vector.extract_strided_slice %313 {offsets = [0, 32], sizes = [8, 128], strides = [1, 1]} : vector<8x256xf32> to vector<8x128xf32>
    %c192_259 = arith.constant 192 : index
    %c0_260 = arith.constant 0 : index
    %327 = vector.load %arg10[%c192_259, %c0_260] : memref<288x128xf32, #tpu.memory_space<vmem>>, vector<8x128xf32>
    tpu.vector_store %arg10[%c192_259, %c0_260], %326 {strides = array<i32>} : memref<288x128xf32, #tpu.memory_space<vmem>>, vector<8x128xf32>,
    %328 = vector.extract_strided_slice %313 {offsets = [0, 33], sizes = [8, 128], strides = [1, 1]} : vector<8x256xf32> to vector<8x128xf32>
    %c200_261 = arith.constant 200 : index
    %c0_262 = arith.constant 0 : index
    %329 = vector.load %arg10[%c200_261, %c0_262] : memref<288x128xf32, #tpu.memory_space<vmem>>, vector<8x128xf32>
    tpu.vector_store %arg10[%c200_261, %c0_262], %328 {strides = array<i32>} : memref<288x128xf32, #tpu.memory_space<vmem>>, vector<8x128xf32>,
    %330 = vector.extract_strided_slice %313 {offsets = [0, 34], sizes = [8, 128], strides = [1, 1]} : vector<8x256xf32> to vector<8x128xf32>
    %c208_263 = arith.constant 208 : index
    %c0_264 = arith.constant 0 : index
    %331 = vector.load %arg10[%c208_263, %c0_264] : memref<288x128xf32, #tpu.memory_space<vmem>>, vector<8x128xf32>
    tpu.vector_store %arg10[%c208_263, %c0_264], %330 {strides = array<i32>} : memref<288x128xf32, #tpu.memory_space<vmem>>, vector<8x128xf32>,
    %c7 = arith.constant 7 : index
    %c0_265 = arith.constant 0 : index
    %c0_266 = arith.constant 0 : index
    %332 = vector.load %arg1[%c7, %c0_265, %c0_266] : memref<8x8x256xf32, #tpu.memory_space<vmem>>, vector<1x8x256xf32>
    %333 = vector.shape_cast %332 : vector<1x8x256xf32> to vector<8x256xf32>
    %334 = vector.extract_strided_slice %333 {offsets = [0, 0], sizes = [8, 128], strides = [1, 1]} : vector<8x256xf32> to vector<8x128xf32>
    %c216_267 = arith.constant 216 : index
    %c0_268 = arith.constant 0 : index
    %335 = vector.load %arg10[%c216_267, %c0_268] : memref<288x128xf32, #tpu.memory_space<vmem>>, vector<8x128xf32>
    tpu.vector_store %arg10[%c216_267, %c0_268], %334 {strides = array<i32>} : memref<288x128xf32, #tpu.memory_space<vmem>>, vector<8x128xf32>,
    %336 = vector.extract_strided_slice %333 {offsets = [0, 1], sizes = [8, 128], strides = [1, 1]} : vector<8x256xf32> to vector<8x128xf32>
    %c224_269 = arith.constant 224 : index
    %c0_270 = arith.constant 0 : index
    %337 = vector.load %arg10[%c224_269, %c0_270] : memref<288x128xf32, #tpu.memory_space<vmem>>, vector<8x128xf32>
    tpu.vector_store %arg10[%c224_269, %c0_270], %336 {strides = array<i32>} : memref<288x128xf32, #tpu.memory_space<vmem>>, vector<8x128xf32>,
    %338 = vector.extract_strided_slice %333 {offsets = [0, 2], sizes = [8, 128], strides = [1, 1]} : vector<8x256xf32> to vector<8x128xf32>
    %c232_271 = arith.constant 232 : index
    %c0_272 = arith.constant 0 : index
    %339 = vector.load %arg10[%c232_271, %c0_272] : memref<288x128xf32, #tpu.memory_space<vmem>>, vector<8x128xf32>
    tpu.vector_store %arg10[%c232_271, %c0_272], %338 {strides = array<i32>} : memref<288x128xf32, #tpu.memory_space<vmem>>, vector<8x128xf32>,
    %340 = vector.extract_strided_slice %333 {offsets = [0, 16], sizes = [8, 128], strides = [1, 1]} : vector<8x256xf32> to vector<8x128xf32>
    %c240_273 = arith.constant 240 : index
    %c0_274 = arith.constant 0 : index
    %341 = vector.load %arg10[%c240_273, %c0_274] : memref<288x128xf32, #tpu.memory_space<vmem>>, vector<8x128xf32>
    tpu.vector_store %arg10[%c240_273, %c0_274], %340 {strides = array<i32>} : memref<288x128xf32, #tpu.memory_space<vmem>>, vector<8x128xf32>,
    %342 = vector.extract_strided_slice %333 {offsets = [0, 17], sizes = [8, 128], strides = [1, 1]} : vector<8x256xf32> to vector<8x128xf32>
    %c248_275 = arith.constant 248 : index
    %c0_276 = arith.constant 0 : index
    %343 = vector.load %arg10[%c248_275, %c0_276] : memref<288x128xf32, #tpu.memory_space<vmem>>, vector<8x128xf32>
    tpu.vector_store %arg10[%c248_275, %c0_276], %342 {strides = array<i32>} : memref<288x128xf32, #tpu.memory_space<vmem>>, vector<8x128xf32>,
    %344 = vector.extract_strided_slice %333 {offsets = [0, 18], sizes = [8, 128], strides = [1, 1]} : vector<8x256xf32> to vector<8x128xf32>
    %c256_277 = arith.constant 256 : index
    %c0_278 = arith.constant 0 : index
    %345 = vector.load %arg10[%c256_277, %c0_278] : memref<288x128xf32, #tpu.memory_space<vmem>>, vector<8x128xf32>
    tpu.vector_store %arg10[%c256_277, %c0_278], %344 {strides = array<i32>} : memref<288x128xf32, #tpu.memory_space<vmem>>, vector<8x128xf32>,
    %346 = vector.extract_strided_slice %333 {offsets = [0, 32], sizes = [8, 128], strides = [1, 1]} : vector<8x256xf32> to vector<8x128xf32>
    %c264_279 = arith.constant 264 : index
    %c0_280 = arith.constant 0 : index
    %347 = vector.load %arg10[%c264_279, %c0_280] : memref<288x128xf32, #tpu.memory_space<vmem>>, vector<8x128xf32>
    tpu.vector_store %arg10[%c264_279, %c0_280], %346 {strides = array<i32>} : memref<288x128xf32, #tpu.memory_space<vmem>>, vector<8x128xf32>,
    %348 = vector.extract_strided_slice %333 {offsets = [0, 33], sizes = [8, 128], strides = [1, 1]} : vector<8x256xf32> to vector<8x128xf32>
    %c272_281 = arith.constant 272 : index
    %c0_282 = arith.constant 0 : index
    %349 = vector.load %arg10[%c272_281, %c0_282] : memref<288x128xf32, #tpu.memory_space<vmem>>, vector<8x128xf32>
    tpu.vector_store %arg10[%c272_281, %c0_282], %348 {strides = array<i32>} : memref<288x128xf32, #tpu.memory_space<vmem>>, vector<8x128xf32>,
    %350 = vector.extract_strided_slice %333 {offsets = [0, 34], sizes = [8, 128], strides = [1, 1]} : vector<8x256xf32> to vector<8x128xf32>
    %c280_283 = arith.constant 280 : index
    %c0_284 = arith.constant 0 : index
    %351 = vector.load %arg10[%c280_283, %c0_284] : memref<288x128xf32, #tpu.memory_space<vmem>>, vector<8x128xf32>
    tpu.vector_store %arg10[%c280_283, %c0_284], %350 {strides = array<i32>} : memref<288x128xf32, #tpu.memory_space<vmem>>, vector<8x128xf32>,
    %c0_285 = arith.constant 0 : index
    %c0_286 = arith.constant 0 : index
    %352 = vector.load %arg2[%c0_285, %c0_286] : memref<8x288xf32, #tpu.memory_space<vmem>>, vector<8x288xf32>
    %c0_287 = arith.constant 0 : index
    %c0_288 = arith.constant 0 : index
    %353 = vector.load %arg10[%c0_287, %c0_288] : memref<288x128xf32, #tpu.memory_space<vmem>>, vector<288x128xf32>
    %cst_289 = arith.constant dense<0.000000e+00> : vector<8x128xf32>
    %354 = tpu.matmul %352, %353, %cst_289 {dimension_numbers = #tpu.dot_dimension_numbers<[1], [0], [0], [1], [0, 0, 1, 1], [], []>} : vector<8x288xf32>, vector<288x128xf32>, vector<8x128xf32> -> vector<8x128xf32>
    %355 = arith.addf %354, %21 : vector<8x128xf32>
    %cst_290 = arith.constant 0.000000e+00 : f32
    %356 = vector.broadcast %cst_290 : f32 to vector<8x128xf32>
    %357 = arith.cmpf oge, %355, %356 : vector<8x128xf32>
    %358 = vector.broadcast %28 : f32 to vector<8x128xf32>
    %359 = arith.mulf %358, %355 : vector<8x128xf32>
    %360 = arith.select %357, %355, %359 : vector<8x128xi1>, vector<8x128xf32>
    %cst_291 = arith.constant 0.000000e+00 : f32
    %361 = vector.broadcast %cst_291 : f32 to vector<8x128xf32>
    %362 = arith.select %18, %360, %361 : vector<8x128xi1>, vector<8x128xf32>
    %c0_292 = arith.constant 0 : index
    %c17_293 = arith.constant 17 : index
    %363 = vector.load %arg11[%c0_292, %c17_293] : memref<8x256xf32, #tpu.memory_space<vmem>>, vector<8x128xf32>
    tpu.vector_store %arg11[%c0_292, %c17_293], %362 {strides = array<i32>} : memref<8x256xf32, #tpu.memory_space<vmem>>, vector<8x128xf32>,
    %c0_294 = arith.constant 0 : index
    %c0_295 = arith.constant 0 : index
    %364 = vector.load %arg11[%c0_294, %c0_295] : memref<8x256xf32, #tpu.memory_space<vmem>>, vector<8x256xf32>
    %365 = vector.extract_strided_slice %364 {offsets = [0, 0], sizes = [8, 128], strides = [1, 1]} : vector<8x256xf32> to vector<8x128xf32>
    %c0_296 = arith.constant 0 : index
    %c0_297 = arith.constant 0 : index
    %366 = vector.load %arg10[%c0_296, %c0_297] : memref<288x128xf32, #tpu.memory_space<vmem>>, vector<8x128xf32>
    tpu.vector_store %arg10[%c0_296, %c0_297], %365 {strides = array<i32>} : memref<288x128xf32, #tpu.memory_space<vmem>>, vector<8x128xf32>,
    %367 = vector.extract_strided_slice %364 {offsets = [0, 1], sizes = [8, 128], strides = [1, 1]} : vector<8x256xf32> to vector<8x128xf32>
    %c8_298 = arith.constant 8 : index
    %c0_299 = arith.constant 0 : index
    %368 = vector.load %arg10[%c8_298, %c0_299] : memref<288x128xf32, #tpu.memory_space<vmem>>, vector<8x128xf32>
    tpu.vector_store %arg10[%c8_298, %c0_299], %367 {strides = array<i32>} : memref<288x128xf32, #tpu.memory_space<vmem>>, vector<8x128xf32>,
    %369 = vector.extract_strided_slice %364 {offsets = [0, 2], sizes = [8, 128], strides = [1, 1]} : vector<8x256xf32> to vector<8x128xf32>
    %c16_300 = arith.constant 16 : index
    %c0_301 = arith.constant 0 : index
    %370 = vector.load %arg10[%c16_300, %c0_301] : memref<288x128xf32, #tpu.memory_space<vmem>>, vector<8x128xf32>
    tpu.vector_store %arg10[%c16_300, %c0_301], %369 {strides = array<i32>} : memref<288x128xf32, #tpu.memory_space<vmem>>, vector<8x128xf32>,
    %371 = vector.extract_strided_slice %364 {offsets = [0, 16], sizes = [8, 128], strides = [1, 1]} : vector<8x256xf32> to vector<8x128xf32>
    %c24_302 = arith.constant 24 : index
    %c0_303 = arith.constant 0 : index
    %372 = vector.load %arg10[%c24_302, %c0_303] : memref<288x128xf32, #tpu.memory_space<vmem>>, vector<8x128xf32>
    tpu.vector_store %arg10[%c24_302, %c0_303], %371 {strides = array<i32>} : memref<288x128xf32, #tpu.memory_space<vmem>>, vector<8x128xf32>,
    %373 = vector.extract_strided_slice %364 {offsets = [0, 17], sizes = [8, 128], strides = [1, 1]} : vector<8x256xf32> to vector<8x128xf32>
    %c32_304 = arith.constant 32 : index
    %c0_305 = arith.constant 0 : index
    %374 = vector.load %arg10[%c32_304, %c0_305] : memref<288x128xf32, #tpu.memory_space<vmem>>, vector<8x128xf32>
    tpu.vector_store %arg10[%c32_304, %c0_305], %373 {strides = array<i32>} : memref<288x128xf32, #tpu.memory_space<vmem>>, vector<8x128xf32>,
    %375 = vector.extract_strided_slice %364 {offsets = [0, 18], sizes = [8, 128], strides = [1, 1]} : vector<8x256xf32> to vector<8x128xf32>
    %c40_306 = arith.constant 40 : index
    %c0_307 = arith.constant 0 : index
    %376 = vector.load %arg10[%c40_306, %c0_307] : memref<288x128xf32, #tpu.memory_space<vmem>>, vector<8x128xf32>
    tpu.vector_store %arg10[%c40_306, %c0_307], %375 {strides = array<i32>} : memref<288x128xf32, #tpu.memory_space<vmem>>, vector<8x128xf32>,
    %377 = vector.extract_strided_slice %364 {offsets = [0, 32], sizes = [8, 128], strides = [1, 1]} : vector<8x256xf32> to vector<8x128xf32>
    %c48_308 = arith.constant 48 : index
    %c0_309 = arith.constant 0 : index
    %378 = vector.load %arg10[%c48_308, %c0_309] : memref<288x128xf32, #tpu.memory_space<vmem>>, vector<8x128xf32>
    tpu.vector_store %arg10[%c48_308, %c0_309], %377 {strides = array<i32>} : memref<288x128xf32, #tpu.memory_space<vmem>>, vector<8x128xf32>,
    %379 = vector.extract_strided_slice %364 {offsets = [0, 33], sizes = [8, 128], strides = [1, 1]} : vector<8x256xf32> to vector<8x128xf32>
    %c56_310 = arith.constant 56 : index
    %c0_311 = arith.constant 0 : index
    %380 = vector.load %arg10[%c56_310, %c0_311] : memref<288x128xf32, #tpu.memory_space<vmem>>, vector<8x128xf32>
    tpu.vector_store %arg10[%c56_310, %c0_311], %379 {strides = array<i32>} : memref<288x128xf32, #tpu.memory_space<vmem>>, vector<8x128xf32>,
    %381 = vector.extract_strided_slice %364 {offsets = [0, 34], sizes = [8, 128], strides = [1, 1]} : vector<8x256xf32> to vector<8x128xf32>
    %c64_312 = arith.constant 64 : index
    %c0_313 = arith.constant 0 : index
    %382 = vector.load %arg10[%c64_312, %c0_313] : memref<288x128xf32, #tpu.memory_space<vmem>>, vector<8x128xf32>
    tpu.vector_store %arg10[%c64_312, %c0_313], %381 {strides = array<i32>} : memref<288x128xf32, #tpu.memory_space<vmem>>, vector<8x128xf32>,
    %c0_314 = arith.constant 0 : index
    %c0_315 = arith.constant 0 : index
    %383 = vector.load %arg3[%c0_314, %c0_315] : memref<32x72xf32, #tpu.memory_space<vmem>>, vector<32x72xf32>
    %c0_316 = arith.constant 0 : index
    %c0_317 = arith.constant 0 : index
    %384 = vector.load %arg10[%c0_316, %c0_317] : memref<288x128xf32, #tpu.memory_space<vmem>>, vector<72x128xf32>
    %cst_318 = arith.constant dense<0.000000e+00> : vector<32x128xf32>
    %385 = tpu.matmul %383, %384, %cst_318 {dimension_numbers = #tpu.dot_dimension_numbers<[1], [0], [0], [1], [0, 0, 1, 1], [], []>} : vector<32x72xf32>, vector<72x128xf32>, vector<32x128xf32> -> vector<32x128xf32>
    %386 = arith.addf %385, %24 : vector<32x128xf32>
    %cst_319 = arith.constant 0.000000e+00 : f32
    %387 = vector.broadcast %cst_319 : f32 to vector<32x128xf32>
    %388 = arith.cmpf oge, %386, %387 : vector<32x128xf32>
    %389 = vector.broadcast %29 : f32 to vector<32x128xf32>
    %390 = arith.mulf %389, %386 : vector<32x128xf32>
    %391 = arith.select %388, %386, %390 : vector<32x128xi1>, vector<32x128xf32>
    %c4_320 = arith.constant 4 : index
    %c0_321 = arith.constant 0 : index
    %c0_322 = arith.constant 0 : index
    %392 = vector.load %arg1[%c4_320, %c0_321, %c0_322] : memref<8x8x256xf32, #tpu.memory_space<vmem>>, vector<1x8x256xf32>
    %393 = vector.shape_cast %392 : vector<1x8x256xf32> to vector<8x256xf32>
    %394 = vector.extract_strided_slice %393 {offsets = [0, 17], sizes = [8, 128], strides = [1, 1]} : vector<8x256xf32> to vector<8x128xf32>
    %395 = vector.extract_strided_slice %391 {offsets = [0, 0], sizes = [8, 128], strides = [1, 1]} : vector<32x128xf32> to vector<8x128xf32>
    %396 = arith.subf %395, %394 : vector<8x128xf32>
    %cst_323 = arith.constant 0.000000e+00 : f32
    %397 = vector.broadcast %cst_323 : f32 to vector<8x128xf32>
    %398 = arith.select %18, %396, %397 : vector<8x128xi1>, vector<8x128xf32>
    %c0_324 = arith.constant 0 : index
    %c17_325 = arith.constant 17 : index
    %399 = vector.load %arg11[%c0_324, %c17_325] : memref<8x256xf32, #tpu.memory_space<vmem>>, vector<8x128xf32>
    tpu.vector_store %arg11[%c0_324, %c17_325], %398 {strides = array<i32>} : memref<8x256xf32, #tpu.memory_space<vmem>>, vector<8x128xf32>,
    %c0_326 = arith.constant 0 : index
    %c0_327 = arith.constant 0 : index
    %400 = vector.load %arg11[%c0_326, %c0_327] : memref<8x256xf32, #tpu.memory_space<vmem>>, vector<8x256xf32>
    %401 = vector.extract_strided_slice %400 {offsets = [0, 0], sizes = [8, 128], strides = [1, 1]} : vector<8x256xf32> to vector<8x128xf32>
    %c0_328 = arith.constant 0 : index
    %c0_329 = arith.constant 0 : index
    %402 = vector.load %arg10[%c0_328, %c0_329] : memref<288x128xf32, #tpu.memory_space<vmem>>, vector<8x128xf32>
    tpu.vector_store %arg10[%c0_328, %c0_329], %401 {strides = array<i32>} : memref<288x128xf32, #tpu.memory_space<vmem>>, vector<8x128xf32>,
    %403 = vector.extract_strided_slice %400 {offsets = [0, 1], sizes = [8, 128], strides = [1, 1]} : vector<8x256xf32> to vector<8x128xf32>
    %c8_330 = arith.constant 8 : index
    %c0_331 = arith.constant 0 : index
    %404 = vector.load %arg10[%c8_330, %c0_331] : memref<288x128xf32, #tpu.memory_space<vmem>>, vector<8x128xf32>
    tpu.vector_store %arg10[%c8_330, %c0_331], %403 {strides = array<i32>} : memref<288x128xf32, #tpu.memory_space<vmem>>, vector<8x128xf32>,
    %405 = vector.extract_strided_slice %400 {offsets = [0, 2], sizes = [8, 128], strides = [1, 1]} : vector<8x256xf32> to vector<8x128xf32>
    %c16_332 = arith.constant 16 : index
    %c0_333 = arith.constant 0 : index
    %406 = vector.load %arg10[%c16_332, %c0_333] : memref<288x128xf32, #tpu.memory_space<vmem>>, vector<8x128xf32>
    tpu.vector_store %arg10[%c16_332, %c0_333], %405 {strides = array<i32>} : memref<288x128xf32, #tpu.memory_space<vmem>>, vector<8x128xf32>,
    %407 = vector.extract_strided_slice %400 {offsets = [0, 16], sizes = [8, 128], strides = [1, 1]} : vector<8x256xf32> to vector<8x128xf32>
    %c24_334 = arith.constant 24 : index
    %c0_335 = arith.constant 0 : index
    %408 = vector.load %arg10[%c24_334, %c0_335] : memref<288x128xf32, #tpu.memory_space<vmem>>, vector<8x128xf32>
    tpu.vector_store %arg10[%c24_334, %c0_335], %407 {strides = array<i32>} : memref<288x128xf32, #tpu.memory_space<vmem>>, vector<8x128xf32>,
    %409 = vector.extract_strided_slice %400 {offsets = [0, 17], sizes = [8, 128], strides = [1, 1]} : vector<8x256xf32> to vector<8x128xf32>
    %c32_336 = arith.constant 32 : index
    %c0_337 = arith.constant 0 : index
    %410 = vector.load %arg10[%c32_336, %c0_337] : memref<288x128xf32, #tpu.memory_space<vmem>>, vector<8x128xf32>
    tpu.vector_store %arg10[%c32_336, %c0_337], %409 {strides = array<i32>} : memref<288x128xf32, #tpu.memory_space<vmem>>, vector<8x128xf32>,
    %411 = vector.extract_strided_slice %400 {offsets = [0, 18], sizes = [8, 128], strides = [1, 1]} : vector<8x256xf32> to vector<8x128xf32>
    %c40_338 = arith.constant 40 : index
    %c0_339 = arith.constant 0 : index
    %412 = vector.load %arg10[%c40_338, %c0_339] : memref<288x128xf32, #tpu.memory_space<vmem>>, vector<8x128xf32>
    tpu.vector_store %arg10[%c40_338, %c0_339], %411 {strides = array<i32>} : memref<288x128xf32, #tpu.memory_space<vmem>>, vector<8x128xf32>,
    %413 = vector.extract_strided_slice %400 {offsets = [0, 32], sizes = [8, 128], strides = [1, 1]} : vector<8x256xf32> to vector<8x128xf32>
    %c48_340 = arith.constant 48 : index
    %c0_341 = arith.constant 0 : index
    %414 = vector.load %arg10[%c48_340, %c0_341] : memref<288x128xf32, #tpu.memory_space<vmem>>, vector<8x128xf32>
    tpu.vector_store %arg10[%c48_340, %c0_341], %413 {strides = array<i32>} : memref<288x128xf32, #tpu.memory_space<vmem>>, vector<8x128xf32>,
    %415 = vector.extract_strided_slice %400 {offsets = [0, 33], sizes = [8, 128], strides = [1, 1]} : vector<8x256xf32> to vector<8x128xf32>
    %c56_342 = arith.constant 56 : index
    %c0_343 = arith.constant 0 : index
    %416 = vector.load %arg10[%c56_342, %c0_343] : memref<288x128xf32, #tpu.memory_space<vmem>>, vector<8x128xf32>
    tpu.vector_store %arg10[%c56_342, %c0_343], %415 {strides = array<i32>} : memref<288x128xf32, #tpu.memory_space<vmem>>, vector<8x128xf32>,
    %417 = vector.extract_strided_slice %400 {offsets = [0, 34], sizes = [8, 128], strides = [1, 1]} : vector<8x256xf32> to vector<8x128xf32>
    %c64_344 = arith.constant 64 : index
    %c0_345 = arith.constant 0 : index
    %418 = vector.load %arg10[%c64_344, %c0_345] : memref<288x128xf32, #tpu.memory_space<vmem>>, vector<8x128xf32>
    tpu.vector_store %arg10[%c64_344, %c0_345], %417 {strides = array<i32>} : memref<288x128xf32, #tpu.memory_space<vmem>>, vector<8x128xf32>,
    %c5_346 = arith.constant 5 : index
    %c0_347 = arith.constant 0 : index
    %c0_348 = arith.constant 0 : index
    %419 = vector.load %arg1[%c5_346, %c0_347, %c0_348] : memref<8x8x256xf32, #tpu.memory_space<vmem>>, vector<1x8x256xf32>
    %420 = vector.shape_cast %419 : vector<1x8x256xf32> to vector<8x256xf32>
    %421 = vector.extract_strided_slice %420 {offsets = [0, 17], sizes = [8, 128], strides = [1, 1]} : vector<8x256xf32> to vector<8x128xf32>
    %422 = vector.extract_strided_slice %391 {offsets = [8, 0], sizes = [8, 128], strides = [1, 1]} : vector<32x128xf32> to vector<8x128xf32>
    %423 = arith.subf %422, %421 : vector<8x128xf32>
    %cst_349 = arith.constant 0.000000e+00 : f32
    %424 = vector.broadcast %cst_349 : f32 to vector<8x128xf32>
    %425 = arith.select %18, %423, %424 : vector<8x128xi1>, vector<8x128xf32>
    %c0_350 = arith.constant 0 : index
    %c17_351 = arith.constant 17 : index
    %426 = vector.load %arg11[%c0_350, %c17_351] : memref<8x256xf32, #tpu.memory_space<vmem>>, vector<8x128xf32>
    tpu.vector_store %arg11[%c0_350, %c17_351], %425 {strides = array<i32>} : memref<8x256xf32, #tpu.memory_space<vmem>>, vector<8x128xf32>,
    %c0_352 = arith.constant 0 : index
    %c0_353 = arith.constant 0 : index
    %427 = vector.load %arg11[%c0_352, %c0_353] : memref<8x256xf32, #tpu.memory_space<vmem>>, vector<8x256xf32>
    %428 = vector.extract_strided_slice %427 {offsets = [0, 0], sizes = [8, 128], strides = [1, 1]} : vector<8x256xf32> to vector<8x128xf32>
    %c72_354 = arith.constant 72 : index
    %c0_355 = arith.constant 0 : index
    %429 = vector.load %arg10[%c72_354, %c0_355] : memref<288x128xf32, #tpu.memory_space<vmem>>, vector<8x128xf32>
    tpu.vector_store %arg10[%c72_354, %c0_355], %428 {strides = array<i32>} : memref<288x128xf32, #tpu.memory_space<vmem>>, vector<8x128xf32>,
    %430 = vector.extract_strided_slice %427 {offsets = [0, 1], sizes = [8, 128], strides = [1, 1]} : vector<8x256xf32> to vector<8x128xf32>
    %c80_356 = arith.constant 80 : index
    %c0_357 = arith.constant 0 : index
    %431 = vector.load %arg10[%c80_356, %c0_357] : memref<288x128xf32, #tpu.memory_space<vmem>>, vector<8x128xf32>
    tpu.vector_store %arg10[%c80_356, %c0_357], %430 {strides = array<i32>} : memref<288x128xf32, #tpu.memory_space<vmem>>, vector<8x128xf32>,
    %432 = vector.extract_strided_slice %427 {offsets = [0, 2], sizes = [8, 128], strides = [1, 1]} : vector<8x256xf32> to vector<8x128xf32>
    %c88_358 = arith.constant 88 : index
    %c0_359 = arith.constant 0 : index
    %433 = vector.load %arg10[%c88_358, %c0_359] : memref<288x128xf32, #tpu.memory_space<vmem>>, vector<8x128xf32>
    tpu.vector_store %arg10[%c88_358, %c0_359], %432 {strides = array<i32>} : memref<288x128xf32, #tpu.memory_space<vmem>>, vector<8x128xf32>,
    %434 = vector.extract_strided_slice %427 {offsets = [0, 16], sizes = [8, 128], strides = [1, 1]} : vector<8x256xf32> to vector<8x128xf32>
    %c96_360 = arith.constant 96 : index
    %c0_361 = arith.constant 0 : index
    %435 = vector.load %arg10[%c96_360, %c0_361] : memref<288x128xf32, #tpu.memory_space<vmem>>, vector<8x128xf32>
    tpu.vector_store %arg10[%c96_360, %c0_361], %434 {strides = array<i32>} : memref<288x128xf32, #tpu.memory_space<vmem>>, vector<8x128xf32>,
    %436 = vector.extract_strided_slice %427 {offsets = [0, 17], sizes = [8, 128], strides = [1, 1]} : vector<8x256xf32> to vector<8x128xf32>
    %c104_362 = arith.constant 104 : index
    %c0_363 = arith.constant 0 : index
    %437 = vector.load %arg10[%c104_362, %c0_363] : memref<288x128xf32, #tpu.memory_space<vmem>>, vector<8x128xf32>
    tpu.vector_store %arg10[%c104_362, %c0_363], %436 {strides = array<i32>} : memref<288x128xf32, #tpu.memory_space<vmem>>, vector<8x128xf32>,
    %438 = vector.extract_strided_slice %427 {offsets = [0, 18], sizes = [8, 128], strides = [1, 1]} : vector<8x256xf32> to vector<8x128xf32>
    %c112_364 = arith.constant 112 : index
    %c0_365 = arith.constant 0 : index
    %439 = vector.load %arg10[%c112_364, %c0_365] : memref<288x128xf32, #tpu.memory_space<vmem>>, vector<8x128xf32>
    tpu.vector_store %arg10[%c112_364, %c0_365], %438 {strides = array<i32>} : memref<288x128xf32, #tpu.memory_space<vmem>>, vector<8x128xf32>,
    %440 = vector.extract_strided_slice %427 {offsets = [0, 32], sizes = [8, 128], strides = [1, 1]} : vector<8x256xf32> to vector<8x128xf32>
    %c120_366 = arith.constant 120 : index
    %c0_367 = arith.constant 0 : index
    %441 = vector.load %arg10[%c120_366, %c0_367] : memref<288x128xf32, #tpu.memory_space<vmem>>, vector<8x128xf32>
    tpu.vector_store %arg10[%c120_366, %c0_367], %440 {strides = array<i32>} : memref<288x128xf32, #tpu.memory_space<vmem>>, vector<8x128xf32>,
    %442 = vector.extract_strided_slice %427 {offsets = [0, 33], sizes = [8, 128], strides = [1, 1]} : vector<8x256xf32> to vector<8x128xf32>
    %c128_368 = arith.constant 128 : index
    %c0_369 = arith.constant 0 : index
    %443 = vector.load %arg10[%c128_368, %c0_369] : memref<288x128xf32, #tpu.memory_space<vmem>>, vector<8x128xf32>
    tpu.vector_store %arg10[%c128_368, %c0_369], %442 {strides = array<i32>} : memref<288x128xf32, #tpu.memory_space<vmem>>, vector<8x128xf32>,
    %444 = vector.extract_strided_slice %427 {offsets = [0, 34], sizes = [8, 128], strides = [1, 1]} : vector<8x256xf32> to vector<8x128xf32>
    %c136_370 = arith.constant 136 : index
    %c0_371 = arith.constant 0 : index
    %445 = vector.load %arg10[%c136_370, %c0_371] : memref<288x128xf32, #tpu.memory_space<vmem>>, vector<8x128xf32>
    tpu.vector_store %arg10[%c136_370, %c0_371], %444 {strides = array<i32>} : memref<288x128xf32, #tpu.memory_space<vmem>>, vector<8x128xf32>,
    %c6_372 = arith.constant 6 : index
    %c0_373 = arith.constant 0 : index
    %c0_374 = arith.constant 0 : index
    %446 = vector.load %arg1[%c6_372, %c0_373, %c0_374] : memref<8x8x256xf32, #tpu.memory_space<vmem>>, vector<1x8x256xf32>
    %447 = vector.shape_cast %446 : vector<1x8x256xf32> to vector<8x256xf32>
    %448 = vector.extract_strided_slice %447 {offsets = [0, 17], sizes = [8, 128], strides = [1, 1]} : vector<8x256xf32> to vector<8x128xf32>
    %449 = vector.extract_strided_slice %391 {offsets = [16, 0], sizes = [8, 128], strides = [1, 1]} : vector<32x128xf32> to vector<8x128xf32>
    %450 = arith.subf %449, %448 : vector<8x128xf32>
    %cst_375 = arith.constant 0.000000e+00 : f32
    %451 = vector.broadcast %cst_375 : f32 to vector<8x128xf32>
    %452 = arith.select %18, %450, %451 : vector<8x128xi1>, vector<8x128xf32>
    %c0_376 = arith.constant 0 : index
    %c17_377 = arith.constant 17 : index
    %453 = vector.load %arg11[%c0_376, %c17_377] : memref<8x256xf32, #tpu.memory_space<vmem>>, vector<8x128xf32>
    tpu.vector_store %arg11[%c0_376, %c17_377], %452 {strides = array<i32>} : memref<8x256xf32, #tpu.memory_space<vmem>>, vector<8x128xf32>,
    %c0_378 = arith.constant 0 : index
    %c0_379 = arith.constant 0 : index
    %454 = vector.load %arg11[%c0_378, %c0_379] : memref<8x256xf32, #tpu.memory_space<vmem>>, vector<8x256xf32>
    %455 = vector.extract_strided_slice %454 {offsets = [0, 0], sizes = [8, 128], strides = [1, 1]} : vector<8x256xf32> to vector<8x128xf32>
    %c144_380 = arith.constant 144 : index
    %c0_381 = arith.constant 0 : index
    %456 = vector.load %arg10[%c144_380, %c0_381] : memref<288x128xf32, #tpu.memory_space<vmem>>, vector<8x128xf32>
    tpu.vector_store %arg10[%c144_380, %c0_381], %455 {strides = array<i32>} : memref<288x128xf32, #tpu.memory_space<vmem>>, vector<8x128xf32>,
    %457 = vector.extract_strided_slice %454 {offsets = [0, 1], sizes = [8, 128], strides = [1, 1]} : vector<8x256xf32> to vector<8x128xf32>
    %c152_382 = arith.constant 152 : index
    %c0_383 = arith.constant 0 : index
    %458 = vector.load %arg10[%c152_382, %c0_383] : memref<288x128xf32, #tpu.memory_space<vmem>>, vector<8x128xf32>
    tpu.vector_store %arg10[%c152_382, %c0_383], %457 {strides = array<i32>} : memref<288x128xf32, #tpu.memory_space<vmem>>, vector<8x128xf32>,
    %459 = vector.extract_strided_slice %454 {offsets = [0, 2], sizes = [8, 128], strides = [1, 1]} : vector<8x256xf32> to vector<8x128xf32>
    %c160_384 = arith.constant 160 : index
    %c0_385 = arith.constant 0 : index
    %460 = vector.load %arg10[%c160_384, %c0_385] : memref<288x128xf32, #tpu.memory_space<vmem>>, vector<8x128xf32>
    tpu.vector_store %arg10[%c160_384, %c0_385], %459 {strides = array<i32>} : memref<288x128xf32, #tpu.memory_space<vmem>>, vector<8x128xf32>,
    %461 = vector.extract_strided_slice %454 {offsets = [0, 16], sizes = [8, 128], strides = [1, 1]} : vector<8x256xf32> to vector<8x128xf32>
    %c168_386 = arith.constant 168 : index
    %c0_387 = arith.constant 0 : index
    %462 = vector.load %arg10[%c168_386, %c0_387] : memref<288x128xf32, #tpu.memory_space<vmem>>, vector<8x128xf32>
    tpu.vector_store %arg10[%c168_386, %c0_387], %461 {strides = array<i32>} : memref<288x128xf32, #tpu.memory_space<vmem>>, vector<8x128xf32>,
    %463 = vector.extract_strided_slice %454 {offsets = [0, 17], sizes = [8, 128], strides = [1, 1]} : vector<8x256xf32> to vector<8x128xf32>
    %c176_388 = arith.constant 176 : index
    %c0_389 = arith.constant 0 : index
    %464 = vector.load %arg10[%c176_388, %c0_389] : memref<288x128xf32, #tpu.memory_space<vmem>>, vector<8x128xf32>
    tpu.vector_store %arg10[%c176_388, %c0_389], %463 {strides = array<i32>} : memref<288x128xf32, #tpu.memory_space<vmem>>, vector<8x128xf32>,
    %465 = vector.extract_strided_slice %454 {offsets = [0, 18], sizes = [8, 128], strides = [1, 1]} : vector<8x256xf32> to vector<8x128xf32>
    %c184_390 = arith.constant 184 : index
    %c0_391 = arith.constant 0 : index
    %466 = vector.load %arg10[%c184_390, %c0_391] : memref<288x128xf32, #tpu.memory_space<vmem>>, vector<8x128xf32>
    tpu.vector_store %arg10[%c184_390, %c0_391], %465 {strides = array<i32>} : memref<288x128xf32, #tpu.memory_space<vmem>>, vector<8x128xf32>,
    %467 = vector.extract_strided_slice %454 {offsets = [0, 32], sizes = [8, 128], strides = [1, 1]} : vector<8x256xf32> to vector<8x128xf32>
    %c192_392 = arith.constant 192 : index
    %c0_393 = arith.constant 0 : index
    %468 = vector.load %arg10[%c192_392, %c0_393] : memref<288x128xf32, #tpu.memory_space<vmem>>, vector<8x128xf32>
    tpu.vector_store %arg10[%c192_392, %c0_393], %467 {strides = array<i32>} : memref<288x128xf32, #tpu.memory_space<vmem>>, vector<8x128xf32>,
    %469 = vector.extract_strided_slice %454 {offsets = [0, 33], sizes = [8, 128], strides = [1, 1]} : vector<8x256xf32> to vector<8x128xf32>
    %c200_394 = arith.constant 200 : index
    %c0_395 = arith.constant 0 : index
    %470 = vector.load %arg10[%c200_394, %c0_395] : memref<288x128xf32, #tpu.memory_space<vmem>>, vector<8x128xf32>
    tpu.vector_store %arg10[%c200_394, %c0_395], %469 {strides = array<i32>} : memref<288x128xf32, #tpu.memory_space<vmem>>, vector<8x128xf32>,
    %471 = vector.extract_strided_slice %454 {offsets = [0, 34], sizes = [8, 128], strides = [1, 1]} : vector<8x256xf32> to vector<8x128xf32>
    %c208_396 = arith.constant 208 : index
    %c0_397 = arith.constant 0 : index
    %472 = vector.load %arg10[%c208_396, %c0_397] : memref<288x128xf32, #tpu.memory_space<vmem>>, vector<8x128xf32>
    tpu.vector_store %arg10[%c208_396, %c0_397], %471 {strides = array<i32>} : memref<288x128xf32, #tpu.memory_space<vmem>>, vector<8x128xf32>,
    %c7_398 = arith.constant 7 : index
    %c0_399 = arith.constant 0 : index
    %c0_400 = arith.constant 0 : index
    %473 = vector.load %arg1[%c7_398, %c0_399, %c0_400] : memref<8x8x256xf32, #tpu.memory_space<vmem>>, vector<1x8x256xf32>
    %474 = vector.shape_cast %473 : vector<1x8x256xf32> to vector<8x256xf32>
    %475 = vector.extract_strided_slice %474 {offsets = [0, 17], sizes = [8, 128], strides = [1, 1]} : vector<8x256xf32> to vector<8x128xf32>
    %476 = vector.extract_strided_slice %391 {offsets = [24, 0], sizes = [8, 128], strides = [1, 1]} : vector<32x128xf32> to vector<8x128xf32>
    %477 = arith.subf %476, %475 : vector<8x128xf32>
    %cst_401 = arith.constant 0.000000e+00 : f32
    %478 = vector.broadcast %cst_401 : f32 to vector<8x128xf32>
    %479 = arith.select %18, %477, %478 : vector<8x128xi1>, vector<8x128xf32>
    %c0_402 = arith.constant 0 : index
    %c17_403 = arith.constant 17 : index
    %480 = vector.load %arg11[%c0_402, %c17_403] : memref<8x256xf32, #tpu.memory_space<vmem>>, vector<8x128xf32>
    tpu.vector_store %arg11[%c0_402, %c17_403], %479 {strides = array<i32>} : memref<8x256xf32, #tpu.memory_space<vmem>>, vector<8x128xf32>,
    %c0_404 = arith.constant 0 : index
    %c0_405 = arith.constant 0 : index
    %481 = vector.load %arg11[%c0_404, %c0_405] : memref<8x256xf32, #tpu.memory_space<vmem>>, vector<8x256xf32>
    %482 = vector.extract_strided_slice %481 {offsets = [0, 0], sizes = [8, 128], strides = [1, 1]} : vector<8x256xf32> to vector<8x128xf32>
    %c216_406 = arith.constant 216 : index
    %c0_407 = arith.constant 0 : index
    %483 = vector.load %arg10[%c216_406, %c0_407] : memref<288x128xf32, #tpu.memory_space<vmem>>, vector<8x128xf32>
    tpu.vector_store %arg10[%c216_406, %c0_407], %482 {strides = array<i32>} : memref<288x128xf32, #tpu.memory_space<vmem>>, vector<8x128xf32>,
    %484 = vector.extract_strided_slice %481 {offsets = [0, 1], sizes = [8, 128], strides = [1, 1]} : vector<8x256xf32> to vector<8x128xf32>
    %c224_408 = arith.constant 224 : index
    %c0_409 = arith.constant 0 : index
    %485 = vector.load %arg10[%c224_408, %c0_409] : memref<288x128xf32, #tpu.memory_space<vmem>>, vector<8x128xf32>
    tpu.vector_store %arg10[%c224_408, %c0_409], %484 {strides = array<i32>} : memref<288x128xf32, #tpu.memory_space<vmem>>, vector<8x128xf32>,
    %486 = vector.extract_strided_slice %481 {offsets = [0, 2], sizes = [8, 128], strides = [1, 1]} : vector<8x256xf32> to vector<8x128xf32>
    %c232_410 = arith.constant 232 : index
    %c0_411 = arith.constant 0 : index
    %487 = vector.load %arg10[%c232_410, %c0_411] : memref<288x128xf32, #tpu.memory_space<vmem>>, vector<8x128xf32>
    tpu.vector_store %arg10[%c232_410, %c0_411], %486 {strides = array<i32>} : memref<288x128xf32, #tpu.memory_space<vmem>>, vector<8x128xf32>,
    %488 = vector.extract_strided_slice %481 {offsets = [0, 16], sizes = [8, 128], strides = [1, 1]} : vector<8x256xf32> to vector<8x128xf32>
    %c240_412 = arith.constant 240 : index
    %c0_413 = arith.constant 0 : index
    %489 = vector.load %arg10[%c240_412, %c0_413] : memref<288x128xf32, #tpu.memory_space<vmem>>, vector<8x128xf32>
    tpu.vector_store %arg10[%c240_412, %c0_413], %488 {strides = array<i32>} : memref<288x128xf32, #tpu.memory_space<vmem>>, vector<8x128xf32>,
    %490 = vector.extract_strided_slice %481 {offsets = [0, 17], sizes = [8, 128], strides = [1, 1]} : vector<8x256xf32> to vector<8x128xf32>
    %c248_414 = arith.constant 248 : index
    %c0_415 = arith.constant 0 : index
    %491 = vector.load %arg10[%c248_414, %c0_415] : memref<288x128xf32, #tpu.memory_space<vmem>>, vector<8x128xf32>
    tpu.vector_store %arg10[%c248_414, %c0_415], %490 {strides = array<i32>} : memref<288x128xf32, #tpu.memory_space<vmem>>, vector<8x128xf32>,
    %492 = vector.extract_strided_slice %481 {offsets = [0, 18], sizes = [8, 128], strides = [1, 1]} : vector<8x256xf32> to vector<8x128xf32>
    %c256_416 = arith.constant 256 : index
    %c0_417 = arith.constant 0 : index
    %493 = vector.load %arg10[%c256_416, %c0_417] : memref<288x128xf32, #tpu.memory_space<vmem>>, vector<8x128xf32>
    tpu.vector_store %arg10[%c256_416, %c0_417], %492 {strides = array<i32>} : memref<288x128xf32, #tpu.memory_space<vmem>>, vector<8x128xf32>,
    %494 = vector.extract_strided_slice %481 {offsets = [0, 32], sizes = [8, 128], strides = [1, 1]} : vector<8x256xf32> to vector<8x128xf32>
    %c264_418 = arith.constant 264 : index
    %c0_419 = arith.constant 0 : index
    %495 = vector.load %arg10[%c264_418, %c0_419] : memref<288x128xf32, #tpu.memory_space<vmem>>, vector<8x128xf32>
    tpu.vector_store %arg10[%c264_418, %c0_419], %494 {strides = array<i32>} : memref<288x128xf32, #tpu.memory_space<vmem>>, vector<8x128xf32>,
    %496 = vector.extract_strided_slice %481 {offsets = [0, 33], sizes = [8, 128], strides = [1, 1]} : vector<8x256xf32> to vector<8x128xf32>
    %c272_420 = arith.constant 272 : index
    %c0_421 = arith.constant 0 : index
    %497 = vector.load %arg10[%c272_420, %c0_421] : memref<288x128xf32, #tpu.memory_space<vmem>>, vector<8x128xf32>
    tpu.vector_store %arg10[%c272_420, %c0_421], %496 {strides = array<i32>} : memref<288x128xf32, #tpu.memory_space<vmem>>, vector<8x128xf32>,
    %498 = vector.extract_strided_slice %481 {offsets = [0, 34], sizes = [8, 128], strides = [1, 1]} : vector<8x256xf32> to vector<8x128xf32>
    %c280_422 = arith.constant 280 : index
    %c0_423 = arith.constant 0 : index
    %499 = vector.load %arg10[%c280_422, %c0_423] : memref<288x128xf32, #tpu.memory_space<vmem>>, vector<8x128xf32>
    tpu.vector_store %arg10[%c280_422, %c0_423], %498 {strides = array<i32>} : memref<288x128xf32, #tpu.memory_space<vmem>>, vector<8x128xf32>,
    %c0_424 = arith.constant 0 : index
    %c0_425 = arith.constant 0 : index
    %500 = vector.load %arg4[%c0_424, %c0_425] : memref<8x288xf32, #tpu.memory_space<vmem>>, vector<8x288xf32>
    %c0_426 = arith.constant 0 : index
    %c0_427 = arith.constant 0 : index
    %501 = vector.load %arg10[%c0_426, %c0_427] : memref<288x128xf32, #tpu.memory_space<vmem>>, vector<288x128xf32>
    %cst_428 = arith.constant dense<0.000000e+00> : vector<8x128xf32>
    %502 = tpu.matmul %500, %501, %cst_428 {dimension_numbers = #tpu.dot_dimension_numbers<[1], [0], [0], [1], [0, 0, 1, 1], [], []>} : vector<8x288xf32>, vector<288x128xf32>, vector<8x128xf32> -> vector<8x128xf32>
    %503 = arith.addf %502, %27 : vector<8x128xf32>
    %cst_429 = arith.constant 0.000000e+00 : f32
    %504 = vector.broadcast %cst_429 : f32 to vector<8x128xf32>
    %505 = arith.cmpf oge, %503, %504 : vector<8x128xf32>
    %506 = vector.broadcast %30 : f32 to vector<8x128xf32>
    %507 = arith.mulf %506, %503 : vector<8x128xf32>
    %508 = arith.select %505, %503, %507 : vector<8x128xi1>, vector<8x128xf32>
    %509 = arith.addf %508, %360 : vector<8x128xf32>
    %c8_430 = arith.constant 8 : index
    %c0_431 = arith.constant 0 : index
    %510 = vector.load %arg9[%c8_430, %c0_431] : memref<16x128xf32, #tpu.memory_space<vmem>>, vector<8x128xf32>
    tpu.vector_store %arg9[%c8_430, %c0_431], %509 {strides = array<i32>} : memref<16x128xf32, #tpu.memory_space<vmem>>, vector<8x128xf32>,
    return
  }
  func.func @transform_0(%arg0: i32) -> (i32, i32, i32) {
    %c0_i32 = arith.constant 0 : i32
    %c0_i32_0 = arith.constant 0 : i32
    %c0_i32_1 = arith.constant 0 : i32
    return %arg0, %c0_i32, %c0_i32_0 : i32, i32, i32
  }
  func.func @transform_1(%arg0: i32) -> (i32, i32) {
    %c0_i32 = arith.constant 0 : i32
    %c0_i32_0 = arith.constant 0 : i32
    %c0_i32_1 = arith.constant 0 : i32
    return %c0_i32, %c0_i32_0 : i32, i32
  }
  func.func @transform_2(%arg0: i32) -> (i32, i32) {
    %c0_i32 = arith.constant 0 : i32
    %c0_i32_0 = arith.constant 0 : i32
    %c0_i32_1 = arith.constant 0 : i32
    return %c0_i32, %c0_i32_0 : i32, i32
  }
  func.func @transform_3(%arg0: i32) -> (i32, i32) {
    %c0_i32 = arith.constant 0 : i32
    %c0_i32_0 = arith.constant 0 : i32
    %c0_i32_1 = arith.constant 0 : i32
    return %c0_i32, %c0_i32_0 : i32, i32
  }
  func.func @transform_4(%arg0: i32) -> (i32, i32) {
    %c0_i32 = arith.constant 0 : i32
    %c0_i32_0 = arith.constant 0 : i32
    %c0_i32_1 = arith.constant 0 : i32
    return %c0_i32, %c0_i32_0 : i32, i32
  }
  func.func @transform_5(%arg0: i32) -> (i32, i32) {
    %c0_i32 = arith.constant 0 : i32
    %c0_i32_0 = arith.constant 0 : i32
    %c0_i32_1 = arith.constant 0 : i32
    return %c0_i32, %c0_i32_0 : i32, i32
  }
  func.func @transform_6(%arg0: i32) -> (i32, i32) {
    %c0_i32 = arith.constant 0 : i32
    %c0_i32_0 = arith.constant 0 : i32
    %c0_i32_1 = arith.constant 0 : i32
    return %c0_i32, %c0_i32_0 : i32, i32
  }
  func.func @transform_7(%arg0: i32) -> i32 {
    %c0_i32 = arith.constant 0 : i32
    %c0_i32_0 = arith.constant 0 : i32
    return %c0_i32 : i32
  }
  func.func @transform_8(%arg0: i32) -> (i32, i32) {
    %c0_i32 = arith.constant 0 : i32
    %c0_i32_0 = arith.constant 0 : i32
    return %arg0, %c0_i32 : i32, i32
  }
}

</mosaic_0001>

<bundles_post_ra>
// kernel: down_projection_block.1
= control target key start
LH: loop header
LB: loop body
LE: loop exit
PB: predicated region body
PF: predicated region fallthrough
CT: control target
= control target key end

     0   :  { %13 = vsyncpa [#allocation5], 0  ;;  %s4473_s0 = inlined_call_operand.vmem [shape: f32[8,8,256], index: 0, kind: input, shape index: {}]   ;;  %s4474_s1 = inlined_call_operand.vmem [shape: f32[8,288], index: 1, kind: input, shape index: {}]   ;;  %s4475_s2 = inlined_call_operand.vmem [shape: f32[32,72], index: 2, kind: input, shape index: {}]   ;;  %s4476_s3 = inlined_call_operand.vmem [shape: f32[8,288], index: 3, kind: input, shape index: {}]   ;;  %s4477_s4 = inlined_call_operand.vmem [shape: f32[8,1], index: 4, kind: input, shape index: {}]   ;;  %s4478_s5 = inlined_call_operand.vmem [shape: f32[32,1], index: 5, kind: input, shape index: {}]   ;;  %s4479_s6 = inlined_call_operand.vmem [shape: f32[8,1], index: 6, kind: input, shape index: {}]   ;;  %s4480_s7 = inlined_call_operand.vmem [shape: f32[3], index: 7, kind: input, shape index: {}]   ;;  %s4481_s8 = inlined_call_operand.vmem [shape: f32[16,128], index: 8, kind: output, shape index: {}]  }
   0x1   :  { %s34_s29 = sshll.u32 %s4480_s7, 4  ;;  %s35_s29 = int_to_ptr.vmem [resolvable:$true] %s34_s29 }
   0x2   :  { %s3599_s30 = scalar_lea.vmem %s35_s29, 16  ;;  %p3604_p1 = scmp.lt.s32.totalorder %s35_s29, %s35_s29 }
   0x3   :  { %p3600_p0 = scmp.ne.s32.totalorder %s35_s29, %s3599_s30  ;;  %p3605_p2 = scmp.lt.s32.totalorder %s3599_s30, %s3599_s30 }
   0x5   :  { %p3606_p3 = por %p3605_p2, %p3604_p1 }
   0x7   :  { %p3607_p4 = pnand %p3606_p3, %p3600_p0 }
   0x9   :  { %3610 = shalt.err (!%p3607_p4)
}
   0xa   :  { %s3613_s9 = smov [#allocation4]  }
   0xb   :  { %37 = dma.vmem_to_smem %s35_s29, 16, %s3613_s9, [#allocation5]  }
   0xc   :  { %3611 = dma.done.wait [#allocation5], 16  }
   0xd   :  { %3612 = vsyncadd [#allocation5], 4294967280 }
   0xe   :  { %41 = sfence }
   0xf   :  { %v3678_v0 = vld [vmem:[%s4473_s0 + $0x10] sm:$0xff]  ;;  %v3683_v1 = vld [vmem:[%s4473_s0 + $0x18] sm:$0xff]  ;;  %v3688_v2 = vld [vmem:[%s4473_s0] sm:$0xff]  ;;  %s3614_s21 = smov 95   ;;  %s3615_s22 = smov 127   ;;  %v3622_v12 = vmov 0.0|0.0  }
  0x10   :  { %v2887_v3 = vpack.i.bf16 %v3683_v1, %v3678_v0  ;;  %v3695_v4 = vld [vmem:[%s4473_s0 + $0x8] sm:$0xff]  ;;  %v3700_v5 = vld [vmem:[%s4473_s0 + $0x20] sm:$0xff]  ;;  %s3616_s23 = smov 94   ;;  %s3617_s24 = smov 126   ;;  %v3732_v9 = vld [vmem:[%s4473_s0 + $0x30] sm:$0xff]  ;;  %2721 = vmatprep.subr.bf16.mxu1 %v3622_v12  ;;  %vm3623_vm0 = vmmov 0  }
  0x11   :  { %v3705_v6 = vld [vmem:[%s4473_s0 + $0x28] sm:$0xff]  ;;  %v2897_v7 = vpack.i.bf16 %v3695_v4, %v3688_v2  ;;  %s3618_s25 = smov 112   ;;  %s3619_s26 = smov 111   ;;  %v3737_v10 = vld [vmem:[%s4473_s0 + $0x38] sm:$0xff]  ;;  %v3624_v14 = vmov 0.0   ;;  %v3625_v15 = vmov 0  }
  0x12   :  { %2888 = vrot.lane.b32.xlu0 %v2887_v3, %s3614_s21  ;;  %v2902_v8 = vpack.i.bf16 %v3705_v6, %v3700_v5  ;;  %s3620_s27 = smov 110   ;;  %s3621_s28 = smov 96   ;;  %v2987_v11 = vpack.i.bf16 %v3737_v10, %v3732_v9  ;;  %v354_v13 = vld [vmem:[%s4474_s1 + $0x8] sm:$0xff]  ;;  %2605 = vmatprep.mubr.msk.f32.mxu1 %vm3623_vm0, %v3624_v14  ;;  %96 = vst [vmem:[#allocation3] sm:$0xff] %v3624_v14  ;;  %97 = vst [vmem:[#allocation3 + $0x8] sm:$0xff] %v3624_v14  ;;  %v57_v16 = vld [vmem:[%s4477_s4] sm:$0xff] }
  0x13   :  { %2898 = vrot.lane.b32.xlu1 %v2897_v7, %s3615_s22  ;;  %460 = vmatprep.mubr.f32.mxu0 %v354_v13  ;;  %vm107_vm1 = vcmask 1039360   ;;  %vm155_vm2 = vcmask 777216   ;;  %vm163_vm3 = vcmask 769024   ;;  %vm115_vm4 = vcmask 1031168   ;;  %s3810_s17 = sld [smem:[#allocation4]]  ;;  %s3626_s18 = smov 17  }
  0x14   :  { %3047 = vset.pattern.permute.xlu0 %v3625_v15  ;;  %3083 = vset.pattern.permute.xlu1 %v3625_v15  ;;  %vm123_vm5 = vcmask 916480   ;;  %vm131_vm6 = vcmask 908288   ;;  %vm139_vm7 = vcmask 900096   ;;  %vm147_vm8 = vcmask 785408   ;;  %s2369_s15 = sld [smem:[#allocation4 + $0x1]] }
  0x15   :  { %vm392_vm9 = vcmask 261120   ;;  %vm545_vm12 = vcmask 1047688   ;;  %vm547_vm13 = vcmask 138240   ;;  %vm623_vm14 = vcmask 588800  }
  0x16   :  { %2893 = vrot.lane.b32.xlu0 %v2887_v3, %s3616_s23 }
  0x17   :  { %2903 = vrot.lane.b32.xlu1 %v2902_v8, %s3615_s22 }
  0x1a   :  { %2908 = vrot.lane.b32.xlu0 %v2897_v7, %s3617_s24 }
  0x1b   :  { %2913 = vrot.lane.b32.xlu1 %v2897_v7, %s3618_s25 }
  0x1e   :  { %2918 = vrot.lane.b32.xlu0 %v2902_v8, %s3617_s24 }
  0x1f   :  { %2923 = vrot.lane.b32.xlu1 %v2902_v8, %s3618_s25 }
  0x22   :  { %2928 = vrot.lane.b32.xlu0 %v2897_v7, %s3619_s26 }
  0x23   :  { %2933 = vrot.lane.b32.xlu1 %v2897_v7, %s3620_s27 }
  0x26   :  { %2938 = vrot.lane.b32.xlu0 %v2902_v8, %s3619_s26 }
  0x27   :  { %2943 = vrot.lane.b32.xlu1 %v2902_v8, %s3620_s27 }
  0x2a   :  { %2948 = vrot.lane.b32.xlu0 %v2897_v7, %s3621_s28 }
  0x2b   :  { %2953 = vrot.lane.b32.xlu1 %v2897_v7, %s3614_s21 }
  0x2e   :  { %2958 = vrot.lane.b32.xlu0 %v2902_v8, %s3621_s28 }
  0x2f   :  { %2963 = vrot.lane.b32.xlu1 %v2902_v8, %s3614_s21 }
  0x32   :  { %2968 = vrot.lane.b32.xlu0 %v2897_v7, %s3616_s23 }
  0x33   :  { %2973 = vrot.lane.b32.xlu1 %v2902_v8, %s3616_s23 }
  0x36   :  { %2978 = vrot.lane.b32.xlu0 %v2887_v3, %s3615_s22 }
  0x37   :  { %2983 = vrot.lane.b32.xlu1 %v2887_v3, %s3617_s24 }
  0x3a   :  { %2988 = vrot.lane.b32.xlu0 %v2987_v11, %s3615_s22 }
  0x3b   :  { %2993 = vrot.lane.b32.xlu1 %v2987_v11, %s3617_s24 }
  0x3e   :  { %2998 = vrot.lane.b32.xlu0 %v2887_v3, %s3618_s25 }
  0x3f   :  { %3003 = vrot.lane.b32.xlu1 %v2887_v3, %s3619_s26 }
  0x42   :  { %3008 = vrot.lane.b32.xlu0 %v2987_v11, %s3618_s25 }
  0x43   :  { %3013 = vrot.lane.b32.xlu1 %v2987_v11, %s3619_s26 }
  0x46   :  { %3018 = vrot.lane.b32.xlu0 %v2887_v3, %s3620_s27 }
  0x47   :  { %3023 = vrot.lane.b32.xlu1 %v2887_v3, %s3621_s28 }
  0x4a   :  { %3028 = vrot.lane.b32.xlu0 %v2987_v11, %s3620_s27 }
  0x4b   :  { %3033 = vrot.lane.b32.xlu1 %v2987_v11, %s3621_s28 }
  0x4e   :  { %3038 = vrot.lane.b32.xlu0 %v2987_v11, %s3614_s21 }
  0x4f   :  { %3043 = vrot.lane.b32.xlu1 %v2987_v11, %s3616_s23 }
  0x52   :  { %60 = vperm.xlu0 %3047, %v57_v16  }
  0x84   :  { %v2889_v17 = vpop.permute.xlu0 %2888 }
  0x85   :  { %v2899_v18 = vpop.permute.xlu1 %2898  ;;  %v2891_v21 = vunpack.i.h.bf16 %v2889_v17  ;;  %v2890_v22 = vunpack.i.l.bf16 %v2889_v17 }
  0x86   :  { %v2901_v19 = vunpack.i.h.bf16 %v2899_v18  ;;  %v2900_v20 = vunpack.i.l.bf16 %v2899_v18 }
  0x87   :  { %v219_v30 = vsel %vm155_vm2, %v2890_v22, %v2891_v21 }
  0x88   :  { %v2894_v23 = vpop.permute.xlu0 %2893  ;;  %v108_v29 = vsel %vm107_vm1, %v2900_v20, %v2901_v19 }
  0x89   :  { %v2896_v24 = vunpack.i.h.bf16 %v2894_v23  ;;  %v2895_v25 = vunpack.i.l.bf16 %v2894_v23  ;;  %v2904_v26 = vpop.permute.xlu1 %2903  ;;  %v2691_v38 = vpack.c.bf16 %v108_v29, %v3688_v2 }
  0x8a   :  { %v2906_v27 = vunpack.i.h.bf16 %v2904_v26  ;;  %v2905_v28 = vunpack.i.l.bf16 %v2904_v26 }
  0x8b   :  { %v226_v31 = vsel %vm163_vm3, %v2895_v25, %v2896_v24 }
  0x8c   :  { %v2909_v32 = vpop.permute.xlu0 %2908  ;;  %v2689_v33 = vpack.c.bf16 %v226_v31, %v219_v30  ;;  %v239_v34 = vsel %vm107_vm1, %v2905_v28, %v2906_v27 }
  0x8d   :  { %v2911_v35 = vunpack.i.h.bf16 %v2909_v32  ;;  %v2910_v36 = vunpack.i.l.bf16 %v2909_v32  ;;  %v2914_v37 = vpop.permute.xlu1 %2913  ;;  %v2693_v41 = vpack.c.bf16 %v239_v34, %v3700_v5 }
  0x8e   :  { %v2916_v39 = vunpack.i.h.bf16 %v2914_v37  ;;  %v2915_v40 = vunpack.i.l.bf16 %v2914_v37  ;;  %2690 = vmatprep.subr.bf16.mxu0 %v2689_v33 }
  0x8f   :  { %2692 = vmatpush3.bf16.msra.mxu0 %v2691_v38  ;;  %v116_v42 = vsel %vm115_vm4, %v2910_v36, %v2911_v35 }
  0x90   :  { %v2919_v43 = vpop.permute.xlu0 %2918  ;;  %2694 = vmatprep.subr.bf16.mxu0 %v2693_v41  ;;  %v124_v44 = vsel %vm123_vm5, %v2915_v40, %v2916_v39 }
  0x91   :  { %v2921_v45 = vunpack.i.h.bf16 %v2919_v43  ;;  %v2920_v46 = vunpack.i.l.bf16 %v2919_v43  ;;  %v2924_v47 = vpop.permute.xlu1 %2923  ;;  %v2695_v48 = vpack.c.bf16 %v124_v44, %v116_v42 }
  0x92   :  { %v2926_v49 = vunpack.i.h.bf16 %v2924_v47  ;;  %v2925_v50 = vunpack.i.l.bf16 %v2924_v47 }
  0x93   :  { %2696 = vmatpush3.bf16.msra.mxu0 %v2695_v48  ;;  %v246_v51 = vsel %vm115_vm4, %v2920_v46, %v2921_v45 }
  0x94   :  { %v2929_v52 = vpop.permute.xlu0 %2928  ;;  %v253_v53 = vsel %vm123_vm5, %v2925_v50, %v2926_v49 }
  0x95   :  { %v2931_v54 = vunpack.i.h.bf16 %v2929_v52  ;;  %v2930_v55 = vunpack.i.l.bf16 %v2929_v52  ;;  %v2934_v56 = vpop.permute.xlu1 %2933  ;;  %v2697_v57 = vpack.c.bf16 %v253_v53, %v246_v51 }
  0x96   :  { %v2936_v58 = vunpack.i.h.bf16 %v2934_v56  ;;  %v2935_v59 = vunpack.i.l.bf16 %v2934_v56 }
  0x97   :  { %2698 = vmatprep.subr.bf16.mxu0 %v2697_v57  ;;  %v132_v60 = vsel %vm131_vm6, %v2930_v55, %v2931_v54 }
  0x98   :  { %v2939_v61 = vpop.permute.xlu0 %2938  ;;  %v140_v62 = vsel %vm139_vm7, %v2935_v59, %v2936_v58 }
  0x99   :  { %v2941_v63 = vunpack.i.h.bf16 %v2939_v61  ;;  %v2940_v3 = vunpack.i.l.bf16 %v2939_v61  ;;  %v2944_v7 = vpop.permute.xlu1 %2943  ;;  %v2699_v8 = vpack.c.bf16 %v140_v62, %v132_v60 }
  0x9a   :  { %v2946_v11 = vunpack.i.h.bf16 %v2944_v7  ;;  %v2945_v13 = vunpack.i.l.bf16 %v2944_v7 }
  0x9b   :  { %2700 = vmatpush3.bf16.msra.mxu0 %v2699_v8  ;;  %v260_v15 = vsel %vm131_vm6, %v2940_v3, %v2941_v63 }
  0x9c   :  { %v2949_v16 = vpop.permute.xlu0 %2948  ;;  %v267_v17 = vsel %vm139_vm7, %v2945_v13, %v2946_v11 }
  0x9d   :  { %v2951_v18 = vunpack.i.h.bf16 %v2949_v16  ;;  %v2950_v19 = vunpack.i.l.bf16 %v2949_v16  ;;  %v2954_v20 = vpop.permute.xlu1 %2953  ;;  %v2701_v21 = vpack.c.bf16 %v267_v17, %v260_v15 }
  0x9e   :  { %v2956_v22 = vunpack.i.h.bf16 %v2954_v20  ;;  %v2955_v23 = vunpack.i.l.bf16 %v2954_v20 }
  0x9f   :  { %2702 = vmatprep.subr.bf16.mxu0 %v2701_v21  ;;  %v148_v24 = vsel %vm147_vm8, %v2950_v19, %v2951_v18 }
  0xa0   :  { %v2959_v25 = vpop.permute.xlu0 %2958  ;;  %v156_v26 = vsel %vm155_vm2, %v2955_v23, %v2956_v22 }
  0xa1   :  { %v2961_v27 = vunpack.i.h.bf16 %v2959_v25  ;;  %v2960_v28 = vunpack.i.l.bf16 %v2959_v25  ;;  %v2964_v29 = vpop.permute.xlu1 %2963  ;;  %v2703_v30 = vpack.c.bf16 %v156_v26, %v148_v24 }
  0xa2   :  { %v2966_v31 = vunpack.i.h.bf16 %v2964_v29  ;;  %v2965_v32 = vunpack.i.l.bf16 %v2964_v29 }
  0xa3   :  { %2704 = vmatpush3.bf16.msra.mxu0 %v2703_v30  ;;  %v274_v33 = vsel %vm147_vm8, %v2960_v28, %v2961_v27 }
  0xa4   :  { %v2969_v34 = vpop.permute.xlu0 %2968  ;;  %v281_v35 = vsel %vm155_vm2, %v2965_v32, %v2966_v31 }
  0xa5   :  { %v2971_v36 = vunpack.i.h.bf16 %v2969_v34  ;;  %v2970_v37 = vunpack.i.l.bf16 %v2969_v34  ;;  %v2974_v38 = vpop.permute.xlu1 %2973  ;;  %v2705_v39 = vpack.c.bf16 %v281_v35, %v274_v33 }
  0xa6   :  { %v2976_v40 = vunpack.i.h.bf16 %v2974_v38  ;;  %v2975_v41 = vunpack.i.l.bf16 %v2974_v38 }
  0xa7   :  { %2706 = vmatprep.subr.bf16.mxu0 %v2705_v39  ;;  %v164_v42 = vsel %vm163_vm3, %v2970_v37, %v2971_v36 }
  0xa8   :  { %v2979_v43 = vpop.permute.xlu0 %2978  ;;  %v2707_v44 = vpack.c.bf16 %v3678_v0, %v164_v42  ;;  %v288_v45 = vsel %vm163_vm3, %v2975_v41, %v2976_v40 }
  0xa9   :  { %v2981_v46 = vunpack.i.h.bf16 %v2979_v43  ;;  %v2980_v47 = vunpack.i.l.bf16 %v2979_v43  ;;  %v2984_v48 = vpop.permute.xlu1 %2983  ;;  %v2709_v49 = vpack.c.bf16 %v3732_v9, %v288_v45 }
  0xaa   :  { %v2986_v50 = vunpack.i.h.bf16 %v2984_v48  ;;  %v2985_v51 = vunpack.i.l.bf16 %v2984_v48  ;;  %2708 = vmatpush3.bf16.msra.mxu0 %v2707_v44  ;;  %v353_v44 = vld [vmem:[%s4474_s1] sm:$0xff] }
  0xab   :  { %2710 = vmatprep.subr.bf16.mxu0 %v2709_v49  ;;  %v177_v52 = vsel %vm107_vm1, %v2980_v47, %v2981_v46 }
  0xac   :  { %v2989_v53 = vpop.permute.xlu0 %2988  ;;  %v184_v54 = vsel %vm115_vm4, %v2985_v51, %v2986_v50 }
  0xad   :  { %v2991_v55 = vunpack.i.h.bf16 %v2989_v53  ;;  %v2990_v56 = vunpack.i.l.bf16 %v2989_v53  ;;  %v2994_v57 = vpop.permute.xlu1 %2993  ;;  %v2711_v58 = vpack.c.bf16 %v184_v54, %v177_v52 }
  0xae   :  { %v2996_v59 = vunpack.i.h.bf16 %v2994_v57  ;;  %v2995_v60 = vunpack.i.l.bf16 %v2994_v57  ;;  %v42_v57 = vlaneseq }
  0xaf   :  { %2712 = vmatpush3.bf16.msra.mxu0 %v2711_v58  ;;  %v301_v61 = vsel %vm107_vm1, %v2990_v56, %v2991_v55  ;;  %v355_v56 = vld [vmem:[%s4474_s1 + $0x10] sm:$0xff] }
  0xb0   :  { %v2999_v62 = vpop.permute.xlu0 %2998  ;;  %v308_v63 = vsel %vm115_vm4, %v2995_v60, %v2996_v59 }
  0xb1   :  { %v3001_v3 = vunpack.i.h.bf16 %v2999_v62  ;;  %v3000_v7 = vunpack.i.l.bf16 %v2999_v62  ;;  %v3004_v8 = vpop.permute.xlu1 %3003  ;;  %v2713_v11 = vpack.c.bf16 %v308_v63, %v301_v61  ;;  %v43_v62 = vand.u32 127, %v42_v57  ;;  %v613_v57 = vld [vmem:[%s4475_s2 + $0x18] sm:$0xff] }
  0xb2   :  { %v3006_v13 = vunpack.i.h.bf16 %v3004_v8  ;;  %v3005_v15 = vunpack.i.l.bf16 %v3004_v8  ;;  %v537_v8 = vstv %s3810_s17 }
  0xb3   :  { %2714 = vmatprep.subr.bf16.mxu0 %v2713_v11  ;;  %v191_v16 = vsel %vm123_vm5, %v3000_v7, %v3001_v3  ;;  %v48_v3 = vand.u32 15, %v43_v62  ;;  %v3909_v62 = vld [vmem:[%s4473_s0 + $0x60] sm:$0xff] }
  0xb4   :  { %v3009_v17 = vpop.permute.xlu0 %3008  ;;  %v198_v18 = vsel %vm131_vm6, %v3005_v15, %v3006_v13 }
  0xb5   :  { %v3011_v19 = vunpack.i.h.bf16 %v3009_v17  ;;  %v3010_v20 = vunpack.i.l.bf16 %v3009_v17  ;;  %v3014_v21 = vpop.permute.xlu1 %3013  ;;  %v2715_v22 = vpack.c.bf16 %v198_v18, %v191_v16  ;;  %vm3818_vm10 = vcmp.lt.s32.totalorder %v48_v3, 8 }
  0xb6   :  { %v3016_v23 = vunpack.i.h.bf16 %v3014_v21  ;;  %v3015_v24 = vunpack.i.l.bf16 %v3014_v21 }
  0xb7   :  { %2716 = vmatpush3.bf16.msra.mxu0 %v2715_v22  ;;  %v315_v25 = vsel %vm123_vm5, %v3010_v20, %v3011_v19 }
  0xb8   :  { %v3019_v26 = vpop.permute.xlu0 %3018  ;;  %v322_v27 = vsel %vm131_vm6, %v3015_v24, %v3016_v23  ;;  %v610_v23 = vld [vmem:[%s4475_s2] sm:$0xff] }
  0xb9   :  { %v3021_v28 = vunpack.i.h.bf16 %v3019_v26  ;;  %v3020_v29 = vunpack.i.l.bf16 %v3019_v26  ;;  %v3024_v30 = vpop.permute.xlu1 %3023  ;;  %v2717_v31 = vpack.c.bf16 %v322_v27, %v315_v25  ;;  %v63_v24 = vld [vmem:[%s4478_s5] sm:$0xff]  ;;  %v65_v25 = vld [vmem:[%s4478_s5 + $0x10] sm:$0xff]  ;;  %v64_v26 = vld [vmem:[%s4478_s5 + $0x8] sm:$0xff] }
  0xba   :  { %v3026_v32 = vunpack.i.h.bf16 %v3024_v30  ;;  %v3025_v33 = vunpack.i.l.bf16 %v3024_v30 }
  0xbb   :  { %2718 = vmatprep.subr.bf16.mxu0 %v2717_v31  ;;  %v205_v34 = vsel %vm139_vm7, %v3020_v29, %v3021_v28 }
  0xbc   :  { %v3029_v35 = vpop.permute.xlu0 %3028  ;;  %v212_v36 = vsel %vm147_vm8, %v3025_v33, %v3026_v32 }
  0xbd   :  { %v3031_v37 = vunpack.i.h.bf16 %v3029_v35  ;;  %v3030_v38 = vunpack.i.l.bf16 %v3029_v35  ;;  %v3034_v39 = vpop.permute.xlu1 %3033  ;;  %v2719_v40 = vpack.c.bf16 %v212_v36, %v205_v34 }
  0xbe   :  { %v3036_v41 = vunpack.i.h.bf16 %v3034_v39  ;;  %v3035_v42 = vunpack.i.l.bf16 %v3034_v39 }
  0xbf   :  { %2720 = vmatpush3.bf16.msra.mxu0 %v2719_v40  ;;  %v329_v43 = vsel %vm139_vm7, %v3030_v38, %v3031_v37 }
  0xc0   :  { %v3039_v45 = vpop.permute.xlu0 %3038  ;;  %v336_v46 = vsel %vm147_vm8, %v3035_v42, %v3036_v41 }
  0xc1   :  { %v3041_v47 = vunpack.i.h.bf16 %v3039_v45  ;;  %v3040_v48 = vunpack.i.l.bf16 %v3039_v45  ;;  %v3044_v49 = vpop.permute.xlu1 %3043  ;;  %v2722_v50 = vpack.c.bf16 %v336_v46, %v329_v43 }
  0xc2   :  { %v3046_v51 = vunpack.i.h.bf16 %v3044_v49  ;;  %v3045_v52 = vunpack.i.l.bf16 %v3044_v49  ;;  %461 = vmatmul.mubr.f32.vlgmr.msra.gmra.mrb[0].mxu0 %v353_v44 }
  0xc3   :  { %2723 = vmatpush3.bf16.msra.mxu1 %v2722_v50  ;;  %v343_v53 = vsel %vm155_vm2, %v3040_v48, %v3041_v47 }
  0xc4   :  { %2724 = vmatprep.subr.bf16.mxu1 %v3622_v12  ;;  %v350_v54 = vsel %vm163_vm3, %v3045_v52, %v3046_v51 }
  0xc5   :  { %v2725_v55 = vpack.c.bf16 %v350_v54, %v343_v53 }
  0xc7   :  { %2726 = vmatpush3.bf16.msra.mxu1 %v2725_v55  ;;  %v611_v55 = vld [vmem:[%s4475_s2 + $0x8] sm:$0xff] }
  0xca   :  { %2606 = vmatmul.mubr.msk.f32.vlgmr.msra.gmra.mrb[0].mxu1 %vm392_vm9, %v355_v56  ;;  %v612_v56 = vld [vmem:[%s4475_s2 + $0x10] sm:$0xff] }
  0xcb   :  { %2626 = vmatprep.mubr.msk.f32.mxu1 %vm623_vm14, %v610_v23 }
  0xd1   :  { %v3812_v61 = vpop.permute.xlu0 %60 }
 0x195   :  { %v2443_v58 = vpop.f32.mrb[0].mxu0 }
 0x196   :  { %v2444_v59 = vpop.f32.mrb[1].mxu0 }
 0x197   :  { %v2445_v60 = vadd.f32 %v2444_v59, %v2443_v58  ;;  %v3894_v58 = vld [vmem:[%s4473_s0 + $0x50] sm:$0xff]  ;;  %v2392_v59 = vld [vmem:[%s4473_s0 + $0x58] sm:$0xff] }
 0x199   :  { %v463_v63 = vadd.f32 %v2445_v60, %v3812_v61  ;;  %v3900_v60 = vpack.i.bf16 %v2392_v59, %v3894_v58 }
 0x19d   :  { %v532_v7 = vpop.f32.mrb[0].mxu1 }
 0x19e   :  { %v533_v11 = vadd.f32 %v532_v7, %v463_v63  ;;  %v2607_v13 = vpop.f32.mrb[1].mxu1  ;;  %v2394_v63 = vld [vmem:[%s4473_s0 + $0x68] sm:$0xff]  ;;  %v2389_v7 = vld [vmem:[%s4473_s0 + $0x40] sm:$0xff] }
 0x19f   :  { %v3915_v3 = vpack.i.bf16 %v2394_v63, %v3909_v62 }
 0x1a0   :  { %v538_v15 = vmul.f32 %v537_v8, %v533_v11  ;;  %vm536_vm11 = vcmp.ge.f32.partialorder %v533_v11, 0.0 }
 0x1a2   :  { %v3822_v17 = vsel %vm536_vm11, %v533_v11, %v538_v15  ;;  %v2390_v11 = vld [vmem:[%s4473_s0 + $0x48] sm:$0xff] }
 0x1a3   :  { %v540_v18 = vsel %vm3818_vm10, %v3822_v17, 0.0  ;;  %v3923_v13 = vpack.i.bf16 %v2390_v11, %v2389_v7 }
 0x1a4   :  { %542 = vrot.lane.b32.xlu1 %v540_v18, %s3626_s18 }
 0x216   :  { %v543_v19 = vpop.permute.xlu1 %542 }
 0x217   :  { %546 = vst.msk [vmem:[#allocation3] sm:$0xff] %vm545_vm12, %v543_v19 }
 0x218   :  { %548 = vst.msk [vmem:[#allocation3 + $0x8] sm:$0xff] %vm547_vm13, %v543_v19 }
 0x21e   :  { %v549_v20 = vld [vmem:[#allocation3] sm:$0xff] }
 0x21f   :  { %v550_v21 = vld [vmem:[#allocation3 + $0x8] sm:$0xff] }
 0x220   :  { %v3053_v22 = vpack.i.bf16 %v550_v21, %v549_v20 }
 0x222   :  { %3054 = vrot.lane.b32.xlu0 %v3053_v22, %s3617_s24  ;;  %3049 = vrot.lane.b32.xlu1 %v3053_v22, %s3615_s22 }
 0x226   :  { %3064 = vrot.lane.b32.xlu0 %v3053_v22, %s3619_s26  ;;  %3059 = vrot.lane.b32.xlu1 %v3053_v22, %s3618_s25 }
 0x22a   :  { %3074 = vrot.lane.b32.xlu0 %v3053_v22, %s3621_s28  ;;  %3069 = vrot.lane.b32.xlu1 %v3053_v22, %s3620_s27 }
 0x22e   :  { %603 = vrot.lane.b32.xlu0 %v549_v20, %s3616_s23  ;;  %3079 = vrot.lane.b32.xlu1 %v3053_v22, %s3614_s21 }
 0x232   :  { %69 = vperm.xlu0 %3047, %v63_v24   ;;  %605 = vrot.lane.b32.xlu1 %v550_v21, %s3616_s23 }
 0x236   :  { %738 = vrot.lane.b32.xlu0 %v3688_v2, %s3619_s26  ;;  %74 = vperm.xlu1 %3083, %v64_v26   ;;  %v66_v2 = vld [vmem:[%s4478_s5 + $0x18] sm:$0xff] }
 0x23a   :  { %79 = vperm.xlu0 %3047, %v65_v25   ;;  %740 = vrot.lane.b32.xlu1 %v3695_v4, %s3619_s26 }
 0x23e   :  { %819 = vrot.lane.b32.xlu0 %v3683_v1, %s3619_s26  ;;  %817 = vrot.lane.b32.xlu1 %v3678_v0, %s3619_s26 }
 0x242   :  { %898 = vrot.lane.b32.xlu0 %v3705_v6, %s3619_s26  ;;  %896 = vrot.lane.b32.xlu1 %v3700_v5, %s3619_s26 }
 0x246   :  { %975 = vrot.lane.b32.xlu0 %v3732_v9, %s3619_s26  ;;  %84 = vperm.xlu1 %3083, %v66_v2  }
 0x24a   :  { %977 = vrot.lane.b32.xlu1 %v3737_v10, %s3619_s26  ;;  %3085 = vrot.lane.b32.xlu0 %v3900_v60, %s3614_s21 }
 0x24e   :  { %3090 = vrot.lane.b32.xlu1 %v3900_v60, %s3616_s23  ;;  %3095 = vrot.lane.b32.xlu0 %v3923_v13, %s3615_s22 }
 0x252   :  { %3100 = vrot.lane.b32.xlu1 %v3915_v3, %s3615_s22 }
 0x294   :  { %v3055_v1 = vpop.permute.xlu0 %3054  ;;  %v3050_v4 = vpop.permute.xlu1 %3049 }
 0x295   :  { %v3052_v0 = vunpack.i.h.bf16 %v3050_v4  ;;  %v3051_v27 = vunpack.i.l.bf16 %v3050_v4  ;;  %v3057_v28 = vunpack.i.h.bf16 %v3055_v1  ;;  %v3056_v6 = vunpack.i.l.bf16 %v3055_v1 }
 0x297   :  { %v558_v29 = vsel %vm107_vm1, %v3051_v27, %v3052_v0  ;;  %v565_v35 = vsel %vm115_vm4, %v3056_v6, %v3057_v28 }
 0x298   :  { %v3065_v5 = vpop.permute.xlu0 %3064  ;;  %v3060_v30 = vpop.permute.xlu1 %3059  ;;  %v2727_v31 = vpack.c.bf16 %v558_v29, %v549_v20 }
 0x299   :  { %v3062_v9 = vunpack.i.h.bf16 %v3060_v30  ;;  %v3061_v32 = vunpack.i.l.bf16 %v3060_v30  ;;  %v3067_v33 = vunpack.i.h.bf16 %v3065_v5  ;;  %v3066_v34 = vunpack.i.l.bf16 %v3065_v5 }
 0x29a   :  { %2728 = vmatprep.subr.bf16.mxu1 %v2727_v31 }
 0x29b   :  { %2730 = vmatpush3.bf16.msra.mxu1 %v2727_v31  ;;  %v572_v10 = vsel %vm123_vm5, %v3061_v32, %v3062_v9  ;;  %v579_v43 = vsel %vm131_vm6, %v3066_v34, %v3067_v33 }
 0x29c   :  { %v3075_v36 = vpop.permute.xlu0 %3074  ;;  %v3070_v37 = vpop.permute.xlu1 %3069  ;;  %v2731_v38 = vpack.c.bf16 %v572_v10, %v565_v35 }
 0x29d   :  { %v3072_v39 = vunpack.i.h.bf16 %v3070_v37  ;;  %v3071_v40 = vunpack.i.l.bf16 %v3070_v37  ;;  %v3077_v41 = vunpack.i.h.bf16 %v3075_v36  ;;  %v3076_v42 = vunpack.i.l.bf16 %v3075_v36 }
 0x29e   :  { %2732 = vmatprep.subr.bf16.mxu1 %v2731_v38  ;;  %v3940_v36 = vstv %s2369_s15 }
 0x29f   :  { %2734 = vmatpush3.bf16.msra.mxu1 %v2731_v38  ;;  %v586_v44 = vsel %vm139_vm7, %v3071_v40, %v3072_v39  ;;  %v593_v49 = vsel %vm147_vm8, %v3076_v42, %v3077_v41 }
 0x2a0   :  { %v3080_v45 = vpop.permute.xlu1 %3079  ;;  %v2735_v46 = vpack.c.bf16 %v586_v44, %v579_v43  ;;  %v604_v53 = vpop.permute.xlu0 %603 }
 0x2a1   :  { %v3082_v47 = vunpack.i.h.bf16 %v3080_v45  ;;  %v3081_v48 = vunpack.i.l.bf16 %v3080_v45 }
 0x2a2   :  { %2736 = vmatprep.subr.bf16.mxu1 %v2735_v46 }
 0x2a3   :  { %2738 = vmatpush3.bf16.msra.mxu1 %v2735_v46  ;;  %v600_v50 = vsel %vm155_vm2, %v3081_v48, %v3082_v47 }
 0x2a4   :  { %v606_v51 = vpop.permute.xlu1 %605  ;;  %v2739_v52 = vpack.c.bf16 %v600_v50, %v593_v49 }
 0x2a5   :  { %v607_v54 = vsel %vm163_vm3, %v604_v53, %v606_v51 }
 0x2a6   :  { %2740 = vmatprep.subr.bf16.mxu1 %v2739_v52 }
 0x2a7   :  { %2742 = vmatpush3.bf16.msra.mxu1 %v2739_v52 }
 0x2a8   :  { %2624 = vmatprep.subr.mxu1 %v607_v54 }
 0x2ab   :  { %2625 = vmatpush3.msra.mxu1 %v607_v54 }
 0x2ac   :  { %2627 = vmatmul.mubr.msk.f32.vlgmr.msra.gmra.mrb[2].mxu1 %vm623_vm14, %v611_v55 }
 0x2ad   :  { %2629 = vmatprep.mubr.msk.f32.mxu1 %vm623_vm14, %v612_v56 }
 0x2b0   :  { %2630 = vmatmul.mubr.msk.f32.gmra.mrb[4].mxu1 %vm623_vm14, %v613_v57 }
 0x2b1   :  { %v3931_v18 = vpop.permute.xlu0 %69 }
 0x2b5   :  { %v3929_v15 = vpop.permute.xlu1 %74  ;;  %v739_v20 = vpop.permute.xlu0 %738 }
 0x2b9   :  { %v741_v19 = vpop.permute.xlu1 %740  ;;  %v3933_v22 = vpop.permute.xlu0 %79 }
 0x2ba   :  { %v742_v49 = vsel %vm131_vm6, %v739_v20, %v741_v19 }
 0x2bd   :  { %v818_v21 = vpop.permute.xlu1 %817  ;;  %v820_v23 = vpop.permute.xlu0 %819 }
 0x2be   :  { %v821_v40 = vsel %vm131_vm6, %v818_v21, %v820_v23 }
 0x2c1   :  { %v897_v24 = vpop.permute.xlu1 %896  ;;  %v899_v25 = vpop.permute.xlu0 %898 }
 0x2c2   :  { %v900_v19 = vsel %vm131_vm6, %v897_v24, %v899_v25  ;;  %v3999_v25 = vld [vmem:[%s4473_s0 + $0x70] sm:$0xff] }
 0x2c5   :  { %v3935_v26 = vpop.permute.xlu1 %84  ;;  %v976_v1 = vpop.permute.xlu0 %975 }
 0x2c9   :  { %v978_v2 = vpop.permute.xlu1 %977  ;;  %v3086_v28 = vpop.permute.xlu0 %3085 }
 0x2ca   :  { %v3088_v6 = vunpack.i.h.bf16 %v3086_v28  ;;  %v3087_v29 = vunpack.i.l.bf16 %v3086_v28 }
 0x2cc   :  { %v1352_v30 = vsel %vm155_vm2, %v3087_v29, %v3088_v6 }
 0x2cd   :  { %v3091_v4 = vpop.permute.xlu1 %3090  ;;  %v3096_v31 = vpop.permute.xlu0 %3095 }
 0x2ce   :  { %v3093_v0 = vunpack.i.h.bf16 %v3091_v4  ;;  %v3092_v27 = vunpack.i.l.bf16 %v3091_v4  ;;  %v3098_v32 = vunpack.i.h.bf16 %v3096_v31  ;;  %v3097_v33 = vunpack.i.l.bf16 %v3096_v31 }
 0x2d0   :  { %v1359_v5 = vsel %vm163_vm3, %v3092_v27, %v3093_v0  ;;  %v1248_v34 = vsel %vm107_vm1, %v3097_v33, %v3098_v32 }
 0x2d1   :  { %v2781_v9 = vpack.c.bf16 %v1359_v5, %v1352_v30  ;;  %v2783_v35 = vpack.c.bf16 %v1248_v34, %v2389_v7  ;;  %v3101_v42 = vpop.permute.xlu1 %3100 }
 0x2d2   :  { %v3103_v45 = vunpack.i.h.bf16 %v3101_v42  ;;  %v3102_v46 = vunpack.i.l.bf16 %v3101_v42 }
 0x2d3   :  { %2782 = vmatprep.subr.bf16.mxu0 %v2781_v9 }
 0x2d4   :  { %2784 = vmatpush3.bf16.msra.mxu0 %v2783_v35  ;;  %v1372_v54 = vsel %vm107_vm1, %v3102_v46, %v3103_v45 }
 0x2d5   :  { %v2785_v57 = vpack.c.bf16 %v1372_v54, %v3909_v62  ;;  %v979_v62 = vsel %vm131_vm6, %v976_v1, %v978_v2  ;;  %v2396_v1 = vld [vmem:[%s4473_s0 + $0x78] sm:$0xff] }
 0x2d6   :  { %v4007_v4 = vpack.i.bf16 %v2396_v1, %v3999_v25 }
 0x2d7   :  { %2786 = vmatprep.subr.bf16.mxu0 %v2785_v57 }
 0x37f   :  { %v2628_v10 = vpop.f32.mrb[2].mxu1 }
 0x380   :  { %v708_v37 = vadd.f32 %v2628_v10, %v3929_v15  ;;  %v702_v38 = vpop.f32.mrb[3].mxu1 }
 0x381   :  { %v703_v39 = vadd.f32 %v702_v38, %v3931_v18 }
 0x382   :  { %vm722_vm15 = vcmp.ge.f32.partialorder %v708_v37, 0.0  ;;  %v727_v41 = vmul.f32 %v3940_v36, %v708_v37 }
 0x383   :  { %vm721_vm11 = vcmp.ge.f32.partialorder %v703_v39, 0.0  ;;  %v726_v43 = vmul.f32 %v3940_v36, %v703_v39  ;;  %v2631_v44 = vpop.f32.mrb[4].mxu1 }
 0x384   :  { %v712_v47 = vpop.f32.mrb[5].mxu1  ;;  %v731_v48 = vsel %vm722_vm15, %v708_v37, %v727_v41  ;;  %v718_v55 = vadd.f32 %v2631_v44, %v3935_v26 }
 0x385   :  { %v823_v50 = vsub.f32 %v731_v48, %v821_v40  ;;  %v730_v51 = vsel %vm721_vm11, %v703_v39, %v726_v43  ;;  %v713_v59 = vadd.f32 %v712_v47, %v3933_v22 }
 0x386   :  { %v744_v52 = vsub.f32 %v730_v51, %v742_v49  ;;  %v729_v63 = vmul.f32 %v3940_v36, %v718_v55  ;;  %vm724_vm15 = vcmp.ge.f32.partialorder %v718_v55, 0.0 }
 0x387   :  { %v824_v53 = vsel %vm3818_vm10, %v823_v50, 0.0  ;;  %v728_v7 = vmul.f32 %v3940_v36, %v713_v59  ;;  %vm723_vm11 = vcmp.ge.f32.partialorder %v713_v59, 0.0 }
 0x388   :  { %826 = vrot.lane.b32.xlu1 %v824_v53, %s3626_s18  ;;  %v745_v56 = vsel %vm3818_vm10, %v744_v52, 0.0  ;;  %v733_v11 = vsel %vm724_vm15, %v718_v55, %v729_v63 }
 0x389   :  { %747 = vrot.lane.b32.xlu0 %v745_v56, %s3626_s18  ;;  %v732_v20 = vsel %vm723_vm11, %v713_v59, %v728_v7  ;;  %v981_v21 = vsub.f32 %v733_v11, %v979_v62 }
 0x38a   :  { %v902_v23 = vsub.f32 %v732_v20, %v900_v19 }
 0x38b   :  { %v982_v2 = vsel %vm3818_vm10, %v981_v21, 0.0 }
 0x38c   :  { %3110 = vrot.lane.b32.xlu1 %v3923_v13, %s3618_s25  ;;  %v903_v24 = vsel %vm3818_vm10, %v902_v23, 0.0 }
 0x38d   :  { %3105 = vrot.lane.b32.xlu0 %v3923_v13, %s3617_s24 }
 0x390   :  { %3115 = vrot.lane.b32.xlu1 %v3915_v3, %s3617_s24 }
 0x391   :  { %3120 = vrot.lane.b32.xlu0 %v3915_v3, %s3618_s25 }
 0x394   :  { %3130 = vrot.lane.b32.xlu1 %v3923_v13, %s3620_s27 }
 0x395   :  { %3125 = vrot.lane.b32.xlu0 %v3923_v13, %s3619_s26 }
 0x398   :  { %984 = vrot.lane.b32.xlu1 %v982_v2, %s3626_s18 }
 0x399   :  { %905 = vrot.lane.b32.xlu0 %v903_v24, %s3626_s18 }
 0x39c   :  { %3140 = vrot.lane.b32.xlu1 %v3915_v3, %s3620_s27 }
 0x39d   :  { %3135 = vrot.lane.b32.xlu0 %v3915_v3, %s3619_s26 }
 0x3a0   :  { %3150 = vrot.lane.b32.xlu1 %v3923_v13, %s3614_s21 }
 0x3a1   :  { %3145 = vrot.lane.b32.xlu0 %v3923_v13, %s3621_s28 }
 0x3a4   :  { %3160 = vrot.lane.b32.xlu1 %v3915_v3, %s3614_s21 }
 0x3a5   :  { %3155 = vrot.lane.b32.xlu0 %v3915_v3, %s3621_s28 }
 0x3a8   :  { %3170 = vrot.lane.b32.xlu1 %v3915_v3, %s3616_s23 }
 0x3a9   :  { %3165 = vrot.lane.b32.xlu0 %v3923_v13, %s3616_s23 }
 0x3ac   :  { %3180 = vrot.lane.b32.xlu1 %v3900_v60, %s3617_s24 }
 0x3ad   :  { %3175 = vrot.lane.b32.xlu0 %v3900_v60, %s3615_s22 }
 0x3b0   :  { %3190 = vrot.lane.b32.xlu1 %v4007_v4, %s3617_s24 }
 0x3b1   :  { %3185 = vrot.lane.b32.xlu0 %v4007_v4, %s3615_s22 }
 0x3b4   :  { %3200 = vrot.lane.b32.xlu1 %v3900_v60, %s3619_s26 }
 0x3b5   :  { %3195 = vrot.lane.b32.xlu0 %v3900_v60, %s3618_s25 }
 0x3fa   :  { %v827_v3 = vpop.permute.xlu1 %826 }
 0x3fb   :  { %v748_v13 = vpop.permute.xlu0 %747 }
 0x3fc   :  { %750 = vst.msk [vmem:[#allocation3] sm:$0xff] %vm545_vm12, %v748_v13 }
 0x3fd   :  { %751 = vst.msk [vmem:[#allocation3 + $0x8] sm:$0xff] %vm547_vm13, %v748_v13 }
 0x3fe   :  { %v3111_v0 = vpop.permute.xlu1 %3110 }
 0x3ff   :  { %v3113_v27 = vunpack.i.h.bf16 %v3111_v0  ;;  %v3112_v28 = vunpack.i.l.bf16 %v3111_v0  ;;  %v3106_v6 = vpop.permute.xlu0 %3105 }
 0x400   :  { %v3108_v29 = vunpack.i.h.bf16 %v3106_v6  ;;  %v3107_v5 = vunpack.i.l.bf16 %v3106_v6 }
 0x401   :  { %v1262_v30 = vsel %vm123_vm5, %v3112_v28, %v3113_v27 }
 0x402   :  { %v1255_v31 = vsel %vm115_vm4, %v3107_v5, %v3108_v29  ;;  %v3116_v9 = vpop.permute.xlu1 %3115 }
 0x403   :  { %v3118_v32 = vunpack.i.h.bf16 %v3116_v9  ;;  %v3117_v33 = vunpack.i.l.bf16 %v3116_v9  ;;  %v3121_v34 = vpop.permute.xlu0 %3120  ;;  %v4023_v35 = vld [vmem:[#allocation3] sm:$0xff]  ;;  %v2787_v37 = vpack.c.bf16 %v1262_v30, %v1255_v31 }
 0x404   :  { %v753_v10 = vld [vmem:[#allocation3 + $0x8] sm:$0xff]  ;;  %v3123_v38 = vunpack.i.h.bf16 %v3121_v34  ;;  %v3122_v39 = vunpack.i.l.bf16 %v3121_v34  ;;  %829 = vst.msk [vmem:[#allocation3] sm:$0xff] %vm545_vm12, %v827_v3 }
 0x405   :  { %v3214_v40 = vpack.i.bf16 %v753_v10, %v4023_v35  ;;  %830 = vst.msk [vmem:[#allocation3 + $0x8] sm:$0xff] %vm547_vm13, %v827_v3  ;;  %2788 = vmatpush3.bf16.msra.mxu0 %v2787_v37  ;;  %v1379_v42 = vsel %vm115_vm4, %v3117_v33, %v3118_v32 }
 0x406   :  { %v3131_v41 = vpop.permute.xlu1 %3130  ;;  %v1386_v43 = vsel %vm123_vm5, %v3122_v39, %v3123_v38 }
 0x407   :  { %3215 = vrot.lane.b32.xlu1 %v3214_v40, %s3618_s25  ;;  %3205 = vrot.lane.b32.xlu0 %v3214_v40, %s3615_s22  ;;  %v3133_v44 = vunpack.i.h.bf16 %v3131_v41  ;;  %v3132_v45 = vunpack.i.l.bf16 %v3131_v41  ;;  %v3126_v46 = vpop.permute.xlu0 %3125  ;;  %v2789_v47 = vpack.c.bf16 %v1386_v43, %v1379_v42 }
 0x408   :  { %v3128_v48 = vunpack.i.h.bf16 %v3126_v46  ;;  %v3127_v49 = vunpack.i.l.bf16 %v3126_v46 }
 0x409   :  { %v1276_v50 = vsel %vm139_vm7, %v3132_v45, %v3133_v44  ;;  %2790 = vmatprep.subr.bf16.mxu0 %v2789_v47 }
 0x40a   :  { %v1269_v51 = vsel %vm131_vm6, %v3127_v49, %v3128_v48  ;;  %v985_v52 = vpop.permute.xlu1 %984 }
 0x40b   :  { %3225 = vrot.lane.b32.xlu1 %v3214_v40, %s3620_s27  ;;  %3210 = vrot.lane.b32.xlu0 %v3214_v40, %s3617_s24  ;;  %v4036_v53 = vld [vmem:[#allocation3] sm:$0xff]  ;;  %v906_v55 = vpop.permute.xlu0 %905  ;;  %v2791_v56 = vpack.c.bf16 %v1276_v50, %v1269_v51 }
 0x40c   :  { %v832_v54 = vld [vmem:[#allocation3 + $0x8] sm:$0xff]  ;;  %908 = vst.msk [vmem:[#allocation3] sm:$0xff] %vm545_vm12, %v906_v55 }
 0x40d   :  { %909 = vst.msk [vmem:[#allocation3 + $0x8] sm:$0xff] %vm547_vm13, %v906_v55  ;;  %2792 = vmatpush3.bf16.msra.mxu0 %v2791_v56  ;;  %v4043_v11 = vpack.i.bf16 %v832_v54, %v4036_v53 }
 0x40e   :  { %v3141_v57 = vpop.permute.xlu1 %3140 }
 0x40f   :  { %3230 = vrot.lane.b32.xlu1 %v3214_v40, %s3621_s28  ;;  %3220 = vrot.lane.b32.xlu0 %v3214_v40, %s3619_s26  ;;  %v3136_v59 = vpop.permute.xlu0 %3135  ;;  %v3143_v63 = vunpack.i.h.bf16 %v3141_v57  ;;  %v3142_v7 = vunpack.i.l.bf16 %v3141_v57 }
 0x410   :  { %v3138_v62 = vunpack.i.h.bf16 %v3136_v59  ;;  %v3137_v19 = vunpack.i.l.bf16 %v3136_v59 }
 0x411   :  { %v1400_v20 = vsel %vm139_vm7, %v3142_v7, %v3143_v63 }
 0x412   :  { %v3151_v21 = vpop.permute.xlu1 %3150  ;;  %v1393_v23 = vsel %vm131_vm6, %v3137_v19, %v3138_v62 }
 0x413   :  { %3235 = vrot.lane.b32.xlu0 %v3214_v40, %s3614_s21  ;;  %3250 = vrot.lane.b32.xlu1 %v4043_v11, %s3616_s23  ;;  %v4050_v2 = vld [vmem:[#allocation3] sm:$0xff]  ;;  %v3146_v1 = vpop.permute.xlu0 %3145  ;;  %v3153_v3 = vunpack.i.h.bf16 %v3151_v21  ;;  %v3152_v13 = vunpack.i.l.bf16 %v3151_v21  ;;  %v2793_v0 = vpack.c.bf16 %v1400_v20, %v1393_v23 }
 0x414   :  { %v911_v24 = vld [vmem:[#allocation3 + $0x8] sm:$0xff]  ;;  %987 = vst.msk [vmem:[#allocation3] sm:$0xff] %vm545_vm12, %v985_v52  ;;  %v3148_v27 = vunpack.i.h.bf16 %v3146_v1  ;;  %v3147_v28 = vunpack.i.l.bf16 %v3146_v1 }
 0x415   :  { %988 = vst.msk [vmem:[#allocation3 + $0x8] sm:$0xff] %vm547_vm13, %v985_v52  ;;  %2794 = vmatprep.subr.bf16.mxu0 %v2793_v0  ;;  %v1290_v6 = vsel %vm155_vm2, %v3152_v13, %v3153_v3  ;;  %v3284_v47 = vpack.i.bf16 %v911_v24, %v4050_v2 }
 0x416   :  { %v3161_v29 = vpop.permute.xlu1 %3160  ;;  %v1283_v9 = vsel %vm147_vm8, %v3147_v28, %v3148_v27 }
 0x417   :  { %3240 = vrot.lane.b32.xlu0 %v3214_v40, %s3616_s23  ;;  %3260 = vrot.lane.b32.xlu1 %v4043_v11, %s3617_s24  ;;  %v3156_v5 = vpop.permute.xlu0 %3155  ;;  %v3163_v30 = vunpack.i.h.bf16 %v3161_v29  ;;  %v3162_v31 = vunpack.i.l.bf16 %v3161_v29  ;;  %v2795_v34 = vpack.c.bf16 %v1290_v6, %v1283_v9  ;;  %v4104_v9 = vld [vmem:[%s4476_s3 + $0x8] sm:$0xff] }
 0x418   :  { %v3158_v32 = vunpack.i.h.bf16 %v3156_v5  ;;  %v3157_v33 = vunpack.i.l.bf16 %v3156_v5  ;;  %1156 = vmatprep.mubr.f32.mxu1 %v4104_v9 }
 0x419   :  { %v1414_v10 = vsel %vm155_vm2, %v3162_v31, %v3163_v30  ;;  %2796 = vmatpush3.bf16.msra.mxu0 %v2795_v34 }
 0x41a   :  { %v3171_v37 = vpop.permute.xlu1 %3170  ;;  %v1407_v38 = vsel %vm147_vm8, %v3157_v33, %v3158_v32  ;;  %v1487_v32 = vld [vmem:[%s4474_s1 + $0x8] sm:$0xff] }
 0x41b   :  { %3270 = vrot.lane.b32.xlu1 %v4043_v11, %s3619_s26  ;;  %3245 = vrot.lane.b32.xlu0 %v4043_v11, %s3614_s21  ;;  %v3166_v39 = vpop.permute.xlu0 %3165  ;;  %v3173_v40 = vunpack.i.h.bf16 %v3171_v37  ;;  %v3172_v41 = vunpack.i.l.bf16 %v3171_v37  ;;  %v2797_v42 = vpack.c.bf16 %v1414_v10, %v1407_v38  ;;  %v4093_v5 = vld [vmem:[#allocation3] sm:$0xff] }
 0x41c   :  { %v3168_v43 = vunpack.i.h.bf16 %v3166_v39  ;;  %v3167_v44 = vunpack.i.l.bf16 %v3166_v39  ;;  %v990_v30 = vld [vmem:[#allocation3 + $0x8] sm:$0xff]  ;;  %1592 = vmatprep.mubr.f32.mxu0 %v1487_v32 }
 0x41d   :  { %2798 = vmatprep.subr.bf16.mxu0 %v2797_v42  ;;  %v1421_v46 = vsel %vm163_vm3, %v3172_v41, %v3173_v40  ;;  %v3339_v31 = vpack.i.bf16 %v990_v30, %v4093_v5 }
 0x41e   :  { %v3181_v45 = vpop.permute.xlu1 %3180  ;;  %v1297_v51 = vsel %vm163_vm3, %v3167_v44, %v3168_v43  ;;  %v2801_v55 = vpack.c.bf16 %v3999_v25, %v1421_v46 }
 0x41f   :  { %3275 = vrot.lane.b32.xlu1 %v4043_v11, %s3620_s27  ;;  %3255 = vrot.lane.b32.xlu0 %v4043_v11, %s3615_s22  ;;  %v3183_v48 = vunpack.i.h.bf16 %v3181_v45  ;;  %v3182_v49 = vunpack.i.l.bf16 %v3181_v45  ;;  %v3176_v50 = vpop.permute.xlu0 %3175  ;;  %v2799_v57 = vpack.c.bf16 %v3894_v58, %v1297_v51 }
 0x420   :  { %v3178_v52 = vunpack.i.h.bf16 %v3176_v50  ;;  %v3177_v54 = vunpack.i.l.bf16 %v3176_v50 }
 0x421   :  { %v1317_v56 = vsel %vm115_vm4, %v3182_v49, %v3183_v48  ;;  %2800 = vmatpush3.bf16.msra.mxu0 %v2799_v57 }
 0x422   :  { %v1310_v59 = vsel %vm107_vm1, %v3177_v54, %v3178_v52  ;;  %v3191_v63 = vpop.permute.xlu1 %3190  ;;  %2802 = vmatprep.subr.bf16.mxu0 %v2801_v55 }
 0x423   :  { %3265 = vrot.lane.b32.xlu0 %v4043_v11, %s3618_s25  ;;  %3285 = vrot.lane.b32.xlu1 %v3284_v47, %s3615_s22  ;;  %v3193_v7 = vunpack.i.h.bf16 %v3191_v63  ;;  %v3192_v62 = vunpack.i.l.bf16 %v3191_v63  ;;  %v3186_v19 = vpop.permute.xlu0 %3185  ;;  %v2803_v20 = vpack.c.bf16 %v1317_v56, %v1310_v59 }
 0x424   :  { %v3188_v21 = vunpack.i.h.bf16 %v3186_v19  ;;  %v3187_v25 = vunpack.i.l.bf16 %v3186_v19 }
 0x425   :  { %v1441_v23 = vsel %vm115_vm4, %v3192_v62, %v3193_v7  ;;  %2804 = vmatpush3.bf16.msra.mxu0 %v2803_v20 }
 0x426   :  { %v3201_v58 = vpop.permute.xlu1 %3200  ;;  %v1434_v24 = vsel %vm107_vm1, %v3187_v25, %v3188_v21 }
 0x427   :  { %3280 = vrot.lane.b32.xlu0 %v4043_v11, %s3621_s28  ;;  %3295 = vrot.lane.b32.xlu1 %v3284_v47, %s3618_s25  ;;  %v3203_v1 = vunpack.i.h.bf16 %v3201_v58  ;;  %v3202_v3 = vunpack.i.l.bf16 %v3201_v58  ;;  %v3196_v13 = vpop.permute.xlu0 %3195  ;;  %v2805_v0 = vpack.c.bf16 %v1441_v23, %v1434_v24 }
 0x428   :  { %v3198_v27 = vunpack.i.h.bf16 %v3196_v13  ;;  %v3197_v28 = vunpack.i.l.bf16 %v3196_v13 }
 0x429   :  { %v1331_v6 = vsel %vm131_vm6, %v3202_v3, %v3203_v1  ;;  %2806 = vmatprep.subr.bf16.mxu0 %v2805_v0 }
 0x42a   :  { %v1324_v11 = vsel %vm123_vm5, %v3197_v28, %v3198_v27 }
 0x42b   :  { %3290 = vrot.lane.b32.xlu0 %v3284_v47, %s3617_s24  ;;  %3305 = vrot.lane.b32.xlu1 %v3284_v47, %s3620_s27  ;;  %v2807_v29 = vpack.c.bf16 %v1331_v6, %v1324_v11 }
 0x42d   :  { %2808 = vmatpush3.bf16.msra.mxu0 %v2807_v29 }
 0x42f   :  { %3300 = vrot.lane.b32.xlu0 %v3284_v47, %s3619_s26  ;;  %3320 = vrot.lane.b32.xlu1 %v4007_v4, %s3619_s26 }
 0x433   :  { %3310 = vrot.lane.b32.xlu0 %v3284_v47, %s3621_s28  ;;  %3325 = vrot.lane.b32.xlu1 %v3284_v47, %s3614_s21 }
 0x437   :  { %3315 = vrot.lane.b32.xlu0 %v4007_v4, %s3618_s25  ;;  %3330 = vrot.lane.b32.xlu1 %v3284_v47, %s3616_s23 }
 0x43b   :  { %3340 = vrot.lane.b32.xlu1 %v3339_v31, %s3617_s24  ;;  %3335 = vrot.lane.b32.xlu0 %v3339_v31, %s3615_s22 }
 0x43f   :  { %3355 = vrot.lane.b32.xlu1 %v3339_v31, %s3619_s26  ;;  %3345 = vrot.lane.b32.xlu0 %v3339_v31, %s3618_s25 }
 0x443   :  { %3360 = vrot.lane.b32.xlu1 %v3900_v60, %s3621_s28  ;;  %3350 = vrot.lane.b32.xlu0 %v3900_v60, %s3620_s27 }
 0x447   :  { %3370 = vrot.lane.b32.xlu1 %v3339_v31, %s3621_s28  ;;  %3365 = vrot.lane.b32.xlu0 %v3339_v31, %s3620_s27 }
 0x44b   :  { %3385 = vrot.lane.b32.xlu1 %v3339_v31, %s3616_s23  ;;  %3375 = vrot.lane.b32.xlu0 %v3339_v31, %s3614_s21 }
 0x44f   :  { %3390 = vrot.lane.b32.xlu1 %v4007_v4, %s3621_s28  ;;  %3380 = vrot.lane.b32.xlu0 %v4007_v4, %s3620_s27 }
 0x453   :  { %3400 = vrot.lane.b32.xlu1 %v4007_v4, %s3616_s23  ;;  %3395 = vrot.lane.b32.xlu0 %v4007_v4, %s3614_s21 }
 0x479   :  { %v3216_v60 = vpop.permute.xlu1 %3215  ;;  %v3206_v33 = vpop.permute.xlu0 %3205 }
 0x47a   :  { %v3208_v43 = vunpack.i.h.bf16 %v3206_v33  ;;  %v3207_v44 = vunpack.i.l.bf16 %v3206_v33  ;;  %v3218_v7 = vunpack.i.h.bf16 %v3216_v60  ;;  %v3217_v62 = vunpack.i.l.bf16 %v3216_v60 }
 0x47c   :  { %v761_v50 = vsel %vm107_vm1, %v3207_v44, %v3208_v43  ;;  %v775_v24 = vsel %vm123_vm5, %v3217_v62, %v3218_v7 }
 0x47d   :  { %v3226_v34 = vpop.permute.xlu1 %3225  ;;  %v3211_v10 = vpop.permute.xlu0 %3210  ;;  %v2745_v57 = vpack.c.bf16 %v761_v50, %v4023_v35 }
 0x47e   :  { %v3213_v59 = vunpack.i.h.bf16 %v3211_v10  ;;  %v3212_v63 = vunpack.i.l.bf16 %v3211_v10  ;;  %v3228_v0 = vunpack.i.h.bf16 %v3226_v34  ;;  %v3227_v27 = vunpack.i.l.bf16 %v3226_v34 }
 0x480   :  { %v768_v23 = vsel %vm115_vm4, %v3212_v63, %v3213_v59 }
 0x481   :  { %v4128_v37 = vpop.permute.xlu1 %3230  ;;  %v3221_v38 = vpop.permute.xlu0 %3220  ;;  %v2749_v13 = vpack.c.bf16 %v775_v24, %v768_v23 }
 0x482   :  { %v3223_v28 = vunpack.i.h.bf16 %v3221_v38  ;;  %v3222_v6 = vunpack.i.l.bf16 %v3221_v38  ;;  %v3233_v43 = vunpack.i.h.bf16 %v4128_v37 }
 0x484   :  { %v782_v34 = vsel %vm131_vm6, %v3222_v6, %v3223_v28 }
 0x485   :  { %v3251_v39 = vpop.permute.xlu1 %3250  ;;  %v3236_v40 = vpop.permute.xlu0 %3235 }
 0x486   :  { %v3253_v45 = vunpack.i.h.bf16 %v3251_v39  ;;  %v3252_v46 = vunpack.i.l.bf16 %v3251_v39  ;;  %v3238_v30 = vunpack.i.h.bf16 %v3236_v40  ;;  %v3237_v31 = vunpack.i.l.bf16 %v3236_v40 }
 0x487   :  { %v789_v39 = vsel %vm139_vm7, %v3227_v27, %v3228_v0 }
 0x488   :  { %v889_v52 = vsel %vm163_vm3, %v3252_v46, %v3253_v45  ;;  %v803_v40 = vsel %vm155_vm2, %v3237_v31, %v3238_v30 }
 0x489   :  { %v4130_v41 = vpop.permute.xlu1 %3260  ;;  %v4132_v42 = vpop.permute.xlu0 %3240 }
 0x48d   :  { %v4134_v47 = vpop.permute.xlu1 %3270  ;;  %v3246_v4 = vpop.permute.xlu0 %3245 }
 0x48e   :  { %v3248_v48 = vunpack.i.h.bf16 %v3246_v4  ;;  %v3247_v49 = vunpack.i.l.bf16 %v3246_v4  ;;  %v3243_v4 = vunpack.i.h.bf16 %v4132_v42 }
 0x490   :  { %v882_v51 = vsel %vm155_vm2, %v3247_v49, %v3248_v48  ;;  %v3242_v48 = vunpack.i.l.bf16 %v4132_v42  ;;  %v3263_v42 = vunpack.i.h.bf16 %v4130_v41 }
 0x491   :  { %v4139_v54 = vpop.permute.xlu1 %3275  ;;  %v4141_v55 = vpop.permute.xlu0 %3255  ;;  %v2743_v56 = vpack.c.bf16 %v889_v52, %v882_v51  ;;  %v2753_v52 = vpack.c.bf16 %v789_v39, %v782_v34  ;;  %v3272_v34 = vunpack.i.l.bf16 %v4134_v47 }
 0x492   :  { %v3258_v59 = vunpack.i.h.bf16 %v4141_v55  ;;  %v3257_v63 = vunpack.i.l.bf16 %v4141_v55 }
 0x493   :  { %2744 = vmatprep.subr.bf16.mxu1 %v2743_v56 }
 0x494   :  { %2746 = vmatpush3.bf16.msra.mxu1 %v2745_v57  ;;  %v840_v0 = vsel %vm107_vm1, %v3257_v63, %v3258_v59  ;;  %v3278_v59 = vunpack.i.h.bf16 %v4139_v54  ;;  %v3277_v63 = vunpack.i.l.bf16 %v4139_v54 }
 0x495   :  { %v3286_v19 = vpop.permute.xlu1 %3285  ;;  %v4144_v20 = vpop.permute.xlu0 %3265 }
 0x496   :  { %v3288_v21 = vunpack.i.h.bf16 %v3286_v19  ;;  %v3287_v25 = vunpack.i.l.bf16 %v3286_v19  ;;  %v3268_v27 = vunpack.i.h.bf16 %v4144_v20  ;;  %v3267_v28 = vunpack.i.l.bf16 %v4144_v20 }
 0x497   :  { %v3273_v20 = vunpack.i.h.bf16 %v4134_v47 }
 0x498   :  { %v919_v58 = vsel %vm107_vm1, %v3287_v25, %v3288_v21  ;;  %v3262_v21 = vunpack.i.l.bf16 %v4130_v41  ;;  %v810_v25 = vsel %vm163_vm3, %v3242_v48, %v3243_v4 }
 0x499   :  { %v3296_v1 = vpop.permute.xlu1 %3295  ;;  %v4149_v3 = vpop.permute.xlu0 %3280  ;;  %v2747_v35 = vpack.c.bf16 %v919_v58, %v4050_v2  ;;  %v3232_v2 = vunpack.i.l.bf16 %v4128_v37  ;;  %v2761_v31 = vpack.c.bf16 %v4036_v53, %v810_v25 }
 0x49a   :  { %v3298_v11 = vunpack.i.h.bf16 %v3296_v1  ;;  %v3297_v29 = vunpack.i.l.bf16 %v3296_v1  ;;  %v847_v30 = vsel %vm115_vm4, %v3262_v21, %v3263_v42  ;;  %v3282_v4 = vunpack.i.l.bf16 %v4149_v3 }
 0x49b   :  { %2748 = vmatprep.subr.bf16.mxu1 %v2747_v35  ;;  %v796_v57 = vsel %vm147_vm8, %v3232_v2, %v3233_v43 }
 0x49c   :  { %2750 = vmatpush3.bf16.msra.mxu1 %v2749_v13  ;;  %v933_v46 = vsel %vm123_vm5, %v3297_v29, %v3298_v11  ;;  %v2757_v7 = vpack.c.bf16 %v803_v40, %v796_v57  ;;  %v3283_v40 = vunpack.i.h.bf16 %v4149_v3  ;;  %v861_v57 = vsel %vm131_vm6, %v3272_v34, %v3273_v20  ;;  %v1486_v20 = vld [vmem:[%s4474_s1] sm:$0xff] }
 0x49d   :  { %v3306_v32 = vpop.permute.xlu1 %3305  ;;  %v3291_v60 = vpop.permute.xlu0 %3290 }
 0x49e   :  { %v3293_v33 = vunpack.i.h.bf16 %v3291_v60  ;;  %v3292_v10 = vunpack.i.l.bf16 %v3291_v60  ;;  %v3308_v44 = vunpack.i.h.bf16 %v3306_v32  ;;  %v3307_v38 = vunpack.i.l.bf16 %v3306_v32 }
 0x4a0   :  { %v926_v45 = vsel %vm115_vm4, %v3292_v10, %v3293_v33  ;;  %v947_v19 = vsel %vm139_vm7, %v3307_v38, %v3308_v44  ;;  %v2765_v44 = vpack.c.bf16 %v847_v30, %v840_v0  ;;  %v854_v38 = vsel %vm123_vm5, %v3267_v28, %v3268_v27 }
 0x4a1   :  { %v3321_v49 = vpop.permute.xlu1 %3320  ;;  %v3301_v50 = vpop.permute.xlu0 %3300  ;;  %v2751_v51 = vpack.c.bf16 %v933_v46, %v926_v45 }
 0x4a2   :  { %v3303_v56 = vunpack.i.h.bf16 %v3301_v50  ;;  %v3302_v37 = vunpack.i.l.bf16 %v3301_v50  ;;  %v3323_v6 = vunpack.i.h.bf16 %v3321_v49  ;;  %v3322_v11 = vunpack.i.l.bf16 %v3321_v49 }
 0x4a3   :  { %2752 = vmatprep.subr.bf16.mxu1 %v2751_v51 }
 0x4a4   :  { %2754 = vmatpush3.bf16.msra.mxu1 %v2753_v52  ;;  %v940_v62 = vsel %vm131_vm6, %v3302_v37, %v3303_v56  ;;  %v1455_v46 = vsel %vm131_vm6, %v3322_v11, %v3323_v6 }
 0x4a5   :  { %v3326_v23 = vpop.permute.xlu1 %3325  ;;  %v3311_v58 = vpop.permute.xlu0 %3310  ;;  %v2755_v24 = vpack.c.bf16 %v947_v19, %v940_v62  ;;  %v2769_v62 = vpack.c.bf16 %v861_v57, %v854_v38 }
 0x4a6   :  { %v3328_v1 = vunpack.i.h.bf16 %v3326_v23  ;;  %v3327_v35 = vunpack.i.l.bf16 %v3326_v23  ;;  %v3313_v13 = vunpack.i.h.bf16 %v3311_v58  ;;  %v3312_v55 = vunpack.i.l.bf16 %v3311_v58 }
 0x4a7   :  { %2756 = vmatprep.subr.bf16.mxu1 %v2755_v24 }
 0x4a8   :  { %2758 = vmatpush3.bf16.msra.mxu1 %v2757_v7  ;;  %v954_v41 = vsel %vm147_vm8, %v3312_v55, %v3313_v13  ;;  %v961_v29 = vsel %vm155_vm2, %v3327_v35, %v3328_v1  ;;  %v868_v1 = vsel %vm139_vm7, %v3277_v63, %v3278_v59  ;;  %v4217_v63 = vld [vmem:[%s4476_s3 + $0x10] sm:$0xff] }
 0x4a9   :  { %v3331_v32 = vpop.permute.xlu1 %3330  ;;  %v3316_v60 = vpop.permute.xlu0 %3315  ;;  %v2759_v33 = vpack.c.bf16 %v961_v29, %v954_v41 }
 0x4aa   :  { %v3333_v10 = vunpack.i.h.bf16 %v3331_v32  ;;  %v3332_v39 = vunpack.i.l.bf16 %v3331_v32  ;;  %v3318_v43 = vunpack.i.h.bf16 %v3316_v60  ;;  %v3317_v2 = vunpack.i.l.bf16 %v3316_v60 }
 0x4ab   :  { %2760 = vmatprep.subr.bf16.mxu1 %v2759_v33 }
 0x4ac   :  { %2762 = vmatpush3.bf16.msra.mxu1 %v2761_v31  ;;  %v968_v45 = vsel %vm163_vm3, %v3332_v39, %v3333_v10  ;;  %v1448_v53 = vsel %vm123_vm5, %v3317_v2, %v3318_v43  ;;  %v4199_v31 = vld [vmem:[%s4476_s3] sm:$0xff] }
 0x4ad   :  { %v3341_v48 = vpop.permute.xlu1 %3340  ;;  %v3336_v49 = vpop.permute.xlu0 %3335  ;;  %v2763_v50 = vpack.c.bf16 %v4093_v5, %v968_v45  ;;  %v2809_v47 = vpack.c.bf16 %v1455_v46, %v1448_v53  ;;  %v875_v5 = vsel %vm147_vm8, %v3282_v4, %v3283_v40 }
 0x4ae   :  { %v3343_v51 = vunpack.i.h.bf16 %v3341_v48  ;;  %v3342_v52 = vunpack.i.l.bf16 %v3341_v48  ;;  %v3338_v56 = vunpack.i.h.bf16 %v3336_v49  ;;  %v3337_v37 = vunpack.i.l.bf16 %v3336_v49 }
 0x4af   :  { %2764 = vmatprep.subr.bf16.mxu1 %v2763_v50  ;;  %2810 = vmatprep.subr.bf16.mxu0 %v2809_v47  ;;  %v2773_v13 = vpack.c.bf16 %v875_v5, %v868_v1  ;;  %v1488_v1 = vld [vmem:[%s4474_s1 + $0x10] sm:$0xff] }
 0x4b0   :  { %2766 = vmatpush3.bf16.msra.mxu1 %v2765_v44  ;;  %v998_v3 = vsel %vm107_vm1, %v3337_v37, %v3338_v56  ;;  %v1005_v7 = vsel %vm115_vm4, %v3342_v52, %v3343_v51 }
 0x4b1   :  { %v3356_v19 = vpop.permute.xlu1 %3355  ;;  %v3346_v42 = vpop.permute.xlu0 %3345  ;;  %v2767_v21 = vpack.c.bf16 %v1005_v7, %v998_v3 }
 0x4b2   :  { %v3358_v25 = vunpack.i.h.bf16 %v3356_v19  ;;  %v3357_v23 = vunpack.i.l.bf16 %v3356_v19  ;;  %v3348_v58 = vunpack.i.h.bf16 %v3346_v42  ;;  %v3347_v24 = vunpack.i.l.bf16 %v3346_v42 }
 0x4b3   :  { %2768 = vmatprep.subr.bf16.mxu1 %v2767_v21 }
 0x4b4   :  { %2770 = vmatpush3.bf16.msra.mxu1 %v2769_v62  ;;  %v1012_v54 = vsel %vm123_vm5, %v3347_v24, %v3348_v58  ;;  %v1019_v35 = vsel %vm131_vm6, %v3357_v23, %v3358_v25 }
 0x4b5   :  { %v3361_v55 = vpop.permute.xlu1 %3360  ;;  %v3351_v0 = vpop.permute.xlu0 %3350  ;;  %v2771_v27 = vpack.c.bf16 %v1019_v35, %v1012_v54 }
 0x4b6   :  { %v3363_v28 = vunpack.i.h.bf16 %v3361_v55  ;;  %v3362_v6 = vunpack.i.l.bf16 %v3361_v55  ;;  %v3353_v11 = vunpack.i.h.bf16 %v3351_v0  ;;  %v3352_v41 = vunpack.i.l.bf16 %v3351_v0 }
 0x4b7   :  { %2772 = vmatprep.subr.bf16.mxu1 %v2771_v27 }
 0x4b8   :  { %v1345_v29 = vsel %vm147_vm8, %v3362_v6, %v3363_v28  ;;  %v1338_v30 = vsel %vm139_vm7, %v3352_v41, %v3353_v11  ;;  %2774 = vmatpush3.bf16.msra.mxu1 %v2773_v13 }
 0x4b9   :  { %v2811_v32 = vpack.c.bf16 %v1345_v29, %v1338_v30  ;;  %v3371_v60 = vpop.permute.xlu1 %3370  ;;  %v3366_v33 = vpop.permute.xlu0 %3365  ;;  %2775 = vmatprep.subr.bf16.mxu1 %v3622_v12 }
 0x4ba   :  { %v3373_v10 = vunpack.i.h.bf16 %v3371_v60  ;;  %v3372_v39 = vunpack.i.l.bf16 %v3371_v60  ;;  %v3368_v43 = vunpack.i.h.bf16 %v3366_v33  ;;  %v3367_v2 = vunpack.i.l.bf16 %v3366_v33 }
 0x4bb   :  { %2812 = vmatpush3.bf16.msra.mxu0 %v2811_v32  ;;  %1157 = vmatmul.mubr.f32.vlgmr.msra.gmra.mrb[6].mxu1 %v4199_v31 }
 0x4bc   :  { %v1033_v34 = vsel %vm147_vm8, %v3372_v39, %v3373_v10  ;;  %v1026_v44 = vsel %vm139_vm7, %v3367_v2, %v3368_v43  ;;  %2640 = vmatprep.mubr.msk.f32.mxu1 %vm3623_vm0, %v3624_v14  ;;  %v2402_v2 = vld [vmem:[%s4473_s0 + $0x40] sm:$0xff] }
 0x4bd   :  { %v2776_v38 = vpack.c.bf16 %v1033_v34, %v1026_v44  ;;  %v3386_v45 = vpop.permute.xlu1 %3385  ;;  %v3376_v53 = vpop.permute.xlu0 %3375  ;;  %v2404_v34 = vld [vmem:[%s4473_s0 + $0x50] sm:$0xff]  ;;  %v2405_v44 = vld [vmem:[%s4473_s0 + $0x58] sm:$0xff] }
 0x4be   :  { %v3388_v46 = vunpack.i.h.bf16 %v3386_v45  ;;  %v3387_v40 = vunpack.i.l.bf16 %v3386_v45  ;;  %v3378_v4 = vunpack.i.h.bf16 %v3376_v53  ;;  %v3377_v48 = vunpack.i.l.bf16 %v3376_v53  ;;  %1593 = vmatmul.mubr.f32.vlgmr.msra.gmra.mrb[2].mxu0 %v1486_v20  ;;  %v2403_v20 = vld [vmem:[%s4473_s0 + $0x48] sm:$0xff]  ;;  %v2408_v53 = vld [vmem:[%s4473_s0 + $0x70] sm:$0xff] }
 0x4bf   :  { %2777 = vmatpush3.bf16.msra.mxu1 %v2776_v38  ;;  %2283 = vmatprep.mubr.f32.mxu0 %v4104_v9  ;;  %v2406_v38 = vld [vmem:[%s4473_s0 + $0x60] sm:$0xff]  ;;  %v2407_v45 = vld [vmem:[%s4473_s0 + $0x68] sm:$0xff] }
 0x4c0   :  { %v1047_v49 = vsel %vm163_vm3, %v3387_v40, %v3388_v46  ;;  %v1040_v50 = vsel %vm155_vm2, %v3377_v48, %v3378_v4  ;;  %2778 = vmatprep.subr.bf16.mxu1 %v3622_v12  ;;  %v2409_v46 = vld [vmem:[%s4473_s0 + $0x78] sm:$0xff] }
 0x4c1   :  { %v2779_v47 = vpack.c.bf16 %v1047_v49, %v1040_v50  ;;  %v3391_v51 = vpop.permute.xlu1 %3390  ;;  %v3381_v52 = vpop.permute.xlu0 %3380 }
 0x4c2   :  { %v3393_v56 = vunpack.i.h.bf16 %v3391_v51  ;;  %v3392_v37 = vunpack.i.l.bf16 %v3391_v51  ;;  %v3383_v57 = vunpack.i.h.bf16 %v3381_v52  ;;  %v3382_v59 = vunpack.i.l.bf16 %v3381_v52 }
 0x4c3   :  { %2780 = vmatpush3.bf16.msra.mxu1 %v2779_v47 }
 0x4c4   :  { %v1469_v9 = vsel %vm147_vm8, %v3392_v37, %v3393_v56  ;;  %v1462_v3 = vsel %vm139_vm7, %v3382_v59, %v3383_v57  ;;  %2813 = vmatprep.subr.bf16.mxu1 %v3622_v12 }
 0x4c5   :  { %v2814_v7 = vpack.c.bf16 %v1469_v9, %v1462_v3  ;;  %v3401_v62 = vpop.permute.xlu1 %3400  ;;  %v3396_v5 = vpop.permute.xlu0 %3395 }
 0x4c6   :  { %v3403_v19 = vunpack.i.h.bf16 %v3401_v62  ;;  %v3402_v42 = vunpack.i.l.bf16 %v3401_v62  ;;  %v3398_v21 = vunpack.i.h.bf16 %v3396_v5  ;;  %v3397_v25 = vunpack.i.l.bf16 %v3396_v5  ;;  %2641 = vmatmul.mubr.msk.f32.vlgmr.msra.gmra.mrb[8].mxu1 %vm392_vm9, %v4217_v63 }
 0x4c7   :  { %2815 = vmatpush3.bf16.msra.mxu1 %v2814_v7  ;;  %2651 = vmatprep.mubr.msk.f32.mxu1 %vm3623_vm0, %v3624_v14 }
 0x4c8   :  { %v1483_v23 = vsel %vm163_vm3, %v3402_v42, %v3403_v19  ;;  %v1476_v58 = vsel %vm155_vm2, %v3397_v25, %v3398_v21  ;;  %2816 = vmatprep.subr.bf16.mxu1 %v3622_v12 }
 0x4c9   :  { %v2817_v24 = vpack.c.bf16 %v1483_v23, %v1476_v58 }
 0x4cb   :  { %2818 = vmatpush3.bf16.msra.mxu1 %v2817_v24 }
 0x4ce   :  { %2652 = vmatmul.mubr.msk.f32.vlgmr.msra.gmra.mrb[10].mxu1 %vm392_vm9, %v1488_v1 }
 0x58e   :  { %v2496_v54 = vpop.f32.mrb[6].mxu1 }
 0x58f   :  { %v2497_v35 = vpop.f32.mrb[7].mxu1 }
 0x590   :  { %v4233_v13 = vadd.f32 %v2497_v35, %v2496_v54 }
 0x591   :  { %v2536_v55 = vpop.f32.mrb[2].mxu0 }
 0x592   :  { %v2537_v0 = vpop.f32.mrb[3].mxu0 }
 0x593   :  { %v2538_v27 = vadd.f32 %v2537_v0, %v2536_v55 }
 0x595   :  { %v1595_v11 = vadd.f32 %v2538_v27, %v3812_v61 }
 0x599   :  { %v4235_v28 = vpop.f32.mrb[8].mxu1 }
 0x59a   :  { %v2642_v6 = vpop.f32.mrb[9].mxu1 }
 0x5a1   :  { %v1664_v41 = vpop.f32.mrb[10].mxu1 }
 0x5a2   :  { %v1665_v29 = vadd.f32 %v1664_v41, %v1595_v11  ;;  %v2653_v30 = vpop.f32.mrb[11].mxu1 }
 0x5a4   :  { %vm1668_vm15 = vcmp.ge.f32.partialorder %v1665_v29, 0.0  ;;  %v1669_v32 = vmul.f32 %v1665_v29, %v537_v8  ;;  %v1739_v8 = vld [vmem:[%s4475_s2] sm:$0xff] }
 0x5a5   :  { %2672 = vmatprep.mubr.msk.f32.mxu1 %vm623_vm14, %v1739_v8 }
 0x5a6   :  { %v4240_v60 = vsel %vm1668_vm15, %v1665_v29, %v1669_v32  ;;  %v1740_v32 = vld [vmem:[%s4475_s2 + $0x8] sm:$0xff] }
 0x5a7   :  { %v1671_v33 = vsel %vm3818_vm10, %v4240_v60, 0.0 }
 0x5a8   :  { %1673 = vrot.lane.b32.xlu0 %v1671_v33, %s3626_s18  ;;  %v1741_v33 = vld [vmem:[%s4475_s2 + $0x10] sm:$0xff] }
 0x61a   :  { %v1674_v10 = vpop.permute.xlu0 %1673 }
 0x61b   :  { %1676 = vst.msk [vmem:[#allocation3] sm:$0xff] %vm545_vm12, %v1674_v10 }
 0x61c   :  { %1677 = vst.msk [vmem:[#allocation3 + $0x8] sm:$0xff] %vm547_vm13, %v1674_v10  ;;  %v1742_v10 = vld [vmem:[%s4475_s2 + $0x18] sm:$0xff] }
 0x622   :  { %v1678_v61 = vld [vmem:[#allocation3] sm:$0xff] }
 0x623   :  { %v1679_v39 = vld [vmem:[#allocation3 + $0x8] sm:$0xff] }
 0x624   :  { %v3409_v43 = vpack.i.bf16 %v1679_v39, %v1678_v61 }
 0x626   :  { %3410 = vrot.lane.b32.xlu0 %v3409_v43, %s3617_s24  ;;  %3405 = vrot.lane.b32.xlu1 %v3409_v43, %s3615_s22 }
 0x62a   :  { %3420 = vrot.lane.b32.xlu0 %v3409_v43, %s3619_s26  ;;  %3415 = vrot.lane.b32.xlu1 %v3409_v43, %s3618_s25 }
 0x62e   :  { %3430 = vrot.lane.b32.xlu0 %v3409_v43, %s3621_s28  ;;  %3425 = vrot.lane.b32.xlu1 %v3409_v43, %s3620_s27 }
 0x632   :  { %1732 = vrot.lane.b32.xlu0 %v1678_v61, %s3616_s23  ;;  %3435 = vrot.lane.b32.xlu1 %v3409_v43, %s3614_s21 }
 0x636   :  { %1734 = vrot.lane.b32.xlu1 %v1679_v39, %s3616_s23  ;;  %1865 = vrot.lane.b32.xlu0 %v2402_v2, %s3619_s26 }
 0x63a   :  { %1867 = vrot.lane.b32.xlu1 %v2403_v20, %s3619_s26  ;;  %1944 = vrot.lane.b32.xlu0 %v2404_v34, %s3619_s26 }
 0x63e   :  { %1946 = vrot.lane.b32.xlu1 %v2405_v44, %s3619_s26  ;;  %2023 = vrot.lane.b32.xlu0 %v2406_v38, %s3619_s26 }
 0x642   :  { %2025 = vrot.lane.b32.xlu1 %v2407_v45, %s3619_s26  ;;  %2102 = vrot.lane.b32.xlu0 %v2408_v53, %s3619_s26 }
 0x646   :  { %2104 = vrot.lane.b32.xlu1 %v2409_v46, %s3619_s26 }
 0x698   :  { %v3411_v40 = vpop.permute.xlu0 %3410  ;;  %v3406_v4 = vpop.permute.xlu1 %3405 }
 0x699   :  { %v3408_v48 = vunpack.i.h.bf16 %v3406_v4  ;;  %v3407_v49 = vunpack.i.l.bf16 %v3406_v4  ;;  %v3413_v50 = vunpack.i.h.bf16 %v3411_v40  ;;  %v3412_v47 = vunpack.i.l.bf16 %v3411_v40 }
 0x69b   :  { %v1687_v51 = vsel %vm107_vm1, %v3407_v49, %v3408_v48  ;;  %v1694_v7 = vsel %vm115_vm4, %v3412_v47, %v3413_v50 }
 0x69c   :  { %v3421_v52 = vpop.permute.xlu0 %3420  ;;  %v3416_v56 = vpop.permute.xlu1 %3415  ;;  %v2819_v37 = vpack.c.bf16 %v1687_v51, %v1678_v61 }
 0x69d   :  { %v3418_v57 = vunpack.i.h.bf16 %v3416_v56  ;;  %v3417_v59 = vunpack.i.l.bf16 %v3416_v56  ;;  %v3423_v9 = vunpack.i.h.bf16 %v3421_v52  ;;  %v3422_v3 = vunpack.i.l.bf16 %v3421_v52 }
 0x69e   :  { %2820 = vmatprep.subr.bf16.mxu1 %v2819_v37 }
 0x69f   :  { %2822 = vmatpush3.bf16.msra.mxu1 %v2819_v37  ;;  %v1701_v62 = vsel %vm123_vm5, %v3417_v59, %v3418_v57  ;;  %v1708_v24 = vsel %vm131_vm6, %v3422_v3, %v3423_v9 }
 0x6a0   :  { %v3431_v5 = vpop.permute.xlu0 %3430  ;;  %v3426_v19 = vpop.permute.xlu1 %3425  ;;  %v2823_v42 = vpack.c.bf16 %v1701_v62, %v1694_v7 }
 0x6a1   :  { %v3428_v21 = vunpack.i.h.bf16 %v3426_v19  ;;  %v3427_v25 = vunpack.i.l.bf16 %v3426_v19  ;;  %v3433_v23 = vunpack.i.h.bf16 %v3431_v5  ;;  %v3432_v58 = vunpack.i.l.bf16 %v3431_v5 }
 0x6a2   :  { %2824 = vmatprep.subr.bf16.mxu1 %v2823_v42 }
 0x6a3   :  { %2826 = vmatpush3.bf16.msra.mxu1 %v2823_v42  ;;  %v1715_v1 = vsel %vm139_vm7, %v3427_v25, %v3428_v21  ;;  %v1722_v27 = vsel %vm147_vm8, %v3432_v58, %v3433_v23 }
 0x6a4   :  { %v3436_v54 = vpop.permute.xlu1 %3435  ;;  %v2827_v35 = vpack.c.bf16 %v1715_v1, %v1708_v24  ;;  %v1733_v29 = vpop.permute.xlu0 %1732 }
 0x6a5   :  { %v3438_v55 = vunpack.i.h.bf16 %v3436_v54  ;;  %v3437_v0 = vunpack.i.l.bf16 %v3436_v54 }
 0x6a6   :  { %2828 = vmatprep.subr.bf16.mxu1 %v2827_v35 }
 0x6a7   :  { %2830 = vmatpush3.bf16.msra.mxu1 %v2827_v35  ;;  %v1729_v6 = vsel %vm155_vm2, %v3437_v0, %v3438_v55 }
 0x6a8   :  { %v1735_v11 = vpop.permute.xlu1 %1734  ;;  %v2831_v41 = vpack.c.bf16 %v1729_v6, %v1722_v27  ;;  %v1866_v61 = vpop.permute.xlu0 %1865 }
 0x6a9   :  { %v1736_v30 = vsel %vm163_vm3, %v1733_v29, %v1735_v11  ;;  %v87_v29 = vld [vmem:[%s4479_s6] sm:$0xff]  ;;  %s2370_s6 = sld [smem:[#allocation4 + $0x2]] }
 0x6aa   :  { %2832 = vmatprep.subr.bf16.mxu1 %v2831_v41 }
 0x6ab   :  { %2834 = vmatpush3.bf16.msra.mxu1 %v2831_v41 }
 0x6ac   :  { %2670 = vmatprep.subr.mxu1 %v1736_v30  ;;  %v1868_v39 = vpop.permute.xlu1 %1867  ;;  %v1945_v43 = vpop.permute.xlu0 %1944 }
 0x6af   :  { %2671 = vmatpush3.msra.mxu1 %v1736_v30 }
 0x6b0   :  { %2673 = vmatmul.mubr.msk.f32.vlgmr.msra.gmra.mrb[12].mxu1 %vm623_vm14, %v1740_v32  ;;  %2867 = vmatprep.subr.bf16.mxu1 %v3622_v12  ;;  %v1947_v8 = vpop.permute.xlu1 %1946  ;;  %v2024_v2 = vpop.permute.xlu0 %2023 }
 0x6b1   :  { %2675 = vmatprep.mubr.msk.f32.mxu1 %vm623_vm14, %v1741_v33  ;;  %v1948_v53 = vsel %vm131_vm6, %v1945_v43, %v1947_v8 }
 0x6b4   :  { %2676 = vmatmul.mubr.msk.f32.gmra.mrb[14].mxu1 %vm623_vm14, %v1742_v10  ;;  %v2026_v20 = vpop.permute.xlu1 %2025  ;;  %v2103_v40 = vpop.permute.xlu0 %2102 }
 0x6b5   :  { %2686 = vmatprep.mubr.msk.f32.mxu1 %vm3623_vm0, %v3624_v14  ;;  %v1869_v14 = vsel %vm131_vm6, %v1866_v61, %v1868_v39  ;;  %v2027_v59 = vsel %vm131_vm6, %v2024_v2, %v2026_v20 }
 0x6b8   :  { %v2105_v49 = vpop.permute.xlu1 %2104 }
 0x6b9   :  { %v2106_v37 = vsel %vm131_vm6, %v2103_v40, %v2105_v49 }
 0x783   :  { %v2674_v34 = vpop.f32.mrb[12].mxu1 }
 0x784   :  { %v1836_v44 = vadd.f32 %v2674_v34, %v3929_v15  ;;  %v1830_v38 = vpop.f32.mrb[13].mxu1 }
 0x785   :  { %v1831_v45 = vadd.f32 %v1830_v38, %v3931_v18 }
 0x786   :  { %vm1850_vm11 = vcmp.ge.f32.partialorder %v1836_v44, 0.0  ;;  %v1854_v46 = vmul.f32 %v1836_v44, %v3940_v36 }
 0x787   :  { %vm1849_vm0 = vcmp.ge.f32.partialorder %v1831_v45, 0.0  ;;  %v1853_v4 = vmul.f32 %v1831_v45, %v3940_v36  ;;  %v2677_v48 = vpop.f32.mrb[14].mxu1 }
 0x788   :  { %v1858_v50 = vsel %vm1850_vm11, %v1836_v44, %v1854_v46  ;;  %v1846_v47 = vadd.f32 %v2677_v48, %v3935_v26  ;;  %v1840_v15 = vpop.f32.mrb[15].mxu1 }
 0x789   :  { %v1857_v51 = vsel %vm1849_vm0, %v1831_v45, %v1853_v4  ;;  %v1841_v18 = vadd.f32 %v1840_v15, %v3933_v22  ;;  %v1950_v52 = vsub.f32 %v1858_v50, %v1948_v53 }
 0x78a   :  { %vm1852_vm14 = vcmp.ge.f32.partialorder %v1846_v47, 0.0  ;;  %v1856_v56 = vmul.f32 %v1846_v47, %v3940_v36  ;;  %v1871_v57 = vsub.f32 %v1857_v51, %v1869_v14 }
 0x78b   :  { %vm1851_vm15 = vcmp.ge.f32.partialorder %v1841_v18, 0.0  ;;  %v1855_v9 = vmul.f32 %v1841_v18, %v3940_v36  ;;  %v1951_v3 = vsel %vm3818_vm10, %v1950_v52, 0.0 }
 0x78c   :  { %v1860_v26 = vsel %vm1852_vm14, %v1846_v47, %v1856_v56  ;;  %1953 = vrot.lane.b32.xlu1 %v1951_v3, %s3626_s18  ;;  %v1872_v22 = vsel %vm3818_vm10, %v1871_v57, 0.0 }
 0x78d   :  { %v1859_v7 = vsel %vm1851_vm15, %v1841_v18, %v1855_v9  ;;  %v2108_v62 = vsub.f32 %v1860_v26, %v2106_v37  ;;  %1874 = vrot.lane.b32.xlu0 %v1872_v22, %s3626_s18 }
 0x78e   :  { %v2029_v5 = vsub.f32 %v1859_v7, %v2027_v59 }
 0x78f   :  { %v2109_v19 = vsel %vm3818_vm10, %v2108_v62, 0.0 }
 0x790   :  { %2111 = vrot.lane.b32.xlu1 %v2109_v19, %s3626_s18  ;;  %v2030_v36 = vsel %vm3818_vm10, %v2029_v5, 0.0 }
 0x791   :  { %2032 = vrot.lane.b32.xlu0 %v2030_v36, %s3626_s18 }
 0x7fe   :  { %v1954_v21 = vpop.permute.xlu1 %1953 }
 0x7ff   :  { %v1875_v42 = vpop.permute.xlu0 %1874 }
 0x800   :  { %1877 = vst.msk [vmem:[#allocation3] sm:$0xff] %vm545_vm12, %v1875_v42 }
 0x801   :  { %1878 = vst.msk [vmem:[#allocation3 + $0x8] sm:$0xff] %vm547_vm13, %v1875_v42 }
 0x802   :  { %v2112_v35 = vpop.permute.xlu1 %2111 }
 0x803   :  { %v2033_v1 = vpop.permute.xlu0 %2032 }
 0x807   :  { %v4342_v25 = vld [vmem:[#allocation3] sm:$0xff] }
 0x808   :  { %v1880_v23 = vld [vmem:[#allocation3 + $0x8] sm:$0xff]  ;;  %1956 = vst.msk [vmem:[#allocation3] sm:$0xff] %vm545_vm12, %v1954_v21 }
 0x809   :  { %1957 = vst.msk [vmem:[#allocation3 + $0x8] sm:$0xff] %vm547_vm13, %v1954_v21  ;;  %v3449_v58 = vpack.i.bf16 %v1880_v23, %v4342_v25 }
 0x80b   :  { %3450 = vrot.lane.b32.xlu1 %v3449_v58, %s3618_s25  ;;  %3440 = vrot.lane.b32.xlu0 %v3449_v58, %s3615_s22 }
 0x80f   :  { %3460 = vrot.lane.b32.xlu1 %v3449_v58, %s3620_s27  ;;  %3445 = vrot.lane.b32.xlu0 %v3449_v58, %s3617_s24  ;;  %v4351_v16 = vld [vmem:[#allocation3] sm:$0xff] }
 0x810   :  { %v1959_v24 = vld [vmem:[#allocation3 + $0x8] sm:$0xff]  ;;  %2035 = vst.msk [vmem:[#allocation3] sm:$0xff] %vm545_vm12, %v2033_v1 }
 0x811   :  { %2036 = vst.msk [vmem:[#allocation3 + $0x8] sm:$0xff] %vm547_vm13, %v2033_v1  ;;  %v3484_v54 = vpack.i.bf16 %v1959_v24, %v4351_v16 }
 0x813   :  { %3470 = vrot.lane.b32.xlu1 %v3449_v58, %s3614_s21  ;;  %3455 = vrot.lane.b32.xlu0 %v3449_v58, %s3619_s26 }
 0x817   :  { %3465 = vrot.lane.b32.xlu0 %v3449_v58, %s3621_s28  ;;  %3485 = vrot.lane.b32.xlu1 %v3484_v54, %s3616_s23  ;;  %v4360_v55 = vld [vmem:[#allocation3] sm:$0xff] }
 0x818   :  { %v2038_v0 = vld [vmem:[#allocation3 + $0x8] sm:$0xff]  ;;  %2114 = vst.msk [vmem:[#allocation3] sm:$0xff] %vm545_vm12, %v2112_v35 }
 0x819   :  { %2115 = vst.msk [vmem:[#allocation3 + $0x8] sm:$0xff] %vm547_vm13, %v2112_v35  ;;  %v3509_v27 = vpack.i.bf16 %v2038_v0, %v4360_v55 }
 0x81b   :  { %3475 = vrot.lane.b32.xlu0 %v3449_v58, %s3616_s23  ;;  %3495 = vrot.lane.b32.xlu1 %v3484_v54, %s3617_s24 }
 0x81f   :  { %3505 = vrot.lane.b32.xlu1 %v3484_v54, %s3619_s26  ;;  %3480 = vrot.lane.b32.xlu0 %v3484_v54, %s3614_s21  ;;  %v4379_v6 = vld [vmem:[#allocation3] sm:$0xff] }
 0x820   :  { %v2117_v11 = vld [vmem:[#allocation3 + $0x8] sm:$0xff] }
 0x821   :  { %v3564_v41 = vpack.i.bf16 %v2117_v11, %v4379_v6 }
 0x823   :  { %3490 = vrot.lane.b32.xlu0 %v3484_v54, %s3615_s22  ;;  %3510 = vrot.lane.b32.xlu1 %v3509_v27, %s3615_s22 }
 0x827   :  { %3500 = vrot.lane.b32.xlu0 %v3484_v54, %s3618_s25  ;;  %3520 = vrot.lane.b32.xlu1 %v3509_v27, %s3618_s25 }
 0x82b   :  { %3515 = vrot.lane.b32.xlu0 %v3509_v27, %s3617_s24  ;;  %3530 = vrot.lane.b32.xlu1 %v3509_v27, %s3620_s27 }
 0x82f   :  { %3525 = vrot.lane.b32.xlu0 %v3509_v27, %s3619_s26  ;;  %3545 = vrot.lane.b32.xlu1 %v3484_v54, %s3621_s28 }
 0x833   :  { %3535 = vrot.lane.b32.xlu0 %v3509_v27, %s3621_s28  ;;  %3550 = vrot.lane.b32.xlu1 %v3509_v27, %s3614_s21 }
 0x837   :  { %3540 = vrot.lane.b32.xlu0 %v3484_v54, %s3620_s27  ;;  %3555 = vrot.lane.b32.xlu1 %v3509_v27, %s3616_s23 }
 0x83b   :  { %3565 = vrot.lane.b32.xlu1 %v3564_v41, %s3617_s24  ;;  %3560 = vrot.lane.b32.xlu0 %v3564_v41, %s3615_s22 }
 0x83f   :  { %3575 = vrot.lane.b32.xlu1 %v3564_v41, %s3619_s26  ;;  %3570 = vrot.lane.b32.xlu0 %v3564_v41, %s3618_s25 }
 0x843   :  { %3585 = vrot.lane.b32.xlu1 %v3564_v41, %s3621_s28  ;;  %3580 = vrot.lane.b32.xlu0 %v3564_v41, %s3620_s27 }
 0x847   :  { %3595 = vrot.lane.b32.xlu1 %v3564_v41, %s3616_s23  ;;  %3590 = vrot.lane.b32.xlu0 %v3564_v41, %s3614_s21 }
 0x84b   :  { %90 = vperm.xlu0 %3047, %v87_v29  }
 0x87d   :  { %v3451_v30 = vpop.permute.xlu1 %3450  ;;  %v3441_v32 = vpop.permute.xlu0 %3440 }
 0x87e   :  { %v3443_v34 = vunpack.i.h.bf16 %v3441_v32  ;;  %v3442_v44 = vunpack.i.l.bf16 %v3441_v32  ;;  %v3453_v15 = vunpack.i.h.bf16 %v3451_v30  ;;  %v3452_v51 = vunpack.i.l.bf16 %v3451_v30 }
 0x880   :  { %v1888_v4 = vsel %vm107_vm1, %v3442_v44, %v3443_v34  ;;  %v1902_v26 = vsel %vm123_vm5, %v3452_v51, %v3453_v15 }
 0x881   :  { %v3461_v33 = vpop.permute.xlu1 %3460  ;;  %v3446_v10 = vpop.permute.xlu0 %3445  ;;  %v2837_v37 = vpack.c.bf16 %v1888_v4, %v4342_v25 }
 0x882   :  { %v3448_v48 = vunpack.i.h.bf16 %v3446_v10  ;;  %v3447_v49 = vunpack.i.l.bf16 %v3446_v10  ;;  %v3463_v25 = vunpack.i.h.bf16 %v3461_v33  ;;  %v3462_v23 = vunpack.i.l.bf16 %v3461_v33 }
 0x884   :  { %v1895_v9 = vsel %vm115_vm4, %v3447_v49, %v3448_v48  ;;  %v1916_v33 = vsel %vm139_vm7, %v3462_v23, %v3463_v25 }
 0x885   :  { %v4395_v61 = vpop.permute.xlu1 %3470  ;;  %v3456_v39 = vpop.permute.xlu0 %3455  ;;  %v2841_v5 = vpack.c.bf16 %v1902_v26, %v1895_v9 }
 0x886   :  { %v3458_v19 = vunpack.i.h.bf16 %v3456_v39  ;;  %v3457_v36 = vunpack.i.l.bf16 %v3456_v39  ;;  %v3473_v27 = vunpack.i.h.bf16 %v4395_v61  ;;  %v3472_v11 = vunpack.i.l.bf16 %v4395_v61 }
 0x889   :  { %v3486_v43 = vpop.permute.xlu1 %3485  ;;  %v3466_v8 = vpop.permute.xlu0 %3465 }
 0x88a   :  { %v3488_v38 = vunpack.i.h.bf16 %v3486_v43  ;;  %v3487_v45 = vunpack.i.l.bf16 %v3486_v43  ;;  %v3468_v1 = vunpack.i.h.bf16 %v3466_v8  ;;  %v3467_v54 = vunpack.i.l.bf16 %v3466_v8 }
 0x88c   :  { %v2016_v47 = vsel %vm163_vm3, %v3487_v45, %v3488_v38  ;;  %v1923_v34 = vsel %vm147_vm8, %v3467_v54, %v3468_v1 }
 0x88d   :  { %v4397_v2 = vpop.permute.xlu1 %3495  ;;  %v4399_v20 = vpop.permute.xlu0 %3475 }
 0x88e   :  { %v3478_v61 = vunpack.i.h.bf16 %v4399_v20  ;;  %v3477_v45 = vunpack.i.l.bf16 %v4399_v20 }
 0x891   :  { %v4401_v53 = vpop.permute.xlu1 %3505  ;;  %v3481_v46 = vpop.permute.xlu0 %3480 }
 0x892   :  { %v3483_v40 = vunpack.i.h.bf16 %v3481_v46  ;;  %v3482_v14 = vunpack.i.l.bf16 %v3481_v46  ;;  %v1930_v46 = vsel %vm155_vm2, %v3472_v11, %v3473_v27  ;;  %v3508_v25 = vunpack.i.h.bf16 %v4401_v53 }
 0x893   :  { %v2849_v4 = vpack.c.bf16 %v1930_v46, %v1923_v34  ;;  %v3507_v23 = vunpack.i.l.bf16 %v4401_v53 }
 0x894   :  { %v2009_v50 = vsel %vm155_vm2, %v3482_v14, %v3483_v40 }
 0x895   :  { %v3511_v18 = vpop.permute.xlu1 %3510  ;;  %v4406_v52 = vpop.permute.xlu0 %3490  ;;  %v2835_v56 = vpack.c.bf16 %v2016_v47, %v2009_v50 }
 0x896   :  { %v3513_v57 = vunpack.i.h.bf16 %v3511_v18  ;;  %v3512_v59 = vunpack.i.l.bf16 %v3511_v18  ;;  %v3493_v48 = vunpack.i.h.bf16 %v4406_v52  ;;  %v3492_v49 = vunpack.i.l.bf16 %v4406_v52 }
 0x897   :  { %2836 = vmatprep.subr.bf16.mxu0 %v2835_v56 }
 0x898   :  { %2838 = vmatpush3.bf16.msra.mxu0 %v2837_v37  ;;  %v2046_v3 = vsel %vm107_vm1, %v3512_v59, %v3513_v57  ;;  %v3498_v37 = vunpack.i.h.bf16 %v4397_v2  ;;  %v3497_v57 = vunpack.i.l.bf16 %v4397_v2  ;;  %v1937_v59 = vsel %vm163_vm3, %v3477_v45, %v3478_v61 }
 0x899   :  { %v3521_v22 = vpop.permute.xlu1 %3520  ;;  %v4412_v7 = vpop.permute.xlu0 %3500  ;;  %v2839_v62 = vpack.c.bf16 %v2046_v3, %v4360_v55  ;;  %v1909_v55 = vsel %vm131_vm6, %v3457_v36, %v3458_v19  ;;  %v1967_v52 = vsel %vm107_vm1, %v3492_v49, %v3493_v48  ;;  %v2853_v36 = vpack.c.bf16 %v4351_v16, %v1937_v59 }
 0x89a   :  { %v3523_v42 = vunpack.i.h.bf16 %v3521_v22  ;;  %v3522_v21 = vunpack.i.l.bf16 %v3521_v22  ;;  %v2845_v8 = vpack.c.bf16 %v1916_v33, %v1909_v55  ;;  %v3503_v26 = vunpack.i.h.bf16 %v4412_v7 }
 0x89b   :  { %2840 = vmatprep.subr.bf16.mxu0 %v2839_v62  ;;  %v3502_v22 = vunpack.i.l.bf16 %v4412_v7 }
 0x89c   :  { %2842 = vmatpush3.bf16.msra.mxu0 %v2841_v5  ;;  %v2060_v32 = vsel %vm123_vm5, %v3522_v21, %v3523_v42  ;;  %v1974_v21 = vsel %vm115_vm4, %v3497_v57, %v3498_v37 }
 0x89d   :  { %v3531_v58 = vpop.permute.xlu1 %3530  ;;  %v3516_v24 = vpop.permute.xlu0 %3515  ;;  %v1981_v7 = vsel %vm123_vm5, %v3502_v22, %v3503_v26 }
 0x89e   :  { %v3518_v35 = vunpack.i.h.bf16 %v3516_v24  ;;  %v3517_v0 = vunpack.i.l.bf16 %v3516_v24  ;;  %v3533_v41 = vunpack.i.h.bf16 %v3531_v58  ;;  %v3532_v29 = vunpack.i.l.bf16 %v3531_v58 }
 0x89f   :  { %v2857_v58 = vpack.c.bf16 %v1974_v21, %v1967_v52 }
 0x8a0   :  { %v2053_v30 = vsel %vm115_vm4, %v3517_v0, %v3518_v35  ;;  %v2074_v14 = vsel %vm139_vm7, %v3532_v29, %v3533_v41  ;;  %v1988_v29 = vsel %vm131_vm6, %v3507_v23, %v3508_v25 }
 0x8a1   :  { %v4421_v10 = vpop.permute.xlu1 %3545  ;;  %v3526_v39 = vpop.permute.xlu0 %3525  ;;  %v2843_v43 = vpack.c.bf16 %v2060_v32, %v2053_v30 }
 0x8a2   :  { %v3528_v44 = vunpack.i.h.bf16 %v3526_v39  ;;  %v3527_v38 = vunpack.i.l.bf16 %v3526_v39  ;;  %v3548_v53 = vunpack.i.h.bf16 %v4421_v10  ;;  %v3547_v30 = vunpack.i.l.bf16 %v4421_v10 }
 0x8a3   :  { %2844 = vmatprep.subr.bf16.mxu0 %v2843_v43  ;;  %v2861_v39 = vpack.c.bf16 %v1988_v29, %v1981_v7 }
 0x8a4   :  { %2846 = vmatpush3.bf16.msra.mxu0 %v2845_v8  ;;  %v2067_v40 = vsel %vm131_vm6, %v3527_v38, %v3528_v44  ;;  %v2002_v46 = vsel %vm147_vm8, %v3547_v30, %v3548_v53 }
 0x8a5   :  { %v3551_v50 = vpop.permute.xlu1 %3550  ;;  %v3536_v47 = vpop.permute.xlu0 %3535  ;;  %v2847_v15 = vpack.c.bf16 %v2074_v14, %v2067_v40 }
 0x8a6   :  { %v3553_v51 = vunpack.i.h.bf16 %v3551_v50  ;;  %v3552_v18 = vunpack.i.l.bf16 %v3551_v50  ;;  %v3538_v56 = vunpack.i.h.bf16 %v3536_v47  ;;  %v3537_v20 = vunpack.i.l.bf16 %v3536_v47 }
 0x8a7   :  { %2848 = vmatprep.subr.bf16.mxu0 %v2847_v15 }
 0x8a8   :  { %2850 = vmatpush3.bf16.msra.mxu0 %v2849_v4  ;;  %v2081_v9 = vsel %vm147_vm8, %v3537_v20, %v3538_v56  ;;  %v2088_v3 = vsel %vm155_vm2, %v3552_v18, %v3553_v51 }
 0x8a9   :  { %v3556_v62 = vpop.permute.xlu1 %3555  ;;  %v3541_v5 = vpop.permute.xlu0 %3540  ;;  %v2851_v19 = vpack.c.bf16 %v2088_v3, %v2081_v9 }
 0x8aa   :  { %v3558_v2 = vunpack.i.h.bf16 %v3556_v62  ;;  %v3557_v42 = vunpack.i.l.bf16 %v3556_v62  ;;  %v3543_v1 = vunpack.i.h.bf16 %v3541_v5  ;;  %v3542_v54 = vunpack.i.l.bf16 %v3541_v5 }
 0x8ab   :  { %2852 = vmatprep.subr.bf16.mxu0 %v2851_v19 }
 0x8ac   :  { %2854 = vmatpush3.bf16.msra.mxu0 %v2853_v36  ;;  %v2095_v24 = vsel %vm163_vm3, %v3557_v42, %v3558_v2  ;;  %v1995_v43 = vsel %vm139_vm7, %v3542_v54, %v3543_v1  ;;  %v1233_v36 = vstv %s2370_s6 }
 0x8ad   :  { %v3566_v35 = vpop.permute.xlu1 %3565  ;;  %v3561_v0 = vpop.permute.xlu0 %3560  ;;  %v2855_v16 = vpack.c.bf16 %v4379_v6, %v2095_v24  ;;  %v2865_v14 = vpack.c.bf16 %v2002_v46, %v1995_v43 }
 0x8ae   :  { %v3568_v27 = vunpack.i.h.bf16 %v3566_v35  ;;  %v3567_v11 = vunpack.i.l.bf16 %v3566_v35  ;;  %v3563_v55 = vunpack.i.h.bf16 %v3561_v0  ;;  %v3562_v41 = vunpack.i.l.bf16 %v3561_v0 }
 0x8af   :  { %2856 = vmatprep.subr.bf16.mxu0 %v2855_v16 }
 0x8b0   :  { %2858 = vmatpush3.bf16.msra.mxu0 %v2857_v58  ;;  %v2125_v32 = vsel %vm107_vm1, %v3562_v41, %v3563_v55  ;;  %v2132_v33 = vsel %vm115_vm4, %v3567_v11, %v3568_v27 }
 0x8b1   :  { %v3576_v6 = vpop.permute.xlu1 %3575  ;;  %v3571_v8 = vpop.permute.xlu0 %3570  ;;  %v2859_v34 = vpack.c.bf16 %v2132_v33, %v2125_v32 }
 0x8b2   :  { %v3578_v44 = vunpack.i.h.bf16 %v3576_v6  ;;  %v3577_v38 = vunpack.i.l.bf16 %v3576_v6  ;;  %v3573_v61 = vunpack.i.h.bf16 %v3571_v8  ;;  %v3572_v45 = vunpack.i.l.bf16 %v3571_v8 }
 0x8b3   :  { %2860 = vmatprep.subr.bf16.mxu0 %v2859_v34 }
 0x8b4   :  { %2862 = vmatpush3.bf16.msra.mxu0 %v2861_v39  ;;  %v2139_v10 = vsel %vm123_vm5, %v3572_v45, %v3573_v61  ;;  %v2146_v40 = vsel %vm131_vm6, %v3577_v38, %v3578_v44 }
 0x8b5   :  { %v3586_v4 = vpop.permute.xlu1 %3585  ;;  %v3581_v48 = vpop.permute.xlu0 %3580  ;;  %v2863_v49 = vpack.c.bf16 %v2146_v40, %v2139_v10 }
 0x8b6   :  { %v3588_v50 = vunpack.i.h.bf16 %v3586_v4  ;;  %v3587_v47 = vunpack.i.l.bf16 %v3586_v4  ;;  %v3583_v15 = vunpack.i.h.bf16 %v3581_v48  ;;  %v3582_v51 = vunpack.i.l.bf16 %v3581_v48 }
 0x8b7   :  { %2864 = vmatprep.subr.bf16.mxu0 %v2863_v49 }
 0x8b8   :  { %v2160_v18 = vsel %vm147_vm8, %v3587_v47, %v3588_v50  ;;  %v2153_v56 = vsel %vm139_vm7, %v3582_v51, %v3583_v15  ;;  %2866 = vmatpush3.bf16.msra.mxu0 %v2865_v14 }
 0x8b9   :  { %v2868_v20 = vpack.c.bf16 %v2160_v18, %v2153_v56  ;;  %v3596_v37 = vpop.permute.xlu1 %3595  ;;  %v3591_v57 = vpop.permute.xlu0 %3590 }
 0x8ba   :  { %v3598_v59 = vunpack.i.h.bf16 %v3596_v37  ;;  %v3597_v9 = vunpack.i.l.bf16 %v3596_v37  ;;  %v3593_v3 = vunpack.i.h.bf16 %v3591_v57  ;;  %v3592_v52 = vunpack.i.l.bf16 %v3591_v57 }
 0x8bb   :  { %2284 = vmatmul.mubr.f32.vlgmr.msra.gmra.mrb[4].mxu0 %v4199_v31  ;;  %2869 = vmatpush3.bf16.msra.mxu1 %v2868_v20 }
 0x8bc   :  { %v2174_v26 = vsel %vm163_vm3, %v3597_v9, %v3598_v59  ;;  %v2167_v22 = vsel %vm155_vm2, %v3592_v52, %v3593_v3  ;;  %2870 = vmatprep.subr.bf16.mxu1 %v3622_v12 }
 0x8bd   :  { %v2871_v62 = vpack.c.bf16 %v2174_v26, %v2167_v22 }
 0x8bf   :  { %2872 = vmatpush3.bf16.msra.mxu1 %v2871_v62 }
 0x8c2   :  { %2687 = vmatmul.mubr.msk.f32.vlgmr.msra.gmra.mrb[16].mxu1 %vm392_vm9, %v4217_v63 }
 0x8ca   :  { %v91_v5 = vpop.permute.xlu0 %90 }
 0x8cb   :  { %v1159_v19 = vadd.f32 %v4233_v13, %v91_v5 }
 0x8cd   :  { %v1229_v2 = vadd.f32 %v4235_v28, %v1159_v19 }
 0x8cf   :  { %vm1232_vm1 = vcmp.ge.f32.partialorder %v1229_v2, 0.0  ;;  %v1234_v31 = vmul.f32 %v1233_v36, %v1229_v2 }
 0x8d1   :  { %v1235_v42 = vsel %vm1232_vm1, %v1229_v2, %v1234_v31 }
 0x8d2   :  { %v1236_v21 = vadd.f32 %v1235_v42, %v3822_v17 }
 0x8d4   :  { %1237 = vst [vmem:[%s4481_s8] sm:$0xff] %v1236_v21 }
 0x98e   :  { %v2589_v12 = vpop.f32.mrb[4].mxu0 }
 0x98f   :  { %v2590_v25 = vpop.f32.mrb[5].mxu0 }
 0x990   :  { %v2591_v23 = vadd.f32 %v2590_v25, %v2589_v12 }
 0x992   :  { %v2286_v63 = vadd.f32 %v2591_v23, %v91_v5 }
 0x995   :  { %v2355_v58 = vpop.f32.mrb[16].mxu1 }
 0x996   :  { %v2356_v24 = vadd.f32 %v2355_v58, %v2286_v63  ;;  %v2688_v7 = vpop.f32.mrb[17].mxu1 }
 0x998   :  { %vm2359_vm2 = vcmp.ge.f32.partialorder %v2356_v24, 0.0  ;;  %v2360_v13 = vmul.f32 %v2356_v24, %v1233_v36 }
 0x99a   :  { %v2361_v1 = vsel %vm2359_vm2, %v2356_v24, %v2360_v13 }
 0x99b   :  { %v2362_v28 = vadd.f32 %v2361_v1, %v4240_v60 }
 0x99d   :  { %2363 = vst [vmem:[%s4481_s8 + $0x8] sm:$0xff] %v2362_v28 }
 0x99e   :  { %2368 = vsyncpa [#allocation5], 1 }

</bundles_post_ra>
